<compile_context>
chip_gen: v7x
topology: tpu7x:2x2x1
jax: 0.10.0
libtpu: 0.0.40
codegen_flags: <defaults>
</compile_context>

<pallas_src>
import math

import jax
import jax.numpy as jnp
from jax.experimental import pallas as pl
from jax.experimental.pallas import tpu as pltpu


# Tiling thresholds (f32 element budgets for live intermediates inside a block).
_SCORE_F32_ELEMS_BUDGET = 2 * 1024 * 1024   # ~8 MiB of live attention scores
_FF_F32_ELEMS_BUDGET = 2 * 1024 * 1024      # ~8 MiB of live FFN intermediate
_KV_TILE = 512                              # KV chunk for online softmax
_FF_ROW_TILE = 256                          # row chunk for the FFN


# ----------------------------------------------------------------------------
# Pallas kernel: one full encoder layer for a (Bb, T, D) block of the batch
# ----------------------------------------------------------------------------
def make_encoder_layer_kernel(n_heads: int, mode: str):
    eps = 1e-6
    use_approx = (mode == "fast")

    def layer_norm(r, g, be):
        # Matches the custom torch LayerNorm: unbiased (Bessel) std, eps added
        # to the std (NOT inside the sqrt).
        d = r.shape[-1]
        mean = jnp.mean(r, axis=-1, keepdims=True)
        c = r - mean
        var = jnp.sum(c * c, axis=-1, keepdims=True) * (1.0 / (d - 1))
        std = jnp.sqrt(var)
        if use_approx:
            inv = pl.reciprocal(std + eps, approx=True)
        else:
            inv = 1.0 / (std + eps)
        return g * (c * inv) + be

    def kernel(x_ref, wqkv_ref, wo_ref, w1_ref, b1_ref, w2_ref, b2_ref,
               g1_ref, be1_ref, g2_ref, be2_ref, o_ref):
        Bb, T, D = x_ref.shape
        H = n_heads
        dh = D // H
        rows = Bb * T

        if mode == "fast":
            x2 = x_ref[...].reshape(rows, D)        # (rows, D) f32
        else:
            x2 = x_ref[0]                           # safe mode: Bb == 1
        xb = x2.astype(jnp.bfloat16)

        # --- fused QKV projection: one MXU pass over the [Q|K|V] bf16 weight;
        #     1/sqrt(d_model) is already folded into the Q columns ---
        qkv = jnp.dot(xb, wqkv_ref[...],
                      preferred_element_type=jnp.float32)           # (rows, 3D)

        if mode == "fast":
            # Lane-aligned slices at offsets 0 / D / 2D, then one reshape + one
            # transpose per tensor (replaces the O(Bb*H) python stack of
            # 3*dh-offset slices that forced per-slice relayout copies).
            def to_heads(c0):
                t4 = qkv[:, c0:c0 + D].reshape(Bb, T, H, dh)
                return (jnp.swapaxes(t4, 1, 2)
                        .reshape(Bb * H, T, dh).astype(jnp.bfloat16))
            qh, kh, vh = to_heads(0), to_heads(D), to_heads(2 * D)

            n = Bb * H
            if n * T * T <= _SCORE_F32_ELEMS_BUDGET:
                # Full-score path: a single pair of head-batched dot_generals.
                s = jnp.einsum('nqd,nkd->nqk', qh, kh,
                               preferred_element_type=jnp.float32)   # (n, T, T)
                s = s - jnp.max(s, axis=-1, keepdims=True)
                # TODO(synk): bf16 exp on v6e/v7x (EUP ~2x) is possible; kept f32
                # so the same code path is optimal on v5e (no bf16 EUP).
                p = jnp.exp(s)
                p = p * pl.reciprocal(jnp.sum(p, axis=-1, keepdims=True),
                                      approx=True)
                ctx = jnp.einsum('nqk,nkd->nqd', p.astype(jnp.bfloat16), vh,
                                 preferred_element_type=jnp.float32)  # (n,T,dh)
            else:
                # KV-tiled online softmax: bounds the live scores to
                # (n, T, _KV_TILE) instead of the full (n, T, T) matrix.
                m_i = jnp.full((n, T, 1), -jnp.inf, jnp.float32)
                l_i = jnp.zeros((n, T, 1), jnp.float32)
                acc = jnp.zeros((n, T, dh), jnp.float32)
                for k0 in range(0, T, _KV_TILE):
                    kc = kh[:, k0:k0 + _KV_TILE]
                    vc = vh[:, k0:k0 + _KV_TILE]
                    s = jnp.einsum('nqd,nkd->nqk', qh, kc,
                                   preferred_element_type=jnp.float32)
                    m_new = jnp.maximum(m_i, jnp.max(s, axis=-1, keepdims=True))
                    alpha = jnp.exp(m_i - m_new)
                    p = jnp.exp(s - m_new)
                    l_i = alpha * l_i + jnp.sum(p, axis=-1, keepdims=True)
                    acc = alpha * acc + jnp.einsum(
                        'nqk,nkd->nqd', p.astype(jnp.bfloat16), vc,
                        preferred_element_type=jnp.float32)
                    m_i = m_new
                ctx = acc * pl.reciprocal(l_i, approx=True)

            # Head merge = one transpose feeding a single (rows, D) x (D, D)
            # W_O MXU pass (replaces the nested per-head lane concats).
            ctx2 = jnp.swapaxes(ctx.reshape(Bb, H, T, dh), 1, 2).reshape(rows, D)
        else:
            # Safe fallback: proven 2-D per-head formulation (slices are still
            # lane-aligned thanks to the [Q|K|V] weight layout).
            heads = []
            for h in range(H):
                qhh = qkv[:, h * dh:(h + 1) * dh].astype(jnp.bfloat16)
                khh = qkv[:, D + h * dh:D + (h + 1) * dh].astype(jnp.bfloat16)
                vhh = qkv[:, 2 * D + h * dh:2 * D + (h + 1) * dh].astype(jnp.bfloat16)
                sc = jnp.dot(qhh, khh.T, preferred_element_type=jnp.float32)
                sc = sc - jnp.max(sc, axis=-1, keepdims=True)
                pp = jnp.exp(sc)
                pp = pp / jnp.sum(pp, axis=-1, keepdims=True)
                heads.append(jnp.dot(pp.astype(jnp.bfloat16), vhh,
                                     preferred_element_type=jnp.float32))
            ctx2 = jnp.concatenate(heads, axis=-1)                    # (rows, D)

        attn = jnp.dot(ctx2.astype(jnp.bfloat16), wo_ref[...],
                       preferred_element_type=jnp.float32)            # (rows, D)

        # --- ResidualBlock 1: LayerNorm(x + attn) ---
        h1 = layer_norm(x2 + attn, g1_ref[...], be1_ref[...])

        # --- FeedForward: linear2(relu(linear1(h1))), row-tiled when large ---
        Hd = w1_ref.shape[1]

        def ffn(h1c):
            f = jnp.dot(h1c.astype(jnp.bfloat16), w1_ref[...],
                        preferred_element_type=jnp.float32) + b1_ref[...]
            f = jnp.maximum(f, 0.0)
            return jnp.dot(f.astype(jnp.bfloat16), w2_ref[...],
                           preferred_element_type=jnp.float32) + b2_ref[...]

        if rows * Hd <= _FF_F32_ELEMS_BUDGET or rows <= _FF_ROW_TILE:
            ff = ffn(h1)
        else:
            # TODO(synk): move to lax.fori_loop(unroll=True) + VMEM scratch so
            # chunk live-ranges are bounded for the register allocator.
            ff = jnp.concatenate(
                [ffn(h1[r0:r0 + _FF_ROW_TILE])
                 for r0 in range(0, rows, _FF_ROW_TILE)], axis=0)

        # --- ResidualBlock 2: LayerNorm(h1 + ff) ---
        h2 = layer_norm(h1 + ff, g2_ref[...], be2_ref[...])

        if mode == "fast":
            o_ref[...] = h2.reshape(Bb, T, D).astype(o_ref.dtype)
        else:
            o_ref[0] = h2.astype(o_ref.dtype)

    return kernel


# ----------------------------------------------------------------------------
# pallas_call wrapper
# ----------------------------------------------------------------------------
_VMEM_LIMIT = None


def _vmem_limit_bytes():
    """Generation-aware scoped-VMEM limit: ~60% of physical VMEM.
    v7x (64 MiB/TC) -> ~38 MiB; v5e/v6e (128 MiB) -> ~76 MiB."""
    global _VMEM_LIMIT
    if _VMEM_LIMIT is None:
        cap = 128 * 1024 * 1024
        try:
            cap = int(getattr(pltpu.get_tpu_info(), "vmem_capacity_bytes", cap))
        except Exception:
            pass
        _VMEM_LIMIT = max(16 * 1024 * 1024,
                          min((cap * 3) // 5, 100 * 1024 * 1024))
    return _VMEM_LIMIT


def _pick_block_b(B, T):
    """Pack batch elements to ~256 rows per grid step (amortizes ~0.35us/step
    and feeds the 256-wide MXU on v6e/v7x), but cap at B//2 so the 'parallel'
    grid axis has >= 2 iterations (one per v7x TensorCore), dividing B evenly."""
    bb = min(B, max(1, 256 // max(T, 1)), 8, max(1, B // 2))
    while B % bb:
        bb -= 1
    return max(bb, 1)


def _layer_call(x, prep, n_heads, mode, single_buffer_weights):
    B, T, D = x.shape
    Hd = prep["w1"].shape[1]
    Bb = _pick_block_b(B, T) if mode == "fast" else 1
    kernel = make_encoder_layer_kernel(n_heads, mode)

    # NOTE: for production shapes keep D (and d_hidden) padded to multiples of
    # 128 so the output stores stay lane-dense (D=32 here is the tiny test).
    if single_buffer_weights:
        def wspec(shape):  # constant-index weights never change -> 1 buffer
            return pl.BlockSpec(shape, lambda i: (0,) * len(shape),
                                pipeline_mode=pl.Buffered(1))
    else:
        def wspec(shape):
            return pl.BlockSpec(shape, lambda i: (0,) * len(shape))

    return pl.pallas_call(
        kernel,
        out_shape=jax.ShapeDtypeStruct((B, T, D), x.dtype),
        grid=(B // Bb,),
        in_specs=[
            pl.BlockSpec((Bb, T, D), lambda i: (i, 0, 0)),
            wspec((D, 3 * D)),       # fused [Q|K|V] weight (bf16, scale folded)
            wspec((D, D)),           # wo (bf16)
            wspec((D, Hd)), wspec((1, Hd)),
            wspec((Hd, D)), wspec((1, D)),
            wspec((1, D)), wspec((1, D)), wspec((1, D)), wspec((1, D)),
        ],
        out_specs=pl.BlockSpec((Bb, T, D), lambda i: (i, 0, 0)),
        compiler_params=pltpu.CompilerParams(
            dimension_semantics=("parallel",),
            vmem_limit_bytes=_vmem_limit_bytes()),
    )(x, prep["wqkv"], prep["wo"], prep["w1"], prep["b1"], prep["w2"], prep["b2"],
      prep["g1"], prep["be1"], prep["g2"], prep["be2"])


_LAYER_CONFIG = None  # cached (mode, single_buffer_weights) after one-time probe


def encoder_layer_pallas(x, prep, n_heads):
    """One fused encoder layer.  The first call probes which formulation lowers
    on the local Mosaic build (jax.block_until_ready ONLY inside this probe);
    all later calls dispatch asynchronously with the cached config so layer
    N+1's weight streaming overlaps layer N's compute."""
    global _LAYER_CONFIG
    if _LAYER_CONFIG is not None:
        return _layer_call(x, prep, n_heads, *_LAYER_CONFIG)

    err = None
    for cfg in (("fast", True), ("fast", False), ("safe", False)):
        try:
            out = jax.block_until_ready(_layer_call(x, prep, n_heads, *cfg))
            _LAYER_CONFIG = cfg
            if cfg != ("fast", True):
                print("pallas transformer: falling back to config "
                      f"{cfg} (reason: {type(err).__name__})")
            return out
        except Exception as e:      # lowering / API-availability probe
            err = e
    raise err


# ----------------------------------------------------------------------------
# Glue (plain JAX): weight prep, positional encodings, parameter init, forward
# ----------------------------------------------------------------------------
def prepare_layer_params(p, n_heads):
    """Fuse wq/wk/wv into one (D, 3D) bf16 weight laid out [Q_all|K_all|V_all]
    (so the kernel slices Q/K/V lane-aligned at offsets 0/D/2D), fold the
    1/sqrt(d_model) attention scale into the Q columns, cast matmuls to bf16."""
    del n_heads  # head split is a reshape in-kernel; column order is unchanged
    D = p["wq"].shape[0]
    inv_scale = 1.0 / math.sqrt(D)            # Attention(d_key=d_model)
    wqkv = jnp.concatenate([p["wq"] * inv_scale, p["wk"], p["wv"]], axis=1)
    bf = jnp.bfloat16
    # TODO(synk): pad D / d_hidden to multiples of 128 (256 on v6e) here for
    # production shapes so all matmul tiles / output stores stay lane-dense.
    # TODO(synk): fp8 quantization of w1/w2 for the v7x MXU (halves weight
    # footprint) is not applied; needs accuracy validation.
    return dict(
        wqkv=wqkv.astype(bf), wo=p["wo"].astype(bf),
        w1=p["w1"].astype(bf), w2=p["w2"].astype(bf),
        b1=p["b1"], b2=p["b2"],
        g1=p["g1"], be1=p["be1"], g2=p["g2"], be2=p["be2"],
    )


def prepare_transformer_params(layer_params, n_heads):
    """Call ONCE (after init / checkpoint load) and reuse across forward calls —
    weight fusion + bf16 casting is hoisted out of the forward pass."""
    return [prepare_layer_params(p, n_heads) for p in layer_params]


def positional_encodings_like(T, D):
    positions = jnp.arange(T, dtype=jnp.float32)
    channels = jnp.arange(D)
    exponent = jnp.where(channels % 2 == 0, channels, channels - 1).astype(jnp.float32) / D
    angles = positions[:, None] / (10000.0 ** exponent)[None, :]
    enc = jnp.where((channels % 2 == 0)[None, :], jnp.sin(angles), jnp.cos(angles))
    return enc.astype(jnp.float32)                               # (T, D)


def init_params(key, n_layers, d_model, d_hidden):
    layers = []
    for _ in range(n_layers):
        keys = jax.random.split(key, 7)
        key = keys[0]
        s = 0.05
        layers.append({
            "wq": s * jax.random.normal(keys[1], (d_model, d_model), jnp.float32),
            "wk": s * jax.random.normal(keys[2], (d_model, d_model), jnp.float32),
            "wv": s * jax.random.normal(keys[3], (d_model, d_model), jnp.float32),
            "wo": s * jax.random.normal(keys[4], (d_model, d_model), jnp.float32),
            "w1": s * jax.random.normal(keys[5], (d_model, d_hidden), jnp.float32),
            "b1": jnp.zeros((1, d_hidden), jnp.float32),
            "w2": s * jax.random.normal(keys[6], (d_hidden, d_model), jnp.float32),
            "b2": jnp.zeros((1, d_model), jnp.float32),
            "g1": jnp.ones((1, d_model), jnp.float32),
            "be1": jnp.zeros((1, d_model), jnp.float32),
            "g2": jnp.ones((1, d_model), jnp.float32),
            "be2": jnp.zeros((1, d_model), jnp.float32),
        })
    return layers


def transformer_forward(x, prepped_layers, n_heads):
    """Matches Transformer.forward: returns (encoding[-1], list_of_encodings).
    `prepped_layers` must come from prepare_transformer_params (prep hoisted)."""
    B, T, D = x.shape
    x = x + positional_encodings_like(T, D)[None, :, :]
    # TODO(synk): dropout layers are identity (inference semantics); no RNG dropout.
    # TODO(synk): cross-layer weight residency (fuse 2+ layers per pallas_call
    # when their bf16 weights fit VMEM) or P10 cross-call weight prefetch would
    # remove the per-layer HBM weight re-read + activation round-trip.
    encodings = []
    for prep in prepped_layers:
        x = encoder_layer_pallas(x, prep, n_heads)   # async dispatch; no host sync
        encodings.append(x)
    return encodings[-1], encodings


# ----------------------------------------------------------------------------
# Pure-JAX f32 reference (mirrors the PyTorch module) for numerical checking
# ----------------------------------------------------------------------------
def _ref_layer(x, p, n_heads):
    B, T, D = x.shape
    dh = D // n_heads
    scale = math.sqrt(D)
    q = x @ p["wq"]; k = x @ p["wk"]; v = x @ p["wv"]
    outs = []
    for h in range(n_heads):
        qh = q[..., h * dh:(h + 1) * dh]
        kh = k[..., h * dh:(h + 1) * dh]
        vh = v[..., h * dh:(h + 1) * dh]
        s = jnp.einsum("btd,bsd->bts", qh, kh) / scale
        p_att = jax.nn.softmax(s, axis=-1)
        outs.append(jnp.einsum("bts,bsd->btd", p_att, vh))
    attn = jnp.concatenate(outs, -1) @ p["wo"]

    def ln(y, g, b):
        mean = jnp.mean(y, -1, keepdims=True)
        std = jnp.sqrt(jnp.sum((y - mean) ** 2, -1, keepdims=True) / (D - 1))
        return g * (y - mean) / (std + 1e-6) + b

    h1 = ln(x + attn, p["g1"], p["be1"])
    ff = jnp.maximum(h1 @ p["w1"] + p["b1"], 0.0) @ p["w2"] + p["b2"]
    return ln(h1 + ff, p["g2"], p["be2"])


def _ref_forward(x, layer_params, n_heads):
    B, T, D = x.shape
    x = x + positional_encodings_like(T, D)[None, :, :]
    encs = []
    for p in layer_params:
        x = _ref_layer(x, p, n_heads)
        encs.append(x)
    return encs[-1], encs


# ----------------------------------------------------------------------------
if __name__ == "__main__":
    B, T, d_model = 2, 8, 32
    n_heads, d_hidden, n_layers = 4, 64, 2

    key = jax.random.PRNGKey(0)
    k_x, k_p = jax.random.split(key)
    x = jax.random.normal(k_x, (B, T, d_model), jnp.float32)
    params = init_params(k_p, n_layers, d_model, d_hidden)
    prepped = prepare_transformer_params(params, n_heads)   # ONCE, outside forward

    out_last, encodings = transformer_forward(x, prepped, n_heads)
    out_last = jax.block_until_ready(out_last)
    encodings = [jax.block_until_ready(e) for e in encodings]

    ref_last, ref_encs = _ref_forward(x, params, n_heads)
    assert out_last.shape == (B, T, d_model)
    assert len(encodings) == n_layers
    # bf16 matmul inputs (f32 accumulation) + approx reciprocal -> widened tol.
    for got, want in zip(encodings, ref_encs):
        assert jnp.allclose(got, want, atol=5e-2, rtol=5e-2)
    assert jnp.allclose(out_last, ref_last, atol=5e-2, rtol=5e-2)

    print("KERNEL_OK")
</pallas_src>

<mosaic_0001>
module attributes {stable_mosaic.version = 11 : i64} {
  func.func @kernel(%arg0: i32, %arg1: memref<1x8x32xf32, #tpu.memory_space<vmem>>, %arg2: memref<32x96xbf16, #tpu.memory_space<vmem>>, %arg3: memref<32x32xbf16, #tpu.memory_space<vmem>>, %arg4: memref<32x64xbf16, #tpu.memory_space<vmem>>, %arg5: memref<1x64xf32, #tpu.memory_space<vmem>>, %arg6: memref<64x32xbf16, #tpu.memory_space<vmem>>, %arg7: memref<1x32xf32, #tpu.memory_space<vmem>>, %arg8: memref<1x32xf32, #tpu.memory_space<vmem>>, %arg9: memref<1x32xf32, #tpu.memory_space<vmem>>, %arg10: memref<1x32xf32, #tpu.memory_space<vmem>>, %arg11: memref<1x32xf32, #tpu.memory_space<vmem>>, %arg12: memref<1x8x32xf32, #tpu.memory_space<vmem>>) attributes {dimension_semantics = [#tpu.dimension_semantics<parallel>], iteration_bounds = array<i64: 2>, scalar_prefetch = 0 : i64, scratch_operands = 0 : i64, tpu.core_type = #tpu.core_type<tc>, window_params = [{transform_indices = @transform_0, window_bounds = array<i64: 1, 8, 32>}, {pipeline_mode = #tpu.pipeline_mode<synchronous>, transform_indices = @transform_1, window_bounds = array<i64: 32, 96>}, {pipeline_mode = #tpu.pipeline_mode<synchronous>, transform_indices = @transform_2, window_bounds = array<i64: 32, 32>}, {pipeline_mode = #tpu.pipeline_mode<synchronous>, transform_indices = @transform_3, window_bounds = array<i64: 32, 64>}, {pipeline_mode = #tpu.pipeline_mode<synchronous>, transform_indices = @transform_4, window_bounds = array<i64: 1, 64>}, {pipeline_mode = #tpu.pipeline_mode<synchronous>, transform_indices = @transform_5, window_bounds = array<i64: 64, 32>}, {pipeline_mode = #tpu.pipeline_mode<synchronous>, transform_indices = @transform_6, window_bounds = array<i64: 1, 32>}, {pipeline_mode = #tpu.pipeline_mode<synchronous>, transform_indices = @transform_7, window_bounds = array<i64: 1, 32>}, {pipeline_mode = #tpu.pipeline_mode<synchronous>, transform_indices = @transform_8, window_bounds = array<i64: 1, 32>}, {pipeline_mode = #tpu.pipeline_mode<synchronous>, transform_indices = @transform_9, window_bounds = array<i64: 1, 32>}, {pipeline_mode = #tpu.pipeline_mode<synchronous>, transform_indices = @transform_10, window_bounds = array<i64: 1, 32>}, {transform_indices = @transform_11, window_bounds = array<i64: 1, 8, 32>}]} {
    %c0 = arith.constant 0 : index
    %c0_0 = arith.constant 0 : index
    %c0_1 = arith.constant 0 : index
    %0 = vector.load %arg1[%c0, %c0_0, %c0_1] : memref<1x8x32xf32, #tpu.memory_space<vmem>>, vector<1x8x32xf32>
    %1 = vector.shape_cast %0 : vector<1x8x32xf32> to vector<8x32xf32>
    %2 = arith.truncf %1 : vector<8x32xf32> to vector<8x32xbf16>
    %c0_2 = arith.constant 0 : index
    %c0_3 = arith.constant 0 : index
    %3 = vector.load %arg2[%c0_2, %c0_3] : memref<32x96xbf16, #tpu.memory_space<vmem>>, vector<32x96xbf16>
    %cst = arith.constant dense<0.000000e+00> : vector<8x96xf32>
    %4 = tpu.matmul %2, %3, %cst {dimension_numbers = #tpu.dot_dimension_numbers<[1], [0], [0], [1], [0, 0, 1, 1], [], []>} : vector<8x32xbf16>, vector<32x96xbf16>, vector<8x96xf32> -> vector<8x96xf32>
    %5 = vector.extract_strided_slice %4 {offsets = [0, 0], sizes = [8, 32], strides = [1, 1]} : vector<8x96xf32> to vector<8x32xf32>
    %6 = vector.shape_cast %5 : vector<8x32xf32> to vector<1x8x4x8xf32>
    %7 = tpu.transpose %6, [0, 2, 1, 3] : vector<1x8x4x8xf32> -> vector<1x4x8x8xf32>
    %8 = vector.shape_cast %7 : vector<1x4x8x8xf32> to vector<4x8x8xf32>
    %9 = arith.truncf %8 : vector<4x8x8xf32> to vector<4x8x8xbf16>
    %10 = vector.extract_strided_slice %4 {offsets = [0, 32], sizes = [8, 32], strides = [1, 1]} : vector<8x96xf32> to vector<8x32xf32>
    %11 = vector.shape_cast %10 : vector<8x32xf32> to vector<1x8x4x8xf32>
    %12 = tpu.transpose %11, [0, 2, 1, 3] : vector<1x8x4x8xf32> -> vector<1x4x8x8xf32>
    %13 = vector.shape_cast %12 : vector<1x4x8x8xf32> to vector<4x8x8xf32>
    %14 = arith.truncf %13 : vector<4x8x8xf32> to vector<4x8x8xbf16>
    %15 = vector.extract_strided_slice %4 {offsets = [0, 64], sizes = [8, 32], strides = [1, 1]} : vector<8x96xf32> to vector<8x32xf32>
    %16 = vector.shape_cast %15 : vector<8x32xf32> to vector<1x8x4x8xf32>
    %17 = tpu.transpose %16, [0, 2, 1, 3] : vector<1x8x4x8xf32> -> vector<1x4x8x8xf32>
    %18 = vector.shape_cast %17 : vector<1x4x8x8xf32> to vector<4x8x8xf32>
    %19 = arith.truncf %18 : vector<4x8x8xf32> to vector<4x8x8xbf16>
    "tpu.trace_start"() <{level = 10 : i32, message = "nqd,nkd->nqk"}> : () -> ()
    %cst_4 = arith.constant dense<0.000000e+00> : vector<4x8x8xf32>
    %20 = tpu.matmul %9, %14, %cst_4 {dimension_numbers = #tpu.dot_dimension_numbers<[2], [2], [1], [1], [0, 0, 0, 1, 1, 1], [0], [0]>} : vector<4x8x8xbf16>, vector<4x8x8xbf16>, vector<4x8x8xf32> -> vector<4x8x8xf32>
    "tpu.trace_stop"() : () -> ()
    %cst_5 = arith.constant dense<0xFF800000> : vector<4x8xf32>
    %21 = vector.multi_reduction <maximumf>, %20, %cst_5 [2] : vector<4x8x8xf32> to vector<4x8xf32>
    %22 = vector.shape_cast %21 : vector<4x8xf32> to vector<4x8x1xf32>
    %23 = vector.broadcast %22 : vector<4x8x1xf32> to vector<4x8x8xf32>
    %24 = arith.subf %20, %23 : vector<4x8x8xf32>
    %25 = math.exp %24 : vector<4x8x8xf32>
    %cst_6 = arith.constant dense<0.000000e+00> : vector<4x8xf32>
    %26 = vector.multi_reduction <add>, %25, %cst_6 [2] : vector<4x8x8xf32> to vector<4x8xf32>
    %27 = vector.shape_cast %26 : vector<4x8xf32> to vector<4x8x1xf32>
    %28 = tpu.reciprocal %27 {approx = true} : vector<4x8x1xf32> -> vector<4x8x1xf32>
    %29 = vector.broadcast %28 : vector<4x8x1xf32> to vector<4x8x8xf32>
    %30 = arith.mulf %25, %29 : vector<4x8x8xf32>
    %31 = arith.truncf %30 : vector<4x8x8xf32> to vector<4x8x8xbf16>
    "tpu.trace_start"() <{level = 10 : i32, message = "nqk,nkd->nqd"}> : () -> ()
    %cst_7 = arith.constant dense<0.000000e+00> : vector<4x8x8xf32>
    %32 = tpu.matmul %31, %19, %cst_7 {dimension_numbers = #tpu.dot_dimension_numbers<[2], [1], [1], [2], [0, 0, 0, 1, 1, 2], [0], [0]>} : vector<4x8x8xbf16>, vector<4x8x8xbf16>, vector<4x8x8xf32> -> vector<4x8x8xf32>
    "tpu.trace_stop"() : () -> ()
    %33 = vector.shape_cast %32 : vector<4x8x8xf32> to vector<1x4x8x8xf32>
    %34 = tpu.transpose %33, [0, 2, 1, 3] : vector<1x4x8x8xf32> -> vector<1x8x4x8xf32>
    %35 = vector.shape_cast %34 : vector<1x8x4x8xf32> to vector<8x32xf32>
    %36 = arith.truncf %35 : vector<8x32xf32> to vector<8x32xbf16>
    %c0_8 = arith.constant 0 : index
    %c0_9 = arith.constant 0 : index
    %37 = vector.load %arg3[%c0_8, %c0_9] : memref<32x32xbf16, #tpu.memory_space<vmem>>, vector<32x32xbf16>
    %cst_10 = arith.constant dense<0.000000e+00> : vector<8x32xf32>
    %38 = tpu.matmul %36, %37, %cst_10 {dimension_numbers = #tpu.dot_dimension_numbers<[1], [0], [0], [1], [0, 0, 1, 1], [], []>} : vector<8x32xbf16>, vector<32x32xbf16>, vector<8x32xf32> -> vector<8x32xf32>
    %39 = arith.addf %1, %38 : vector<8x32xf32>
    %c0_11 = arith.constant 0 : index
    %c0_12 = arith.constant 0 : index
    %40 = vector.load %arg8[%c0_11, %c0_12] : memref<1x32xf32, #tpu.memory_space<vmem>>, vector<1x32xf32>
    %c0_13 = arith.constant 0 : index
    %c0_14 = arith.constant 0 : index
    %41 = vector.load %arg9[%c0_13, %c0_14] : memref<1x32xf32, #tpu.memory_space<vmem>>, vector<1x32xf32>
    %cst_15 = arith.constant dense<0.000000e+00> : vector<8xf32>
    %42 = vector.multi_reduction <add>, %39, %cst_15 [1] : vector<8x32xf32> to vector<8xf32>
    %43 = vector.shape_cast %42 : vector<8xf32> to vector<8x1xf32>
    %cst_16 = arith.constant 3.200000e+01 : f32
    %44 = vector.broadcast %cst_16 : f32 to vector<8x1xf32>
    %45 = arith.divf %43, %44 : vector<8x1xf32>
    %46 = vector.broadcast %45 : vector<8x1xf32> to vector<8x32xf32>
    %47 = arith.subf %39, %46 : vector<8x32xf32>
    %48 = arith.mulf %47, %47 : vector<8x32xf32>
    %cst_17 = arith.constant dense<0.000000e+00> : vector<8xf32>
    %49 = vector.multi_reduction <add>, %48, %cst_17 [1] : vector<8x32xf32> to vector<8xf32>
    %50 = vector.shape_cast %49 : vector<8xf32> to vector<8x1xf32>
    %cst_18 = arith.constant 0.0322580636 : f32
    %51 = vector.broadcast %cst_18 : f32 to vector<8x1xf32>
    %52 = arith.mulf %50, %51 : vector<8x1xf32>
    %53 = math.sqrt %52 : vector<8x1xf32>
    %cst_19 = arith.constant 9.99999997E-7 : f32
    %54 = vector.broadcast %cst_19 : f32 to vector<8x1xf32>
    %55 = arith.addf %53, %54 : vector<8x1xf32>
    %56 = tpu.reciprocal %55 {approx = true} : vector<8x1xf32> -> vector<8x1xf32>
    %57 = vector.broadcast %56 : vector<8x1xf32> to vector<8x32xf32>
    %58 = arith.mulf %47, %57 : vector<8x32xf32>
    %59 = vector.broadcast %40 : vector<1x32xf32> to vector<8x32xf32>
    %60 = arith.mulf %59, %58 : vector<8x32xf32>
    %61 = vector.broadcast %41 : vector<1x32xf32> to vector<8x32xf32>
    %62 = arith.addf %60, %61 : vector<8x32xf32>
    %63 = arith.truncf %62 : vector<8x32xf32> to vector<8x32xbf16>
    %c0_20 = arith.constant 0 : index
    %c0_21 = arith.constant 0 : index
    %64 = vector.load %arg4[%c0_20, %c0_21] : memref<32x64xbf16, #tpu.memory_space<vmem>>, vector<32x64xbf16>
    %cst_22 = arith.constant dense<0.000000e+00> : vector<8x64xf32>
    %65 = tpu.matmul %63, %64, %cst_22 {dimension_numbers = #tpu.dot_dimension_numbers<[1], [0], [0], [1], [0, 0, 1, 1], [], []>} : vector<8x32xbf16>, vector<32x64xbf16>, vector<8x64xf32> -> vector<8x64xf32>
    %c0_23 = arith.constant 0 : index
    %c0_24 = arith.constant 0 : index
    %66 = vector.load %arg5[%c0_23, %c0_24] : memref<1x64xf32, #tpu.memory_space<vmem>>, vector<1x64xf32>
    %67 = vector.broadcast %66 : vector<1x64xf32> to vector<8x64xf32>
    %68 = arith.addf %65, %67 : vector<8x64xf32>
    %cst_25 = arith.constant 0.000000e+00 : f32
    %69 = vector.broadcast %cst_25 : f32 to vector<8x64xf32>
    %70 = arith.maximumf %68, %69 : vector<8x64xf32>
    %71 = arith.truncf %70 : vector<8x64xf32> to vector<8x64xbf16>
    %c0_26 = arith.constant 0 : index
    %c0_27 = arith.constant 0 : index
    %72 = vector.load %arg6[%c0_26, %c0_27] : memref<64x32xbf16, #tpu.memory_space<vmem>>, vector<64x32xbf16>
    %cst_28 = arith.constant dense<0.000000e+00> : vector<8x32xf32>
    %73 = tpu.matmul %71, %72, %cst_28 {dimension_numbers = #tpu.dot_dimension_numbers<[1], [0], [0], [1], [0, 0, 1, 1], [], []>} : vector<8x64xbf16>, vector<64x32xbf16>, vector<8x32xf32> -> vector<8x32xf32>
    %c0_29 = arith.constant 0 : index
    %c0_30 = arith.constant 0 : index
    %74 = vector.load %arg7[%c0_29, %c0_30] : memref<1x32xf32, #tpu.memory_space<vmem>>, vector<1x32xf32>
    %75 = vector.broadcast %74 : vector<1x32xf32> to vector<8x32xf32>
    %76 = arith.addf %73, %75 : vector<8x32xf32>
    %77 = arith.addf %62, %76 : vector<8x32xf32>
    %c0_31 = arith.constant 0 : index
    %c0_32 = arith.constant 0 : index
    %78 = vector.load %arg10[%c0_31, %c0_32] : memref<1x32xf32, #tpu.memory_space<vmem>>, vector<1x32xf32>
    %c0_33 = arith.constant 0 : index
    %c0_34 = arith.constant 0 : index
    %79 = vector.load %arg11[%c0_33, %c0_34] : memref<1x32xf32, #tpu.memory_space<vmem>>, vector<1x32xf32>
    %cst_35 = arith.constant dense<0.000000e+00> : vector<8xf32>
    %80 = vector.multi_reduction <add>, %77, %cst_35 [1] : vector<8x32xf32> to vector<8xf32>
    %81 = vector.shape_cast %80 : vector<8xf32> to vector<8x1xf32>
    %cst_36 = arith.constant 3.200000e+01 : f32
    %82 = vector.broadcast %cst_36 : f32 to vector<8x1xf32>
    %83 = arith.divf %81, %82 : vector<8x1xf32>
    %84 = vector.broadcast %83 : vector<8x1xf32> to vector<8x32xf32>
    %85 = arith.subf %77, %84 : vector<8x32xf32>
    %86 = arith.mulf %85, %85 : vector<8x32xf32>
    %cst_37 = arith.constant dense<0.000000e+00> : vector<8xf32>
    %87 = vector.multi_reduction <add>, %86, %cst_37 [1] : vector<8x32xf32> to vector<8xf32>
    %88 = vector.shape_cast %87 : vector<8xf32> to vector<8x1xf32>
    %cst_38 = arith.constant 0.0322580636 : f32
    %89 = vector.broadcast %cst_38 : f32 to vector<8x1xf32>
    %90 = arith.mulf %88, %89 : vector<8x1xf32>
    %91 = math.sqrt %90 : vector<8x1xf32>
    %cst_39 = arith.constant 9.99999997E-7 : f32
    %92 = vector.broadcast %cst_39 : f32 to vector<8x1xf32>
    %93 = arith.addf %91, %92 : vector<8x1xf32>
    %94 = tpu.reciprocal %93 {approx = true} : vector<8x1xf32> -> vector<8x1xf32>
    %95 = vector.broadcast %94 : vector<8x1xf32> to vector<8x32xf32>
    %96 = arith.mulf %85, %95 : vector<8x32xf32>
    %97 = vector.broadcast %78 : vector<1x32xf32> to vector<8x32xf32>
    %98 = arith.mulf %97, %96 : vector<8x32xf32>
    %99 = vector.broadcast %79 : vector<1x32xf32> to vector<8x32xf32>
    %100 = arith.addf %98, %99 : vector<8x32xf32>
    %101 = vector.shape_cast %100 : vector<8x32xf32> to vector<1x8x32xf32>
    %c0_40 = arith.constant 0 : index
    %c0_41 = arith.constant 0 : index
    %c0_42 = arith.constant 0 : index
    %102 = vector.load %arg12[%c0_40, %c0_41, %c0_42] : memref<1x8x32xf32, #tpu.memory_space<vmem>>, vector<1x8x32xf32>
    tpu.vector_store %arg12[%c0_40, %c0_41, %c0_42], %101 {strides = array<i32>} : memref<1x8x32xf32, #tpu.memory_space<vmem>>, vector<1x8x32xf32>,
    return
  }
  func.func @transform_0(%arg0: i32) -> (i32, i32, i32) {
    %c0_i32 = arith.constant 0 : i32
    %c0_i32_0 = arith.constant 0 : i32
    %c0_i32_1 = arith.constant 0 : i32
    return %arg0, %c0_i32, %c0_i32_0 : i32, i32, i32
  }
  func.func @transform_1(%arg0: i32) -> (i32, i32) {
    %c0_i32 = arith.constant 0 : i32
    %c0_i32_0 = arith.constant 0 : i32
    %c0_i32_1 = arith.constant 0 : i32
    return %c0_i32, %c0_i32_0 : i32, i32
  }
  func.func @transform_2(%arg0: i32) -> (i32, i32) {
    %c0_i32 = arith.constant 0 : i32
    %c0_i32_0 = arith.constant 0 : i32
    %c0_i32_1 = arith.constant 0 : i32
    return %c0_i32, %c0_i32_0 : i32, i32
  }
  func.func @transform_3(%arg0: i32) -> (i32, i32) {
    %c0_i32 = arith.constant 0 : i32
    %c0_i32_0 = arith.constant 0 : i32
    %c0_i32_1 = arith.constant 0 : i32
    return %c0_i32, %c0_i32_0 : i32, i32
  }
  func.func @transform_4(%arg0: i32) -> (i32, i32) {
    %c0_i32 = arith.constant 0 : i32
    %c0_i32_0 = arith.constant 0 : i32
    %c0_i32_1 = arith.constant 0 : i32
    return %c0_i32, %c0_i32_0 : i32, i32
  }
  func.func @transform_5(%arg0: i32) -> (i32, i32) {
    %c0_i32 = arith.constant 0 : i32
    %c0_i32_0 = arith.constant 0 : i32
    %c0_i32_1 = arith.constant 0 : i32
    return %c0_i32, %c0_i32_0 : i32, i32
  }
  func.func @transform_6(%arg0: i32) -> (i32, i32) {
    %c0_i32 = arith.constant 0 : i32
    %c0_i32_0 = arith.constant 0 : i32
    %c0_i32_1 = arith.constant 0 : i32
    return %c0_i32, %c0_i32_0 : i32, i32
  }
  func.func @transform_7(%arg0: i32) -> (i32, i32) {
    %c0_i32 = arith.constant 0 : i32
    %c0_i32_0 = arith.constant 0 : i32
    %c0_i32_1 = arith.constant 0 : i32
    return %c0_i32, %c0_i32_0 : i32, i32
  }
  func.func @transform_8(%arg0: i32) -> (i32, i32) {
    %c0_i32 = arith.constant 0 : i32
    %c0_i32_0 = arith.constant 0 : i32
    %c0_i32_1 = arith.constant 0 : i32
    return %c0_i32, %c0_i32_0 : i32, i32
  }
  func.func @transform_9(%arg0: i32) -> (i32, i32) {
    %c0_i32 = arith.constant 0 : i32
    %c0_i32_0 = arith.constant 0 : i32
    %c0_i32_1 = arith.constant 0 : i32
    return %c0_i32, %c0_i32_0 : i32, i32
  }
  func.func @transform_10(%arg0: i32) -> (i32, i32) {
    %c0_i32 = arith.constant 0 : i32
    %c0_i32_0 = arith.constant 0 : i32
    %c0_i32_1 = arith.constant 0 : i32
    return %c0_i32, %c0_i32_0 : i32, i32
  }
  func.func @transform_11(%arg0: i32) -> (i32, i32, i32) {
    %c0_i32 = arith.constant 0 : i32
    %c0_i32_0 = arith.constant 0 : i32
    %c0_i32_1 = arith.constant 0 : i32
    return %arg0, %c0_i32, %c0_i32_0 : i32, i32, i32
  }
}

module attributes {stable_mosaic.version = 11 : i64} {
  func.func @kernel(%arg0: i32, %arg1: memref<1x8x32xf32, #tpu.memory_space<vmem>>, %arg2: memref<32x96xbf16, #tpu.memory_space<vmem>>, %arg3: memref<32x32xbf16, #tpu.memory_space<vmem>>, %arg4: memref<32x64xbf16, #tpu.memory_space<vmem>>, %arg5: memref<1x64xf32, #tpu.memory_space<vmem>>, %arg6: memref<64x32xbf16, #tpu.memory_space<vmem>>, %arg7: memref<1x32xf32, #tpu.memory_space<vmem>>, %arg8: memref<1x32xf32, #tpu.memory_space<vmem>>, %arg9: memref<1x32xf32, #tpu.memory_space<vmem>>, %arg10: memref<1x32xf32, #tpu.memory_space<vmem>>, %arg11: memref<1x32xf32, #tpu.memory_space<vmem>>, %arg12: memref<1x8x32xf32, #tpu.memory_space<vmem>>) attributes {dimension_semantics = [#tpu.dimension_semantics<parallel>], iteration_bounds = array<i64: 2>, scalar_prefetch = 0 : i64, scratch_operands = 0 : i64, tpu.core_type = #tpu.core_type<tc>, window_params = [{transform_indices = @transform_0, window_bounds = array<i64: 1, 8, 32>}, {pipeline_mode = #tpu.pipeline_mode<synchronous>, transform_indices = @transform_1, window_bounds = array<i64: 32, 96>}, {pipeline_mode = #tpu.pipeline_mode<synchronous>, transform_indices = @transform_2, window_bounds = array<i64: 32, 32>}, {pipeline_mode = #tpu.pipeline_mode<synchronous>, transform_indices = @transform_3, window_bounds = array<i64: 32, 64>}, {pipeline_mode = #tpu.pipeline_mode<synchronous>, transform_indices = @transform_4, window_bounds = array<i64: 1, 64>}, {pipeline_mode = #tpu.pipeline_mode<synchronous>, transform_indices = @transform_5, window_bounds = array<i64: 64, 32>}, {pipeline_mode = #tpu.pipeline_mode<synchronous>, transform_indices = @transform_6, window_bounds = array<i64: 1, 32>}, {pipeline_mode = #tpu.pipeline_mode<synchronous>, transform_indices = @transform_7, window_bounds = array<i64: 1, 32>}, {pipeline_mode = #tpu.pipeline_mode<synchronous>, transform_indices = @transform_8, window_bounds = array<i64: 1, 32>}, {pipeline_mode = #tpu.pipeline_mode<synchronous>, transform_indices = @transform_9, window_bounds = array<i64: 1, 32>}, {pipeline_mode = #tpu.pipeline_mode<synchronous>, transform_indices = @transform_10, window_bounds = array<i64: 1, 32>}, {transform_indices = @transform_11, window_bounds = array<i64: 1, 8, 32>}]} {
    %c0 = arith.constant 0 : index
    %c0_0 = arith.constant 0 : index
    %c0_1 = arith.constant 0 : index
    %0 = vector.load %arg1[%c0, %c0_0, %c0_1] : memref<1x8x32xf32, #tpu.memory_space<vmem>>, vector<1x8x32xf32>
    %1 = vector.shape_cast %0 : vector<1x8x32xf32> to vector<8x32xf32>
    %2 = arith.truncf %1 : vector<8x32xf32> to vector<8x32xbf16>
    %c0_2 = arith.constant 0 : index
    %c0_3 = arith.constant 0 : index
    %3 = vector.load %arg2[%c0_2, %c0_3] : memref<32x96xbf16, #tpu.memory_space<vmem>>, vector<32x96xbf16>
    %cst = arith.constant dense<0.000000e+00> : vector<8x96xf32>
    %4 = tpu.matmul %2, %3, %cst {dimension_numbers = #tpu.dot_dimension_numbers<[1], [0], [0], [1], [0, 0, 1, 1], [], []>} : vector<8x32xbf16>, vector<32x96xbf16>, vector<8x96xf32> -> vector<8x96xf32>
    %5 = vector.extract_strided_slice %4 {offsets = [0, 0], sizes = [8, 32], strides = [1, 1]} : vector<8x96xf32> to vector<8x32xf32>
    %6 = vector.shape_cast %5 : vector<8x32xf32> to vector<1x8x4x8xf32>
    %7 = tpu.transpose %6, [0, 2, 1, 3] : vector<1x8x4x8xf32> -> vector<1x4x8x8xf32>
    %8 = vector.shape_cast %7 : vector<1x4x8x8xf32> to vector<4x8x8xf32>
    %9 = arith.truncf %8 : vector<4x8x8xf32> to vector<4x8x8xbf16>
    %10 = vector.extract_strided_slice %4 {offsets = [0, 32], sizes = [8, 32], strides = [1, 1]} : vector<8x96xf32> to vector<8x32xf32>
    %11 = vector.shape_cast %10 : vector<8x32xf32> to vector<1x8x4x8xf32>
    %12 = tpu.transpose %11, [0, 2, 1, 3] : vector<1x8x4x8xf32> -> vector<1x4x8x8xf32>
    %13 = vector.shape_cast %12 : vector<1x4x8x8xf32> to vector<4x8x8xf32>
    %14 = arith.truncf %13 : vector<4x8x8xf32> to vector<4x8x8xbf16>
    %15 = vector.extract_strided_slice %4 {offsets = [0, 64], sizes = [8, 32], strides = [1, 1]} : vector<8x96xf32> to vector<8x32xf32>
    %16 = vector.shape_cast %15 : vector<8x32xf32> to vector<1x8x4x8xf32>
    %17 = tpu.transpose %16, [0, 2, 1, 3] : vector<1x8x4x8xf32> -> vector<1x4x8x8xf32>
    %18 = vector.shape_cast %17 : vector<1x4x8x8xf32> to vector<4x8x8xf32>
    %19 = arith.truncf %18 : vector<4x8x8xf32> to vector<4x8x8xbf16>
    "tpu.trace_start"() <{level = 10 : i32, message = "nqd,nkd->nqk"}> : () -> ()
    %cst_4 = arith.constant dense<0.000000e+00> : vector<4x8x8xf32>
    %20 = tpu.matmul %9, %14, %cst_4 {dimension_numbers = #tpu.dot_dimension_numbers<[2], [2], [1], [1], [0, 0, 0, 1, 1, 1], [0], [0]>} : vector<4x8x8xbf16>, vector<4x8x8xbf16>, vector<4x8x8xf32> -> vector<4x8x8xf32>
    "tpu.trace_stop"() : () -> ()
    %cst_5 = arith.constant dense<0xFF800000> : vector<4x8xf32>
    %21 = vector.multi_reduction <maximumf>, %20, %cst_5 [2] : vector<4x8x8xf32> to vector<4x8xf32>
    %22 = vector.shape_cast %21 : vector<4x8xf32> to vector<4x8x1xf32>
    %23 = vector.broadcast %22 : vector<4x8x1xf32> to vector<4x8x8xf32>
    %24 = arith.subf %20, %23 : vector<4x8x8xf32>
    %25 = math.exp %24 : vector<4x8x8xf32>
    %cst_6 = arith.constant dense<0.000000e+00> : vector<4x8xf32>
    %26 = vector.multi_reduction <add>, %25, %cst_6 [2] : vector<4x8x8xf32> to vector<4x8xf32>
    %27 = vector.shape_cast %26 : vector<4x8xf32> to vector<4x8x1xf32>
    %28 = tpu.reciprocal %27 {approx = true} : vector<4x8x1xf32> -> vector<4x8x1xf32>
    %29 = vector.broadcast %28 : vector<4x8x1xf32> to vector<4x8x8xf32>
    %30 = arith.mulf %25, %29 : vector<4x8x8xf32>
    %31 = arith.truncf %30 : vector<4x8x8xf32> to vector<4x8x8xbf16>
    "tpu.trace_start"() <{level = 10 : i32, message = "nqk,nkd->nqd"}> : () -> ()
    %cst_7 = arith.constant dense<0.000000e+00> : vector<4x8x8xf32>
    %32 = tpu.matmul %31, %19, %cst_7 {dimension_numbers = #tpu.dot_dimension_numbers<[2], [1], [1], [2], [0, 0, 0, 1, 1, 2], [0], [0]>} : vector<4x8x8xbf16>, vector<4x8x8xbf16>, vector<4x8x8xf32> -> vector<4x8x8xf32>
    "tpu.trace_stop"() : () -> ()
    %33 = vector.shape_cast %32 : vector<4x8x8xf32> to vector<1x4x8x8xf32>
    %34 = tpu.transpose %33, [0, 2, 1, 3] : vector<1x4x8x8xf32> -> vector<1x8x4x8xf32>
    %35 = vector.shape_cast %34 : vector<1x8x4x8xf32> to vector<8x32xf32>
    %36 = arith.truncf %35 : vector<8x32xf32> to vector<8x32xbf16>
    %c0_8 = arith.constant 0 : index
    %c0_9 = arith.constant 0 : index
    %37 = vector.load %arg3[%c0_8, %c0_9] : memref<32x32xbf16, #tpu.memory_space<vmem>>, vector<32x32xbf16>
    %cst_10 = arith.constant dense<0.000000e+00> : vector<8x32xf32>
    %38 = tpu.matmul %36, %37, %cst_10 {dimension_numbers = #tpu.dot_dimension_numbers<[1], [0], [0], [1], [0, 0, 1, 1], [], []>} : vector<8x32xbf16>, vector<32x32xbf16>, vector<8x32xf32> -> vector<8x32xf32>
    %39 = arith.addf %1, %38 : vector<8x32xf32>
    %c0_11 = arith.constant 0 : index
    %c0_12 = arith.constant 0 : index
    %40 = vector.load %arg8[%c0_11, %c0_12] : memref<1x32xf32, #tpu.memory_space<vmem>>, vector<1x32xf32>
    %c0_13 = arith.constant 0 : index
    %c0_14 = arith.constant 0 : index
    %41 = vector.load %arg9[%c0_13, %c0_14] : memref<1x32xf32, #tpu.memory_space<vmem>>, vector<1x32xf32>
    %cst_15 = arith.constant dense<0.000000e+00> : vector<8xf32>
    %42 = vector.multi_reduction <add>, %39, %cst_15 [1] : vector<8x32xf32> to vector<8xf32>
    %43 = vector.shape_cast %42 : vector<8xf32> to vector<8x1xf32>
    %cst_16 = arith.constant 3.200000e+01 : f32
    %44 = vector.broadcast %cst_16 : f32 to vector<8x1xf32>
    %45 = arith.divf %43, %44 : vector<8x1xf32>
    %46 = vector.broadcast %45 : vector<8x1xf32> to vector<8x32xf32>
    %47 = arith.subf %39, %46 : vector<8x32xf32>
    %48 = arith.mulf %47, %47 : vector<8x32xf32>
    %cst_17 = arith.constant dense<0.000000e+00> : vector<8xf32>
    %49 = vector.multi_reduction <add>, %48, %cst_17 [1] : vector<8x32xf32> to vector<8xf32>
    %50 = vector.shape_cast %49 : vector<8xf32> to vector<8x1xf32>
    %cst_18 = arith.constant 0.0322580636 : f32
    %51 = vector.broadcast %cst_18 : f32 to vector<8x1xf32>
    %52 = arith.mulf %50, %51 : vector<8x1xf32>
    %53 = math.sqrt %52 : vector<8x1xf32>
    %cst_19 = arith.constant 9.99999997E-7 : f32
    %54 = vector.broadcast %cst_19 : f32 to vector<8x1xf32>
    %55 = arith.addf %53, %54 : vector<8x1xf32>
    %56 = tpu.reciprocal %55 {approx = true} : vector<8x1xf32> -> vector<8x1xf32>
    %57 = vector.broadcast %56 : vector<8x1xf32> to vector<8x32xf32>
    %58 = arith.mulf %47, %57 : vector<8x32xf32>
    %59 = vector.broadcast %40 : vector<1x32xf32> to vector<8x32xf32>
    %60 = arith.mulf %59, %58 : vector<8x32xf32>
    %61 = vector.broadcast %41 : vector<1x32xf32> to vector<8x32xf32>
    %62 = arith.addf %60, %61 : vector<8x32xf32>
    %63 = arith.truncf %62 : vector<8x32xf32> to vector<8x32xbf16>
    %c0_20 = arith.constant 0 : index
    %c0_21 = arith.constant 0 : index
    %64 = vector.load %arg4[%c0_20, %c0_21] : memref<32x64xbf16, #tpu.memory_space<vmem>>, vector<32x64xbf16>
    %cst_22 = arith.constant dense<0.000000e+00> : vector<8x64xf32>
    %65 = tpu.matmul %63, %64, %cst_22 {dimension_numbers = #tpu.dot_dimension_numbers<[1], [0], [0], [1], [0, 0, 1, 1], [], []>} : vector<8x32xbf16>, vector<32x64xbf16>, vector<8x64xf32> -> vector<8x64xf32>
    %c0_23 = arith.constant 0 : index
    %c0_24 = arith.constant 0 : index
    %66 = vector.load %arg5[%c0_23, %c0_24] : memref<1x64xf32, #tpu.memory_space<vmem>>, vector<1x64xf32>
    %67 = vector.broadcast %66 : vector<1x64xf32> to vector<8x64xf32>
    %68 = arith.addf %65, %67 : vector<8x64xf32>
    %cst_25 = arith.constant 0.000000e+00 : f32
    %69 = vector.broadcast %cst_25 : f32 to vector<8x64xf32>
    %70 = arith.maximumf %68, %69 : vector<8x64xf32>
    %71 = arith.truncf %70 : vector<8x64xf32> to vector<8x64xbf16>
    %c0_26 = arith.constant 0 : index
    %c0_27 = arith.constant 0 : index
    %72 = vector.load %arg6[%c0_26, %c0_27] : memref<64x32xbf16, #tpu.memory_space<vmem>>, vector<64x32xbf16>
    %cst_28 = arith.constant dense<0.000000e+00> : vector<8x32xf32>
    %73 = tpu.matmul %71, %72, %cst_28 {dimension_numbers = #tpu.dot_dimension_numbers<[1], [0], [0], [1], [0, 0, 1, 1], [], []>} : vector<8x64xbf16>, vector<64x32xbf16>, vector<8x32xf32> -> vector<8x32xf32>
    %c0_29 = arith.constant 0 : index
    %c0_30 = arith.constant 0 : index
    %74 = vector.load %arg7[%c0_29, %c0_30] : memref<1x32xf32, #tpu.memory_space<vmem>>, vector<1x32xf32>
    %75 = vector.broadcast %74 : vector<1x32xf32> to vector<8x32xf32>
    %76 = arith.addf %73, %75 : vector<8x32xf32>
    %77 = arith.addf %62, %76 : vector<8x32xf32>
    %c0_31 = arith.constant 0 : index
    %c0_32 = arith.constant 0 : index
    %78 = vector.load %arg10[%c0_31, %c0_32] : memref<1x32xf32, #tpu.memory_space<vmem>>, vector<1x32xf32>
    %c0_33 = arith.constant 0 : index
    %c0_34 = arith.constant 0 : index
    %79 = vector.load %arg11[%c0_33, %c0_34] : memref<1x32xf32, #tpu.memory_space<vmem>>, vector<1x32xf32>
    %cst_35 = arith.constant dense<0.000000e+00> : vector<8xf32>
    %80 = vector.multi_reduction <add>, %77, %cst_35 [1] : vector<8x32xf32> to vector<8xf32>
    %81 = vector.shape_cast %80 : vector<8xf32> to vector<8x1xf32>
    %cst_36 = arith.constant 3.200000e+01 : f32
    %82 = vector.broadcast %cst_36 : f32 to vector<8x1xf32>
    %83 = arith.divf %81, %82 : vector<8x1xf32>
    %84 = vector.broadcast %83 : vector<8x1xf32> to vector<8x32xf32>
    %85 = arith.subf %77, %84 : vector<8x32xf32>
    %86 = arith.mulf %85, %85 : vector<8x32xf32>
    %cst_37 = arith.constant dense<0.000000e+00> : vector<8xf32>
    %87 = vector.multi_reduction <add>, %86, %cst_37 [1] : vector<8x32xf32> to vector<8xf32>
    %88 = vector.shape_cast %87 : vector<8xf32> to vector<8x1xf32>
    %cst_38 = arith.constant 0.0322580636 : f32
    %89 = vector.broadcast %cst_38 : f32 to vector<8x1xf32>
    %90 = arith.mulf %88, %89 : vector<8x1xf32>
    %91 = math.sqrt %90 : vector<8x1xf32>
    %cst_39 = arith.constant 9.99999997E-7 : f32
    %92 = vector.broadcast %cst_39 : f32 to vector<8x1xf32>
    %93 = arith.addf %91, %92 : vector<8x1xf32>
    %94 = tpu.reciprocal %93 {approx = true} : vector<8x1xf32> -> vector<8x1xf32>
    %95 = vector.broadcast %94 : vector<8x1xf32> to vector<8x32xf32>
    %96 = arith.mulf %85, %95 : vector<8x32xf32>
    %97 = vector.broadcast %78 : vector<1x32xf32> to vector<8x32xf32>
    %98 = arith.mulf %97, %96 : vector<8x32xf32>
    %99 = vector.broadcast %79 : vector<1x32xf32> to vector<8x32xf32>
    %100 = arith.addf %98, %99 : vector<8x32xf32>
    %101 = vector.shape_cast %100 : vector<8x32xf32> to vector<1x8x32xf32>
    %c0_40 = arith.constant 0 : index
    %c0_41 = arith.constant 0 : index
    %c0_42 = arith.constant 0 : index
    %102 = vector.load %arg12[%c0_40, %c0_41, %c0_42] : memref<1x8x32xf32, #tpu.memory_space<vmem>>, vector<1x8x32xf32>
    tpu.vector_store %arg12[%c0_40, %c0_41, %c0_42], %101 {strides = array<i32>} : memref<1x8x32xf32, #tpu.memory_space<vmem>>, vector<1x8x32xf32>,
    return
  }
  func.func @transform_0(%arg0: i32) -> (i32, i32, i32) {
    %c0_i32 = arith.constant 0 : i32
    %c0_i32_0 = arith.constant 0 : i32
    %c0_i32_1 = arith.constant 0 : i32
    return %arg0, %c0_i32, %c0_i32_0 : i32, i32, i32
  }
  func.func @transform_1(%arg0: i32) -> (i32, i32) {
    %c0_i32 = arith.constant 0 : i32
    %c0_i32_0 = arith.constant 0 : i32
    %c0_i32_1 = arith.constant 0 : i32
    return %c0_i32, %c0_i32_0 : i32, i32
  }
  func.func @transform_2(%arg0: i32) -> (i32, i32) {
    %c0_i32 = arith.constant 0 : i32
    %c0_i32_0 = arith.constant 0 : i32
    %c0_i32_1 = arith.constant 0 : i32
    return %c0_i32, %c0_i32_0 : i32, i32
  }
  func.func @transform_3(%arg0: i32) -> (i32, i32) {
    %c0_i32 = arith.constant 0 : i32
    %c0_i32_0 = arith.constant 0 : i32
    %c0_i32_1 = arith.constant 0 : i32
    return %c0_i32, %c0_i32_0 : i32, i32
  }
  func.func @transform_4(%arg0: i32) -> (i32, i32) {
    %c0_i32 = arith.constant 0 : i32
    %c0_i32_0 = arith.constant 0 : i32
    %c0_i32_1 = arith.constant 0 : i32
    return %c0_i32, %c0_i32_0 : i32, i32
  }
  func.func @transform_5(%arg0: i32) -> (i32, i32) {
    %c0_i32 = arith.constant 0 : i32
    %c0_i32_0 = arith.constant 0 : i32
    %c0_i32_1 = arith.constant 0 : i32
    return %c0_i32, %c0_i32_0 : i32, i32
  }
  func.func @transform_6(%arg0: i32) -> (i32, i32) {
    %c0_i32 = arith.constant 0 : i32
    %c0_i32_0 = arith.constant 0 : i32
    %c0_i32_1 = arith.constant 0 : i32
    return %c0_i32, %c0_i32_0 : i32, i32
  }
  func.func @transform_7(%arg0: i32) -> (i32, i32) {
    %c0_i32 = arith.constant 0 : i32
    %c0_i32_0 = arith.constant 0 : i32
    %c0_i32_1 = arith.constant 0 : i32
    return %c0_i32, %c0_i32_0 : i32, i32
  }
  func.func @transform_8(%arg0: i32) -> (i32, i32) {
    %c0_i32 = arith.constant 0 : i32
    %c0_i32_0 = arith.constant 0 : i32
    %c0_i32_1 = arith.constant 0 : i32
    return %c0_i32, %c0_i32_0 : i32, i32
  }
  func.func @transform_9(%arg0: i32) -> (i32, i32) {
    %c0_i32 = arith.constant 0 : i32
    %c0_i32_0 = arith.constant 0 : i32
    %c0_i32_1 = arith.constant 0 : i32
    return %c0_i32, %c0_i32_0 : i32, i32
  }
  func.func @transform_10(%arg0: i32) -> (i32, i32) {
    %c0_i32 = arith.constant 0 : i32
    %c0_i32_0 = arith.constant 0 : i32
    %c0_i32_1 = arith.constant 0 : i32
    return %c0_i32, %c0_i32_0 : i32, i32
  }
  func.func @transform_11(%arg0: i32) -> (i32, i32, i32) {
    %c0_i32 = arith.constant 0 : i32
    %c0_i32_0 = arith.constant 0 : i32
    %c0_i32_1 = arith.constant 0 : i32
    return %arg0, %c0_i32, %c0_i32_0 : i32, i32, i32
  }
}

module attributes {stable_mosaic.version = 11 : i64} {
  func.func @kernel(%arg0: i32, %arg1: memref<1x8x32xf32, #tpu.memory_space<vmem>>, %arg2: memref<32x96xbf16, #tpu.memory_space<vmem>>, %arg3: memref<32x32xbf16, #tpu.memory_space<vmem>>, %arg4: memref<32x64xbf16, #tpu.memory_space<vmem>>, %arg5: memref<1x64xf32, #tpu.memory_space<vmem>>, %arg6: memref<64x32xbf16, #tpu.memory_space<vmem>>, %arg7: memref<1x32xf32, #tpu.memory_space<vmem>>, %arg8: memref<1x32xf32, #tpu.memory_space<vmem>>, %arg9: memref<1x32xf32, #tpu.memory_space<vmem>>, %arg10: memref<1x32xf32, #tpu.memory_space<vmem>>, %arg11: memref<1x32xf32, #tpu.memory_space<vmem>>, %arg12: memref<1x8x32xf32, #tpu.memory_space<vmem>>) attributes {dimension_semantics = [#tpu.dimension_semantics<parallel>], iteration_bounds = array<i64: 2>, scalar_prefetch = 0 : i64, scratch_operands = 0 : i64, tpu.core_type = #tpu.core_type<tc>, window_params = [{transform_indices = @transform_0, window_bounds = array<i64: 1, 8, 32>}, {pipeline_mode = #tpu.pipeline_mode<synchronous>, transform_indices = @transform_1, window_bounds = array<i64: 32, 96>}, {pipeline_mode = #tpu.pipeline_mode<synchronous>, transform_indices = @transform_2, window_bounds = array<i64: 32, 32>}, {pipeline_mode = #tpu.pipeline_mode<synchronous>, transform_indices = @transform_3, window_bounds = array<i64: 32, 64>}, {pipeline_mode = #tpu.pipeline_mode<synchronous>, transform_indices = @transform_4, window_bounds = array<i64: 1, 64>}, {pipeline_mode = #tpu.pipeline_mode<synchronous>, transform_indices = @transform_5, window_bounds = array<i64: 64, 32>}, {pipeline_mode = #tpu.pipeline_mode<synchronous>, transform_indices = @transform_6, window_bounds = array<i64: 1, 32>}, {pipeline_mode = #tpu.pipeline_mode<synchronous>, transform_indices = @transform_7, window_bounds = array<i64: 1, 32>}, {pipeline_mode = #tpu.pipeline_mode<synchronous>, transform_indices = @transform_8, window_bounds = array<i64: 1, 32>}, {pipeline_mode = #tpu.pipeline_mode<synchronous>, transform_indices = @transform_9, window_bounds = array<i64: 1, 32>}, {pipeline_mode = #tpu.pipeline_mode<synchronous>, transform_indices = @transform_10, window_bounds = array<i64: 1, 32>}, {transform_indices = @transform_11, window_bounds = array<i64: 1, 8, 32>}]} {
    %c0 = arith.constant 0 : index
    %c0_0 = arith.constant 0 : index
    %c0_1 = arith.constant 0 : index
    %0 = vector.load %arg1[%c0, %c0_0, %c0_1] : memref<1x8x32xf32, #tpu.memory_space<vmem>>, vector<1x8x32xf32>
    %1 = vector.shape_cast %0 : vector<1x8x32xf32> to vector<8x32xf32>
    %2 = arith.truncf %1 : vector<8x32xf32> to vector<8x32xbf16>
    %c0_2 = arith.constant 0 : index
    %c0_3 = arith.constant 0 : index
    %3 = vector.load %arg2[%c0_2, %c0_3] : memref<32x96xbf16, #tpu.memory_space<vmem>>, vector<32x96xbf16>
    %cst = arith.constant dense<0.000000e+00> : vector<8x96xf32>
    %4 = tpu.matmul %2, %3, %cst {dimension_numbers = #tpu.dot_dimension_numbers<[1], [0], [0], [1], [0, 0, 1, 1], [], []>} : vector<8x32xbf16>, vector<32x96xbf16>, vector<8x96xf32> -> vector<8x96xf32>
    %5 = vector.extract_strided_slice %4 {offsets = [0, 0], sizes = [8, 8], strides = [1, 1]} : vector<8x96xf32> to vector<8x8xf32>
    %6 = arith.truncf %5 : vector<8x8xf32> to vector<8x8xbf16>
    %7 = vector.extract_strided_slice %4 {offsets = [0, 32], sizes = [8, 8], strides = [1, 1]} : vector<8x96xf32> to vector<8x8xf32>
    %8 = arith.truncf %7 : vector<8x8xf32> to vector<8x8xbf16>
    %9 = vector.extract_strided_slice %4 {offsets = [0, 64], sizes = [8, 8], strides = [1, 1]} : vector<8x96xf32> to vector<8x8xf32>
    %10 = arith.truncf %9 : vector<8x8xf32> to vector<8x8xbf16>
    %11 = tpu.transpose %8, [1, 0] : vector<8x8xbf16> -> vector<8x8xbf16>
    %cst_4 = arith.constant dense<0.000000e+00> : vector<8x8xf32>
    %12 = tpu.matmul %6, %11, %cst_4 {dimension_numbers = #tpu.dot_dimension_numbers<[1], [0], [0], [1], [0, 0, 1, 1], [], []>} : vector<8x8xbf16>, vector<8x8xbf16>, vector<8x8xf32> -> vector<8x8xf32>
    %cst_5 = arith.constant dense<0xFF800000> : vector<8xf32>
    %13 = vector.multi_reduction <maximumf>, %12, %cst_5 [1] : vector<8x8xf32> to vector<8xf32>
    %14 = vector.shape_cast %13 : vector<8xf32> to vector<8x1xf32>
    %15 = vector.broadcast %14 : vector<8x1xf32> to vector<8x8xf32>
    %16 = arith.subf %12, %15 : vector<8x8xf32>
    %17 = math.exp %16 : vector<8x8xf32>
    %cst_6 = arith.constant dense<0.000000e+00> : vector<8xf32>
    %18 = vector.multi_reduction <add>, %17, %cst_6 [1] : vector<8x8xf32> to vector<8xf32>
    %19 = vector.shape_cast %18 : vector<8xf32> to vector<8x1xf32>
    %20 = vector.broadcast %19 : vector<8x1xf32> to vector<8x8xf32>
    %21 = arith.divf %17, %20 : vector<8x8xf32>
    %22 = arith.truncf %21 : vector<8x8xf32> to vector<8x8xbf16>
    %cst_7 = arith.constant dense<0.000000e+00> : vector<8x8xf32>
    %23 = tpu.matmul %22, %10, %cst_7 {dimension_numbers = #tpu.dot_dimension_numbers<[1], [0], [0], [1], [0, 0, 1, 1], [], []>} : vector<8x8xbf16>, vector<8x8xbf16>, vector<8x8xf32> -> vector<8x8xf32>
    %24 = vector.extract_strided_slice %4 {offsets = [0, 8], sizes = [8, 8], strides = [1, 1]} : vector<8x96xf32> to vector<8x8xf32>
    %25 = arith.truncf %24 : vector<8x8xf32> to vector<8x8xbf16>
    %26 = vector.extract_strided_slice %4 {offsets = [0, 40], sizes = [8, 8], strides = [1, 1]} : vector<8x96xf32> to vector<8x8xf32>
    %27 = arith.truncf %26 : vector<8x8xf32> to vector<8x8xbf16>
    %28 = vector.extract_strided_slice %4 {offsets = [0, 72], sizes = [8, 8], strides = [1, 1]} : vector<8x96xf32> to vector<8x8xf32>
    %29 = arith.truncf %28 : vector<8x8xf32> to vector<8x8xbf16>
    %30 = tpu.transpose %27, [1, 0] : vector<8x8xbf16> -> vector<8x8xbf16>
    %cst_8 = arith.constant dense<0.000000e+00> : vector<8x8xf32>
    %31 = tpu.matmul %25, %30, %cst_8 {dimension_numbers = #tpu.dot_dimension_numbers<[1], [0], [0], [1], [0, 0, 1, 1], [], []>} : vector<8x8xbf16>, vector<8x8xbf16>, vector<8x8xf32> -> vector<8x8xf32>
    %cst_9 = arith.constant dense<0xFF800000> : vector<8xf32>
    %32 = vector.multi_reduction <maximumf>, %31, %cst_9 [1] : vector<8x8xf32> to vector<8xf32>
    %33 = vector.shape_cast %32 : vector<8xf32> to vector<8x1xf32>
    %34 = vector.broadcast %33 : vector<8x1xf32> to vector<8x8xf32>
    %35 = arith.subf %31, %34 : vector<8x8xf32>
    %36 = math.exp %35 : vector<8x8xf32>
    %cst_10 = arith.constant dense<0.000000e+00> : vector<8xf32>
    %37 = vector.multi_reduction <add>, %36, %cst_10 [1] : vector<8x8xf32> to vector<8xf32>
    %38 = vector.shape_cast %37 : vector<8xf32> to vector<8x1xf32>
    %39 = vector.broadcast %38 : vector<8x1xf32> to vector<8x8xf32>
    %40 = arith.divf %36, %39 : vector<8x8xf32>
    %41 = arith.truncf %40 : vector<8x8xf32> to vector<8x8xbf16>
    %cst_11 = arith.constant dense<0.000000e+00> : vector<8x8xf32>
    %42 = tpu.matmul %41, %29, %cst_11 {dimension_numbers = #tpu.dot_dimension_numbers<[1], [0], [0], [1], [0, 0, 1, 1], [], []>} : vector<8x8xbf16>, vector<8x8xbf16>, vector<8x8xf32> -> vector<8x8xf32>
    %43 = vector.extract_strided_slice %4 {offsets = [0, 16], sizes = [8, 8], strides = [1, 1]} : vector<8x96xf32> to vector<8x8xf32>
    %44 = arith.truncf %43 : vector<8x8xf32> to vector<8x8xbf16>
    %45 = vector.extract_strided_slice %4 {offsets = [0, 48], sizes = [8, 8], strides = [1, 1]} : vector<8x96xf32> to vector<8x8xf32>
    %46 = arith.truncf %45 : vector<8x8xf32> to vector<8x8xbf16>
    %47 = vector.extract_strided_slice %4 {offsets = [0, 80], sizes = [8, 8], strides = [1, 1]} : vector<8x96xf32> to vector<8x8xf32>
    %48 = arith.truncf %47 : vector<8x8xf32> to vector<8x8xbf16>
    %49 = tpu.transpose %46, [1, 0] : vector<8x8xbf16> -> vector<8x8xbf16>
    %cst_12 = arith.constant dense<0.000000e+00> : vector<8x8xf32>
    %50 = tpu.matmul %44, %49, %cst_12 {dimension_numbers = #tpu.dot_dimension_numbers<[1], [0], [0], [1], [0, 0, 1, 1], [], []>} : vector<8x8xbf16>, vector<8x8xbf16>, vector<8x8xf32> -> vector<8x8xf32>
    %cst_13 = arith.constant dense<0xFF800000> : vector<8xf32>
    %51 = vector.multi_reduction <maximumf>, %50, %cst_13 [1] : vector<8x8xf32> to vector<8xf32>
    %52 = vector.shape_cast %51 : vector<8xf32> to vector<8x1xf32>
    %53 = vector.broadcast %52 : vector<8x1xf32> to vector<8x8xf32>
    %54 = arith.subf %50, %53 : vector<8x8xf32>
    %55 = math.exp %54 : vector<8x8xf32>
    %cst_14 = arith.constant dense<0.000000e+00> : vector<8xf32>
    %56 = vector.multi_reduction <add>, %55, %cst_14 [1] : vector<8x8xf32> to vector<8xf32>
    %57 = vector.shape_cast %56 : vector<8xf32> to vector<8x1xf32>
    %58 = vector.broadcast %57 : vector<8x1xf32> to vector<8x8xf32>
    %59 = arith.divf %55, %58 : vector<8x8xf32>
    %60 = arith.truncf %59 : vector<8x8xf32> to vector<8x8xbf16>
    %cst_15 = arith.constant dense<0.000000e+00> : vector<8x8xf32>
    %61 = tpu.matmul %60, %48, %cst_15 {dimension_numbers = #tpu.dot_dimension_numbers<[1], [0], [0], [1], [0, 0, 1, 1], [], []>} : vector<8x8xbf16>, vector<8x8xbf16>, vector<8x8xf32> -> vector<8x8xf32>
    %62 = vector.extract_strided_slice %4 {offsets = [0, 24], sizes = [8, 8], strides = [1, 1]} : vector<8x96xf32> to vector<8x8xf32>
    %63 = arith.truncf %62 : vector<8x8xf32> to vector<8x8xbf16>
    %64 = vector.extract_strided_slice %4 {offsets = [0, 56], sizes = [8, 8], strides = [1, 1]} : vector<8x96xf32> to vector<8x8xf32>
    %65 = arith.truncf %64 : vector<8x8xf32> to vector<8x8xbf16>
    %66 = vector.extract_strided_slice %4 {offsets = [0, 88], sizes = [8, 8], strides = [1, 1]} : vector<8x96xf32> to vector<8x8xf32>
    %67 = arith.truncf %66 : vector<8x8xf32> to vector<8x8xbf16>
    %68 = tpu.transpose %65, [1, 0] : vector<8x8xbf16> -> vector<8x8xbf16>
    %cst_16 = arith.constant dense<0.000000e+00> : vector<8x8xf32>
    %69 = tpu.matmul %63, %68, %cst_16 {dimension_numbers = #tpu.dot_dimension_numbers<[1], [0], [0], [1], [0, 0, 1, 1], [], []>} : vector<8x8xbf16>, vector<8x8xbf16>, vector<8x8xf32> -> vector<8x8xf32>
    %cst_17 = arith.constant dense<0xFF800000> : vector<8xf32>
    %70 = vector.multi_reduction <maximumf>, %69, %cst_17 [1] : vector<8x8xf32> to vector<8xf32>
    %71 = vector.shape_cast %70 : vector<8xf32> to vector<8x1xf32>
    %72 = vector.broadcast %71 : vector<8x1xf32> to vector<8x8xf32>
    %73 = arith.subf %69, %72 : vector<8x8xf32>
    %74 = math.exp %73 : vector<8x8xf32>
    %cst_18 = arith.constant dense<0.000000e+00> : vector<8xf32>
    %75 = vector.multi_reduction <add>, %74, %cst_18 [1] : vector<8x8xf32> to vector<8xf32>
    %76 = vector.shape_cast %75 : vector<8xf32> to vector<8x1xf32>
    %77 = vector.broadcast %76 : vector<8x1xf32> to vector<8x8xf32>
    %78 = arith.divf %74, %77 : vector<8x8xf32>
    %79 = arith.truncf %78 : vector<8x8xf32> to vector<8x8xbf16>
    %cst_19 = arith.constant dense<0.000000e+00> : vector<8x8xf32>
    %80 = tpu.matmul %79, %67, %cst_19 {dimension_numbers = #tpu.dot_dimension_numbers<[1], [0], [0], [1], [0, 0, 1, 1], [], []>} : vector<8x8xbf16>, vector<8x8xbf16>, vector<8x8xf32> -> vector<8x8xf32>
    %81 = tpu.concatenate %23, %42, %61, %80 in 1 : vector<8x8xf32>, vector<8x8xf32>, vector<8x8xf32>, vector<8x8xf32> -> vector<8x32xf32>
    %82 = arith.truncf %81 : vector<8x32xf32> to vector<8x32xbf16>
    %c0_20 = arith.constant 0 : index
    %c0_21 = arith.constant 0 : index
    %83 = vector.load %arg3[%c0_20, %c0_21] : memref<32x32xbf16, #tpu.memory_space<vmem>>, vector<32x32xbf16>
    %cst_22 = arith.constant dense<0.000000e+00> : vector<8x32xf32>
    %84 = tpu.matmul %82, %83, %cst_22 {dimension_numbers = #tpu.dot_dimension_numbers<[1], [0], [0], [1], [0, 0, 1, 1], [], []>} : vector<8x32xbf16>, vector<32x32xbf16>, vector<8x32xf32> -> vector<8x32xf32>
    %85 = arith.addf %1, %84 : vector<8x32xf32>
    %c0_23 = arith.constant 0 : index
    %c0_24 = arith.constant 0 : index
    %86 = vector.load %arg8[%c0_23, %c0_24] : memref<1x32xf32, #tpu.memory_space<vmem>>, vector<1x32xf32>
    %c0_25 = arith.constant 0 : index
    %c0_26 = arith.constant 0 : index
    %87 = vector.load %arg9[%c0_25, %c0_26] : memref<1x32xf32, #tpu.memory_space<vmem>>, vector<1x32xf32>
    %cst_27 = arith.constant dense<0.000000e+00> : vector<8xf32>
    %88 = vector.multi_reduction <add>, %85, %cst_27 [1] : vector<8x32xf32> to vector<8xf32>
    %89 = vector.shape_cast %88 : vector<8xf32> to vector<8x1xf32>
    %cst_28 = arith.constant 3.200000e+01 : f32
    %90 = vector.broadcast %cst_28 : f32 to vector<8x1xf32>
    %91 = arith.divf %89, %90 : vector<8x1xf32>
    %92 = vector.broadcast %91 : vector<8x1xf32> to vector<8x32xf32>
    %93 = arith.subf %85, %92 : vector<8x32xf32>
    %94 = arith.mulf %93, %93 : vector<8x32xf32>
    %cst_29 = arith.constant dense<0.000000e+00> : vector<8xf32>
    %95 = vector.multi_reduction <add>, %94, %cst_29 [1] : vector<8x32xf32> to vector<8xf32>
    %96 = vector.shape_cast %95 : vector<8xf32> to vector<8x1xf32>
    %cst_30 = arith.constant 0.0322580636 : f32
    %97 = vector.broadcast %cst_30 : f32 to vector<8x1xf32>
    %98 = arith.mulf %96, %97 : vector<8x1xf32>
    %99 = math.sqrt %98 : vector<8x1xf32>
    %cst_31 = arith.constant 9.99999997E-7 : f32
    %100 = vector.broadcast %cst_31 : f32 to vector<8x1xf32>
    %101 = arith.addf %99, %100 : vector<8x1xf32>
    %cst_32 = arith.constant 1.000000e+00 : f32
    %102 = vector.broadcast %cst_32 : f32 to vector<8x1xf32>
    %103 = arith.divf %102, %101 : vector<8x1xf32>
    %104 = vector.broadcast %103 : vector<8x1xf32> to vector<8x32xf32>
    %105 = arith.mulf %93, %104 : vector<8x32xf32>
    %106 = vector.broadcast %86 : vector<1x32xf32> to vector<8x32xf32>
    %107 = arith.mulf %106, %105 : vector<8x32xf32>
    %108 = vector.broadcast %87 : vector<1x32xf32> to vector<8x32xf32>
    %109 = arith.addf %107, %108 : vector<8x32xf32>
    %110 = arith.truncf %109 : vector<8x32xf32> to vector<8x32xbf16>
    %c0_33 = arith.constant 0 : index
    %c0_34 = arith.constant 0 : index
    %111 = vector.load %arg4[%c0_33, %c0_34] : memref<32x64xbf16, #tpu.memory_space<vmem>>, vector<32x64xbf16>
    %cst_35 = arith.constant dense<0.000000e+00> : vector<8x64xf32>
    %112 = tpu.matmul %110, %111, %cst_35 {dimension_numbers = #tpu.dot_dimension_numbers<[1], [0], [0], [1], [0, 0, 1, 1], [], []>} : vector<8x32xbf16>, vector<32x64xbf16>, vector<8x64xf32> -> vector<8x64xf32>
    %c0_36 = arith.constant 0 : index
    %c0_37 = arith.constant 0 : index
    %113 = vector.load %arg5[%c0_36, %c0_37] : memref<1x64xf32, #tpu.memory_space<vmem>>, vector<1x64xf32>
    %114 = vector.broadcast %113 : vector<1x64xf32> to vector<8x64xf32>
    %115 = arith.addf %112, %114 : vector<8x64xf32>
    %cst_38 = arith.constant 0.000000e+00 : f32
    %116 = vector.broadcast %cst_38 : f32 to vector<8x64xf32>
    %117 = arith.maximumf %115, %116 : vector<8x64xf32>
    %118 = arith.truncf %117 : vector<8x64xf32> to vector<8x64xbf16>
    %c0_39 = arith.constant 0 : index
    %c0_40 = arith.constant 0 : index
    %119 = vector.load %arg6[%c0_39, %c0_40] : memref<64x32xbf16, #tpu.memory_space<vmem>>, vector<64x32xbf16>
    %cst_41 = arith.constant dense<0.000000e+00> : vector<8x32xf32>
    %120 = tpu.matmul %118, %119, %cst_41 {dimension_numbers = #tpu.dot_dimension_numbers<[1], [0], [0], [1], [0, 0, 1, 1], [], []>} : vector<8x64xbf16>, vector<64x32xbf16>, vector<8x32xf32> -> vector<8x32xf32>
    %c0_42 = arith.constant 0 : index
    %c0_43 = arith.constant 0 : index
    %121 = vector.load %arg7[%c0_42, %c0_43] : memref<1x32xf32, #tpu.memory_space<vmem>>, vector<1x32xf32>
    %122 = vector.broadcast %121 : vector<1x32xf32> to vector<8x32xf32>
    %123 = arith.addf %120, %122 : vector<8x32xf32>
    %124 = arith.addf %109, %123 : vector<8x32xf32>
    %c0_44 = arith.constant 0 : index
    %c0_45 = arith.constant 0 : index
    %125 = vector.load %arg10[%c0_44, %c0_45] : memref<1x32xf32, #tpu.memory_space<vmem>>, vector<1x32xf32>
    %c0_46 = arith.constant 0 : index
    %c0_47 = arith.constant 0 : index
    %126 = vector.load %arg11[%c0_46, %c0_47] : memref<1x32xf32, #tpu.memory_space<vmem>>, vector<1x32xf32>
    %cst_48 = arith.constant dense<0.000000e+00> : vector<8xf32>
    %127 = vector.multi_reduction <add>, %124, %cst_48 [1] : vector<8x32xf32> to vector<8xf32>
    %128 = vector.shape_cast %127 : vector<8xf32> to vector<8x1xf32>
    %cst_49 = arith.constant 3.200000e+01 : f32
    %129 = vector.broadcast %cst_49 : f32 to vector<8x1xf32>
    %130 = arith.divf %128, %129 : vector<8x1xf32>
    %131 = vector.broadcast %130 : vector<8x1xf32> to vector<8x32xf32>
    %132 = arith.subf %124, %131 : vector<8x32xf32>
    %133 = arith.mulf %132, %132 : vector<8x32xf32>
    %cst_50 = arith.constant dense<0.000000e+00> : vector<8xf32>
    %134 = vector.multi_reduction <add>, %133, %cst_50 [1] : vector<8x32xf32> to vector<8xf32>
    %135 = vector.shape_cast %134 : vector<8xf32> to vector<8x1xf32>
    %cst_51 = arith.constant 0.0322580636 : f32
    %136 = vector.broadcast %cst_51 : f32 to vector<8x1xf32>
    %137 = arith.mulf %135, %136 : vector<8x1xf32>
    %138 = math.sqrt %137 : vector<8x1xf32>
    %cst_52 = arith.constant 9.99999997E-7 : f32
    %139 = vector.broadcast %cst_52 : f32 to vector<8x1xf32>
    %140 = arith.addf %138, %139 : vector<8x1xf32>
    %cst_53 = arith.constant 1.000000e+00 : f32
    %141 = vector.broadcast %cst_53 : f32 to vector<8x1xf32>
    %142 = arith.divf %141, %140 : vector<8x1xf32>
    %143 = vector.broadcast %142 : vector<8x1xf32> to vector<8x32xf32>
    %144 = arith.mulf %132, %143 : vector<8x32xf32>
    %145 = vector.broadcast %125 : vector<1x32xf32> to vector<8x32xf32>
    %146 = arith.mulf %145, %144 : vector<8x32xf32>
    %147 = vector.broadcast %126 : vector<1x32xf32> to vector<8x32xf32>
    %148 = arith.addf %146, %147 : vector<8x32xf32>
    %c0_54 = arith.constant 0 : index
    %c0_55 = arith.constant 0 : index
    %c0_56 = arith.constant 0 : index
    %149 = vector.load %arg12[%c0_54, %c0_55, %c0_56] : memref<1x8x32xf32, #tpu.memory_space<vmem>>, vector<1x8x32xf32>
    %150 = vector.shape_cast %149 : vector<1x8x32xf32> to vector<8x32xf32>
    %151 = vector.shape_cast %148 : vector<8x32xf32> to vector<1x8x32xf32>
    tpu.vector_store %arg12[%c0_54, %c0_55, %c0_56], %151 {strides = array<i32>} : memref<1x8x32xf32, #tpu.memory_space<vmem>>, vector<1x8x32xf32>,
    return
  }
  func.func @transform_0(%arg0: i32) -> (i32, i32, i32) {
    %c0_i32 = arith.constant 0 : i32
    %c0_i32_0 = arith.constant 0 : i32
    %c0_i32_1 = arith.constant 0 : i32
    return %arg0, %c0_i32, %c0_i32_0 : i32, i32, i32
  }
  func.func @transform_1(%arg0: i32) -> (i32, i32) {
    %c0_i32 = arith.constant 0 : i32
    %c0_i32_0 = arith.constant 0 : i32
    %c0_i32_1 = arith.constant 0 : i32
    return %c0_i32, %c0_i32_0 : i32, i32
  }
  func.func @transform_2(%arg0: i32) -> (i32, i32) {
    %c0_i32 = arith.constant 0 : i32
    %c0_i32_0 = arith.constant 0 : i32
    %c0_i32_1 = arith.constant 0 : i32
    return %c0_i32, %c0_i32_0 : i32, i32
  }
  func.func @transform_3(%arg0: i32) -> (i32, i32) {
    %c0_i32 = arith.constant 0 : i32
    %c0_i32_0 = arith.constant 0 : i32
    %c0_i32_1 = arith.constant 0 : i32
    return %c0_i32, %c0_i32_0 : i32, i32
  }
  func.func @transform_4(%arg0: i32) -> (i32, i32) {
    %c0_i32 = arith.constant 0 : i32
    %c0_i32_0 = arith.constant 0 : i32
    %c0_i32_1 = arith.constant 0 : i32
    return %c0_i32, %c0_i32_0 : i32, i32
  }
  func.func @transform_5(%arg0: i32) -> (i32, i32) {
    %c0_i32 = arith.constant 0 : i32
    %c0_i32_0 = arith.constant 0 : i32
    %c0_i32_1 = arith.constant 0 : i32
    return %c0_i32, %c0_i32_0 : i32, i32
  }
  func.func @transform_6(%arg0: i32) -> (i32, i32) {
    %c0_i32 = arith.constant 0 : i32
    %c0_i32_0 = arith.constant 0 : i32
    %c0_i32_1 = arith.constant 0 : i32
    return %c0_i32, %c0_i32_0 : i32, i32
  }
  func.func @transform_7(%arg0: i32) -> (i32, i32) {
    %c0_i32 = arith.constant 0 : i32
    %c0_i32_0 = arith.constant 0 : i32
    %c0_i32_1 = arith.constant 0 : i32
    return %c0_i32, %c0_i32_0 : i32, i32
  }
  func.func @transform_8(%arg0: i32) -> (i32, i32) {
    %c0_i32 = arith.constant 0 : i32
    %c0_i32_0 = arith.constant 0 : i32
    %c0_i32_1 = arith.constant 0 : i32
    return %c0_i32, %c0_i32_0 : i32, i32
  }
  func.func @transform_9(%arg0: i32) -> (i32, i32) {
    %c0_i32 = arith.constant 0 : i32
    %c0_i32_0 = arith.constant 0 : i32
    %c0_i32_1 = arith.constant 0 : i32
    return %c0_i32, %c0_i32_0 : i32, i32
  }
  func.func @transform_10(%arg0: i32) -> (i32, i32) {
    %c0_i32 = arith.constant 0 : i32
    %c0_i32_0 = arith.constant 0 : i32
    %c0_i32_1 = arith.constant 0 : i32
    return %c0_i32, %c0_i32_0 : i32, i32
  }
  func.func @transform_11(%arg0: i32) -> (i32, i32, i32) {
    %c0_i32 = arith.constant 0 : i32
    %c0_i32_0 = arith.constant 0 : i32
    %c0_i32_1 = arith.constant 0 : i32
    return %arg0, %c0_i32, %c0_i32_0 : i32, i32, i32
  }
}

</mosaic_0001>

<bundles_post_ra>
// kernel: tpu_custom_call.1
= control target key start
LH: loop header
LB: loop body
LE: loop exit
PB: predicated region body
PF: predicated region fallthrough
CT: control target
= control target key end

     0   :  { %s3558_s0 = inlined_call_operand.hbm [shape: f32[2,8,32], index: 0, kind: input, shape index: {}]   ;;  %s3559_s1 = inlined_call_operand.hbm [shape: bf16[32,96], index: 1, kind: input, shape index: {}]   ;;  %s3560_s2 = inlined_call_operand.hbm [shape: bf16[32,32], index: 2, kind: input, shape index: {}]   ;;  %s3561_s3 = inlined_call_operand.hbm [shape: bf16[32,64], index: 3, kind: input, shape index: {}]   ;;  %s3562_s4 = inlined_call_operand.hbm [shape: f32[1,64], index: 4, kind: input, shape index: {}]   ;;  %s3563_s5 = inlined_call_operand.hbm [shape: bf16[64,32], index: 5, kind: input, shape index: {}]   ;;  %s3564_s6 = inlined_call_operand.hbm [shape: f32[1,32], index: 6, kind: input, shape index: {}]   ;;  %s3565_s7 = inlined_call_operand.hbm [shape: f32[1,32], index: 7, kind: input, shape index: {}]   ;;  %s3566_s8 = inlined_call_operand.hbm [shape: f32[1,32], index: 8, kind: input, shape index: {}]   ;;  %s3567_s9 = inlined_call_operand.hbm [shape: f32[1,32], index: 9, kind: input, shape index: {}]   ;;  %s3568_s10 = inlined_call_operand.hbm [shape: f32[1,32], index: 10, kind: input, shape index: {}]   ;;  %s3569_s11 = inlined_call_operand.hbm [shape: f32[2,8,32], index: 11, kind: output, shape index: {}]  }
   0x1   :  { %3576 = sst [smem:[#allocation29_spill]] %s3558_s0 }
   0x2   :  { %3577 = sst [smem:[#allocation30_spill]] %s3559_s1 }
   0x3   :  { %3578 = sst [smem:[#allocation31_spill]] %s3560_s2 }
   0x4   :  { %3579 = sst [smem:[#allocation32_spill]] %s3569_s11 }
   0x5   :  { %16 = vsyncpa [#allocation3], 0 }
   0x6   :  { %18 = vsyncpa [#allocation3 + $0x1], 0 }
   0x7   :  { %19 = vsyncpa [#allocation6], 0 }
   0x8   :  { %20 = vsyncpa [#allocation9], 0 }
   0x9   :  { %21 = vsyncpa [#allocation12], 0 }
   0xa   :  { %22 = vsyncpa [#allocation15], 0 }
   0xb   :  { %23 = vsyncpa [#allocation18], 0 }
   0xc   :  { %24 = vsyncpa [#allocation4], 0 }
   0xd   :  { %26 = vsyncpa [#allocation4 + $0x1], 0  ;;  %s2951_s17 = smov 0   ;;  %s2953_s18 = smov 0  }
   0xe   :  { %s2955_s19 = smov 0   ;;  %s2957_s20 = smov 0  }
   0xf LB: > { %s2865_s21 = smov [#allocation5]   ;;  %s2972_s23 = sadd.s32 4294967295, %s2863_s20   ;;  %s2863_s20 = sphi %s2957_s20, %s3612_s20   ;;  %s2859_s19 = sphi %s2955_s19, %s3611_s19   ;;  %s2855_s18 = sphi %s2953_s18, %s3610_s18   ;;  %s2851_s17 = sphi %s2951_s17, %s3609_s17  }
  0x10   : > { %s311_s22 = sshll.u32 %s2865_s21, 4  ;;  %p2091_p0 = scmp.ge.s32.totalorder %s2863_s20, 1  ;;  %s2977_s22 = int_to_ptr.vmem [resolvable:$true] %s311_s22 }
  0x11   : > { %p3573_p1 = scmp.eq.s32.totalorder %s2972_s23, 0  ;;  %p299_p2 = scmp.lt.s32.totalorder %s2863_s20, 3 }
  0x12   : > { %s2866_s25 = smov [#allocation8]   ;;  %s2867_s28 = smov [#allocation11]  }
  0x13   : > { %p2979_p3 = pnand %p2091_p0, %p299_p2  ;;  %s337_s26 = sshll.u32 %s2866_s25, 4  ;;  %s2992_s26 = int_to_ptr.vmem [resolvable:$true] %s337_s26 }
  0x14   : > { %s361_s29 = sshll.u32 %s2867_s28, 4  ;;  %s3583_s1 = sld [smem:[#allocation30_spill]]  ;;  %s2994_s29 = int_to_ptr.vmem [resolvable:$true] %s361_s29 }
  0x15   : > { %s3580_s24 = scalar_select %p2979_p3, 1, 0 }
  0x16   : > { %p2316_p5 = pneg %p2979_p3 }
  0x17   : > { %3581 = sst [smem:[#allocation28_spill]] %s3580_s24 }
  0x18   : > { %p2988_p6 = pnand %p2316_p5, %p3573_p1 }
  0x1a   : > { %s2467_s13 = scalar_lea.hbm %s3583_s1, 256  ;;  %p3004_p8 = pneg %p2988_p6 }
  0x1b   : > { %p2468_p7 = scmp.ne.s32.totalorder %s3583_s1, %s2467_s13  ;;  %p2474_p11 = scmp.lt.u32.totalorder %s2467_s13, %s3583_s1 }
  0x1d   : > { %p2470_p9 = pnand %p3004_p8, %p2468_p7 }
  0x1f   : > { %p2471_p10 = pneg %p2470_p9 }
  0x21   : > { %p2476_p12 = pnand %p2474_p11, %p2471_p10 }
  0x23   : > { %2479 = shalt.err (!%p2476_p12)
}
  0x24   : > { %s2480_s28 = scalar_lea.vmem %s2977_s22, 256  ;;  %p2488_p5 = scmp.lt.s32.totalorder %s2977_s22, %s2977_s22 }
  0x25   : > { %p2481_p13 = scmp.ne.s32.totalorder %s2977_s22, %s2480_s28  ;;  %p2489_p4 = scmp.lt.s32.totalorder %s2480_s28, %s2480_s28 }
  0x27   : > { %p2483_p0 = pnand %p2481_p13, %p3004_p8  ;;  %p2490_p7 = por %p2489_p4, %p2488_p5 }
  0x29   : > { %p2484_p2 = pneg %p2483_p0 }
  0x2b   : > { %p2491_p9 = pnand %p2490_p7, %p2484_p2 }
  0x2d   : > { %2494 = shalt.err (!%p2491_p9)
}
  0x2e   : > { %s2868_s30 = smov 64   ;;  %s2869_s12 = smov 4  }
  0x2f   : > { %2319 = dma.hbm_to_vmem [thread:$0]  (!%p2988_p6), %s3583_s1, 256, %s2977_s22, [#allocation6], %s2868_s30, %s2868_s30, %s2869_s12  }
  0x30   : > { %s2495_s25 = scalar_lea.hbm %s3561_s3, 256 }
  0x31   : > { %p2496_p4 = scmp.ne.s32.totalorder %s3561_s3, %s2495_s25  ;;  %p2502_p12 = scmp.lt.u32.totalorder %s2495_s25, %s3561_s3 }
  0x33   : > { %p2498_p10 = pnand %p2496_p4, %p3004_p8 }
  0x35   : > { %p2499_p11 = pneg %p2498_p10 }
  0x37   : > { %p2504_p13 = pnand %p2502_p12, %p2499_p11 }
  0x39   : > { %2507 = shalt.err (!%p2504_p13)
}
  0x3a   : > { %s2508_s22 = scalar_lea.vmem %s2992_s26, 256  ;;  %p2516_p7 = scmp.lt.s32.totalorder %s2992_s26, %s2992_s26 }
  0x3b   : > { %p2509_p0 = scmp.ne.s32.totalorder %s2992_s26, %s2508_s22  ;;  %p2517_p9 = scmp.lt.s32.totalorder %s2508_s22, %s2508_s22 }
  0x3d   : > { %p2511_p2 = pnand %p2509_p0, %p3004_p8  ;;  %p2518_p4 = por %p2517_p9, %p2516_p7 }
  0x3f   : > { %p2512_p5 = pneg %p2511_p2 }
  0x41   : > { %p2519_p10 = pnand %p2518_p4, %p2512_p5 }
  0x43   : > { %2522 = shalt.err (!%p2519_p10)
}
  0x44   : > { %2325 = dma.hbm_to_vmem [thread:$0]  (!%p2988_p6), %s3561_s3, 256, %s2992_s26, [#allocation9], %s2868_s30, %s2868_s30, %s2869_s12  }
  0x45   : > { %s2523_s14 = scalar_lea.hbm %s3563_s5, 512 }
  0x46   : > { %p2524_p11 = scmp.ne.s32.totalorder %s3563_s5, %s2523_s14  ;;  %p2530_p0 = scmp.lt.u32.totalorder %s2523_s14, %s3563_s5 }
  0x48   : > { %p2526_p12 = pnand %p2524_p11, %p3004_p8 }
  0x4a   : > { %p2527_p13 = pneg %p2526_p12 }
  0x4c   : > { %p2532_p2 = pnand %p2530_p0, %p2527_p13 }
  0x4e   : > { %2535 = shalt.err (!%p2532_p2)
}
  0x4f   : > { %s2536_s26 = scalar_lea.vmem %s2994_s29, 512  ;;  %p2544_p4 = scmp.lt.s32.totalorder %s2994_s29, %s2994_s29 }
  0x50   : > { %p2537_p5 = scmp.ne.s32.totalorder %s2994_s29, %s2536_s26  ;;  %p2545_p10 = scmp.lt.s32.totalorder %s2536_s26, %s2536_s26 }
  0x52   : > { %p2539_p7 = pnand %p2537_p5, %p3004_p8  ;;  %p2546_p11 = por %p2545_p10, %p2544_p4 }
  0x54   : > { %p2540_p9 = pneg %p2539_p7 }
  0x56   : > { %p2547_p12 = pnand %p2546_p11, %p2540_p9 }
  0x58   : > { %2550 = shalt.err (!%p2547_p12)
}
  0x59   : > { %2331 = dma.hbm_to_vmem [thread:$0]  (!%p2988_p6), %s3563_s5, 512, %s2994_s29, [#allocation12], %s2868_s30, %s2868_s30, %s2869_s12  }
  0x5a   : > { %s2870_s11 = smov [#allocation14]   ;;  %s2871_s13 = smov [#allocation17]  }
  0x5b   : > { %s386_s24 = sshll.u32 %s2870_s11, 4  ;;  %s408_s14 = sshll.u32 %s2871_s13, 4  ;;  %s387_s24 = int_to_ptr.vmem [resolvable:$true] %s386_s24  ;;  %s409_s14 = int_to_ptr.vmem [resolvable:$true] %s408_s14 }
  0x5c   : > { %s2551_s25 = scalar_lea.hbm %s3565_s7, 16 }
  0x5d   : > { %p2552_p13 = scmp.ne.s32.totalorder %s3565_s7, %s2551_s25  ;;  %p2558_p5 = scmp.lt.u32.totalorder %s2551_s25, %s3565_s7 }
  0x5f   : > { %p2554_p0 = pnand %p2552_p13, %p3004_p8 }
  0x61   : > { %p2555_p2 = pneg %p2554_p0 }
  0x63   : > { %p2560_p7 = pnand %p2558_p5, %p2555_p2 }
  0x65   : > { %2563 = shalt.err (!%p2560_p7)
}
  0x66   : > { %s2564_s29 = scalar_lea.vmem %s387_s24, 16  ;;  %s2571_s0 = scalar_lea.vmem %s387_s24, 32 }
  0x67   : > { %p2565_p9 = scmp.ne.s32.totalorder %s387_s24, %s2564_s29  ;;  %p2572_p11 = scmp.lt.s32.totalorder %s387_s24, %s387_s24 }
  0x68   : > { %p2573_p12 = scmp.lt.s32.totalorder %s2571_s0, %s2564_s29 }
  0x69   : > { %p2567_p4 = pnand %p2565_p9, %p3004_p8 }
  0x6a   : > { %p2574_p1 = por %p2573_p12, %p2572_p11 }
  0x6b   : > { %p2568_p10 = pneg %p2567_p4 }
  0x6d   : > { %p2575_p3 = pnand %p2574_p1, %p2568_p10 }
  0x6f   : > { %2578 = shalt.err (!%p2575_p3)
}
  0x70   : > { %2337 = dma.hbm_to_vmem [thread:$0]  (!%p2988_p6), %s3565_s7, 16, %s387_s24, [#allocation15]  }
  0x71   : > { %s2579_s21 = scalar_lea.hbm %s3567_s9, 16 }
  0x72   : > { %p2580_p13 = scmp.ne.s32.totalorder %s3567_s9, %s2579_s21  ;;  %p2586_p3 = scmp.lt.u32.totalorder %s2579_s21, %s3567_s9 }
  0x74   : > { %p2582_p0 = pnand %p2580_p13, %p3004_p8 }
  0x76   : > { %p2583_p1 = pneg %p2582_p0 }
  0x78   : > { %p2588_p2 = pnand %p2586_p3, %p2583_p1 }
  0x7a   : > { %2591 = shalt.err (!%p2588_p2)
}
  0x7b   : > { %s2592_s29 = scalar_lea.vmem %s409_s14, 16  ;;  %s2599_s24 = scalar_lea.vmem %s409_s14, 32 }
  0x7c   : > { %p2593_p5 = scmp.ne.s32.totalorder %s409_s14, %s2592_s29  ;;  %p2600_p4 = scmp.lt.s32.totalorder %s409_s14, %s409_s14 }
  0x7d   : > { %p2601_p10 = scmp.lt.s32.totalorder %s2599_s24, %s2592_s29 }
  0x7e   : > { %p2595_p7 = pnand %p2593_p5, %p3004_p8 }
  0x7f   : > { %p2602_p11 = por %p2601_p10, %p2600_p4 }
  0x80   : > { %p2596_p9 = pneg %p2595_p7 }
  0x82   : > { %p2603_p12 = pnand %p2602_p11, %p2596_p9 }
  0x84   : > { %2606 = shalt.err (!%p2603_p12)
}
  0x85   : > { %2343 = dma.hbm_to_vmem [thread:$0]  (!%p2988_p6), %s3567_s9, 16, %s409_s14, [#allocation18]  }
  0x86   : > { %s2872_s13 = smov [#allocation7]   ;;  %s2873_s15 = smov [#allocation10]  }
  0x87   : > { %s324_s1 = sshll.u32 %s2872_s13, 4  ;;  %s351_s21 = sshll.u32 %s2873_s15, 4  ;;  %s325_s1 = int_to_ptr.vmem [resolvable:$true] %s324_s1  ;;  %s352_s21 = int_to_ptr.vmem [resolvable:$true] %s351_s21 }
  0x88   : > { %s3585_s2 = sld [smem:[#allocation31_spill]] }
  0x8e   : > { %s2607_s26 = scalar_lea.hbm %s3585_s2, 256 }
  0x8f   : > { %p2608_p13 = scmp.ne.s32.totalorder %s3585_s2, %s2607_s26  ;;  %p2614_p3 = scmp.lt.u32.totalorder %s2607_s26, %s3585_s2 }
  0x91   : > { %p2610_p0 = pnand %p2608_p13, %p3004_p8 }
  0x93   : > { %p2611_p1 = pneg %p2610_p0 }
  0x95   : > { %p2616_p2 = pnand %p2614_p3, %p2611_p1 }
  0x97   : > { %2619 = shalt.err (!%p2616_p2)
}
  0x98   : > { %s2620_s14 = scalar_lea.vmem %s325_s1, 256  ;;  %p2628_p4 = scmp.lt.s32.totalorder %s325_s1, %s325_s1 }
  0x99   : > { %p2621_p5 = scmp.ne.s32.totalorder %s325_s1, %s2620_s14  ;;  %p2629_p10 = scmp.lt.s32.totalorder %s2620_s14, %s2620_s14 }
  0x9b   : > { %p2623_p7 = pnand %p2621_p5, %p3004_p8  ;;  %p2630_p11 = por %p2629_p10, %p2628_p4 }
  0x9d   : > { %p2624_p9 = pneg %p2623_p7 }
  0x9f   : > { %p2631_p12 = pnand %p2630_p11, %p2624_p9 }
  0xa1   : > { %2634 = shalt.err (!%p2631_p12)
}
  0xa2   : > { %2322 = dma.hbm_to_vmem [thread:$0]  (!%p2988_p6), %s3585_s2, 256, %s325_s1, [#allocation6], %s2868_s30, %s2868_s30, %s2869_s12  }
  0xa3   : > { %s2635_s28 = scalar_lea.hbm %s3562_s4, 16 }
  0xa4   : > { %p2636_p13 = scmp.ne.s32.totalorder %s3562_s4, %s2635_s28  ;;  %p2642_p3 = scmp.lt.u32.totalorder %s2635_s28, %s3562_s4 }
  0xa6   : > { %p2638_p0 = pnand %p2636_p13, %p3004_p8 }
  0xa8   : > { %p2639_p1 = pneg %p2638_p0 }
  0xaa   : > { %p2644_p2 = pnand %p2642_p3, %p2639_p1 }
  0xac   : > { %2647 = shalt.err (!%p2644_p2)
}
  0xad   : > { %s2648_s0 = scalar_lea.vmem %s352_s21, 16  ;;  %s2655_s30 = scalar_lea.vmem %s352_s21, 32 }
  0xae   : > { %p2649_p5 = scmp.ne.s32.totalorder %s352_s21, %s2648_s0  ;;  %p2656_p4 = scmp.lt.s32.totalorder %s352_s21, %s352_s21 }
  0xaf   : > { %p2657_p10 = scmp.lt.s32.totalorder %s2655_s30, %s2648_s0 }
  0xb0   : > { %p2651_p7 = pnand %p2649_p5, %p3004_p8 }
  0xb1   : > { %p2658_p11 = por %p2657_p10, %p2656_p4 }
  0xb2   : > { %p2652_p9 = pneg %p2651_p7 }
  0xb4   : > { %p2659_p12 = pnand %p2658_p11, %p2652_p9 }
  0xb6   : > { %2662 = shalt.err (!%p2659_p12)
}
  0xb7   : > { %2328 = dma.hbm_to_vmem [thread:$0]  (!%p2988_p6), %s3562_s4, 16, %s352_s21, [#allocation9]  }
  0xb8   : > { %s2874_s14 = smov [#allocation13]   ;;  %s2875_s13 = smov [#allocation16]  }
  0xb9   : > { %s375_s11 = sshll.u32 %s2874_s14, 4  ;;  %s397_s15 = sshll.u32 %s2875_s13, 4  ;;  %s376_s11 = int_to_ptr.vmem [resolvable:$true] %s375_s11  ;;  %s398_s15 = int_to_ptr.vmem [resolvable:$true] %s397_s15 }
  0xba   : > { %s2663_s26 = scalar_lea.hbm %s3564_s6, 16 }
  0xbb   : > { %p2664_p13 = scmp.ne.s32.totalorder %s3564_s6, %s2663_s26  ;;  %p2670_p3 = scmp.lt.u32.totalorder %s2663_s26, %s3564_s6 }
  0xbd   : > { %p2666_p0 = pnand %p2664_p13, %p3004_p8 }
  0xbf   : > { %p2667_p1 = pneg %p2666_p0 }
  0xc1   : > { %p2672_p2 = pnand %p2670_p3, %p2667_p1 }
  0xc3   : > { %2675 = shalt.err (!%p2672_p2)
}
  0xc4   : > { %s2676_s21 = scalar_lea.vmem %s376_s11, 16  ;;  %s2683_s30 = scalar_lea.vmem %s376_s11, 32 }
  0xc5   : > { %p2677_p5 = scmp.ne.s32.totalorder %s376_s11, %s2676_s21  ;;  %p2684_p4 = scmp.lt.s32.totalorder %s376_s11, %s376_s11 }
  0xc6   : > { %p2685_p10 = scmp.lt.s32.totalorder %s2683_s30, %s2676_s21 }
  0xc7   : > { %p2679_p7 = pnand %p2677_p5, %p3004_p8 }
  0xc8   : > { %p2686_p11 = por %p2685_p10, %p2684_p4 }
  0xc9   : > { %p2680_p9 = pneg %p2679_p7 }
  0xcb   : > { %p2687_p12 = pnand %p2686_p11, %p2680_p9 }
  0xcd   : > { %2690 = shalt.err (!%p2687_p12)
}
  0xce   : > { %2334 = dma.hbm_to_vmem [thread:$0]  (!%p2988_p6), %s3564_s6, 16, %s376_s11, [#allocation12]  }
  0xcf   : > { %s2691_s25 = scalar_lea.hbm %s3566_s8, 16 }
  0xd0   : > { %p2692_p13 = scmp.ne.s32.totalorder %s3566_s8, %s2691_s25  ;;  %p2698_p3 = scmp.lt.u32.totalorder %s2691_s25, %s3566_s8 }
  0xd2   : > { %p2694_p0 = pnand %p2692_p13, %p3004_p8 }
  0xd4   : > { %p2695_p1 = pneg %p2694_p0 }
  0xd6   : > { %p2700_p2 = pnand %p2698_p3, %p2695_p1 }
  0xd8   : > { %2703 = shalt.err (!%p2700_p2)
}
  0xd9   : > { %s2704_s24 = scalar_lea.vmem %s398_s15, 16  ;;  %s2711_s11 = scalar_lea.vmem %s398_s15, 32 }
  0xda   : > { %p2705_p5 = scmp.ne.s32.totalorder %s398_s15, %s2704_s24  ;;  %p2712_p4 = scmp.lt.s32.totalorder %s398_s15, %s398_s15 }
  0xdb   : > { %p2713_p10 = scmp.lt.s32.totalorder %s2711_s11, %s2704_s24 }
  0xdc   : > { %p2707_p7 = pnand %p2705_p5, %p3004_p8 }
  0xdd   : > { %p2714_p11 = por %p2713_p10, %p2712_p4 }
  0xde   : > { %p2708_p9 = pneg %p2707_p7 }
  0xe0   : > { %p2715_p12 = pnand %p2714_p11, %p2708_p9 }
  0xe2   : > { %2718 = shalt.err (!%p2715_p12)
}
  0xe3   : > { %2340 = dma.hbm_to_vmem [thread:$0]  (!%p2988_p6), %s3566_s8, 16, %s398_s15, [#allocation15]  }
  0xe4   : > { %s2876_s30 = smov [#allocation19]   ;;  %s2719_s13 = scalar_lea.hbm %s3568_s10, 16 }
  0xe5   : > { %s419_s12 = sshll.u32 %s2876_s30, 4  ;;  %p2720_p13 = scmp.ne.s32.totalorder %s3568_s10, %s2719_s13  ;;  %s420_s12 = int_to_ptr.vmem [resolvable:$true] %s419_s12 }
  0xe6   : > { %p2726_p3 = scmp.lt.u32.totalorder %s2719_s13, %s3568_s10 }
  0xe7   : > { %p2722_p0 = pnand %p2720_p13, %p3004_p8 }
  0xe9   : > { %p2723_p1 = pneg %p2722_p0 }
  0xeb   : > { %p2728_p2 = pnand %p2726_p3, %p2723_p1 }
  0xed   : > { %2731 = shalt.err (!%p2728_p2)
}
  0xee   : > { %s2732_s15 = scalar_lea.vmem %s420_s12, 16  ;;  %s2739_s29 = scalar_lea.vmem %s420_s12, 32 }
  0xef   : > { %p2733_p5 = scmp.ne.s32.totalorder %s420_s12, %s2732_s15  ;;  %p2740_p4 = scmp.lt.s32.totalorder %s420_s12, %s420_s12 }
  0xf0   : > { %p2741_p10 = scmp.lt.s32.totalorder %s2739_s29, %s2732_s15 }
  0xf1   : > { %p2735_p7 = pnand %p2733_p5, %p3004_p8 }
  0xf2   : > { %p2742_p11 = por %p2741_p10, %p2740_p4 }
  0xf3   : > { %p2736_p9 = pneg %p2735_p7 }
  0xf5   : > { %p2743_p12 = pnand %p2742_p11, %p2736_p9 }
  0xf7   : > { %2746 = shalt.err (!%p2743_p12)
}
  0xf8   : > { %2346 = dma.hbm_to_vmem [thread:$0]  (!%p2988_p6), %s3568_s10, 16, %s420_s12, [#allocation18]  }
  0xf9   : > { %s2090_s16 = sadd.s32 4294967294, %s2863_s20   ;;  %s3211_s27 = sadd.s32 1, %s2863_s20  }
  0xfa   : > { %s36_s0 = ssub.s32 %s2863_s20, %s3211_s27  ;;  %s39_s21 = sadd.s32 1, %s2859_s19 }
  0xfb   : > { %p37_p8 = scmp.eq.s32.totalorder %s36_s0, 0  ;;  %p46_p13 = scmp.ne.s32.totalorder %s2859_s19, %s2855_s18 }
  0xfc   : > { %p47_p0 = scmp.eq.s32.totalorder %s2863_s20, 0  ;;  %p52_p1 = scmp.ne.s32.totalorder %s2855_s18, %s2851_s17 }
  0xfd   : > { %s3222_s30 = scalar_select %p37_p8, %s2859_s19, %s39_s21  }
  0xfe   : > { %p3224_p3 = por %p47_p0, %p46_p13  ;;  %p3587_p2 = scmp.eq.s32.totalorder %s2972_s23, 0 }
  0xff   : > { %p286_p5 = scmp.eq.s32.totalorder %s2972_s23, 1  ;;  %p292_p7 = scmp.eq.s32.totalorder %s2090_s16, 1 }
 0x100   : > { %p3230_p6 = por %p3587_p2, %p52_p1  ;;  %p2365_p9 = scmp.lt.s32.totalorder %s2863_s20, 2 }
 0x101   : > { %s430_s14 = sand.u32 1, %s2859_s19   ;;  %p3237_p4 = por %p286_p5, %p46_p13 }
 0x102   : > { %p3241_p10 = por %p292_p7, %p52_p1  ;;  %s2103_s28 = sshll.u32 %s430_s14, 3 }
 0x103   : > { %s3589_s13 = scalar_select %p3237_p4, 1, 0 }
 0x104   : > { %s3590_s25 = scalar_select %p3241_p10, 1, 0 }
 0x105   : > { %s2104_s26 = sshll.u32 %s2863_s20, 7  ;;  %s3591_s29 = sld [smem:[#allocation29_spill]] }
 0x106   : > { %s434_s11 = scalar_lea.vmem [#allocation2], %s2103_s28  ;;  %p3255_p11 = pnand %p2365_p9, %p3224_p3 }
 0x107   : > { %s441_s16 = sshll.u32 %s434_s11, 4  ;;  %s431_s21 = scalar_lea.sflag [#allocation3], %s430_s14  ;;  %s3251_s16 = int_to_ptr.vmem [resolvable:$true] %s441_s16 }
 0x108   : > { %p2749_p8 = pneg %p3255_p11 }
 0x10b   : > { %s3249_s24 = scalar_lea.hbm %s3591_s29, %s2104_s26  ;;  %s2752_s22 = scalar_lea.hbm %s3591_s29, 256 }
 0x10c   : > { %s2747_s2 = scalar_lea.hbm %s3249_s24, 128  ;;  %p2753_p1 = scmp.lt.u32.totalorder %s3249_s24, %s3591_s29 }
 0x10d   : > { %p2748_p12 = scmp.ne.s32.totalorder %s3249_s24, %s2747_s2  ;;  %p2754_p3 = scmp.lt.u32.totalorder %s2752_s22, %s2747_s2 }
 0x10e   : > { %p2756_p5 = scmp.lt.u32.totalorder %s2747_s2, %s3249_s24 }
 0x10f   : > { %p2750_p13 = pnand %p2749_p8, %p2748_p12  ;;  %p2755_p2 = por %p2754_p3, %p2753_p1 }
 0x111   : > { %p2751_p0 = pneg %p2750_p13  ;;  %p2757_p7 = por %p2756_p5, %p2755_p2 }
 0x113   : > { %p2758_p9 = pnand %p2757_p7, %p2751_p0 }
 0x115   : > { %2761 = shalt.err (!%p2758_p9)
}
 0x116   : > { %s2762_s14 = scalar_lea.vmem %s3251_s16, 128  ;;  %s2877_s11 = smov [#allocation2]  }
 0x117   : > { %p2763_p12 = scmp.ne.s32.totalorder %s3251_s16, %s2762_s14  ;;  %s2767_s28 = sshll.u32 %s2877_s11, 4  ;;  %s2768_s28 = int_to_ptr.vmem [resolvable:$false] %s2767_s28 }
 0x118   : > { %s2769_s26 = scalar_lea.vmem %s2768_s28, 256  ;;  %p2770_p4 = scmp.lt.s32.totalorder %s3251_s16, %s2768_s28 }
 0x119   : > { %p2765_p13 = pnand %p2763_p12, %p2749_p8  ;;  %p2771_p1 = scmp.lt.s32.totalorder %s2769_s26, %s2762_s14 }
 0x11b   : > { %p2766_p10 = pneg %p2765_p13  ;;  %p2772_p3 = por %p2771_p1, %p2770_p4 }
 0x11d   : > { %p2773_p2 = pnand %p2772_p3, %p2766_p10 }
 0x11f   : > { %2776 = shalt.err (!%p2773_p2)
}
 0x120   : > { %2350 = dma.hbm_to_vmem [thread:$0]  (!%p3255_p11), %s3249_s24, 128, %s3251_s16, %s431_s21  }
 0x121   : > { %s3593_s2 = sld [smem:[#allocation28_spill]] }
 0x127   : > { %p3594_p0 = scmp.ne.s32.totalorder %s3593_s2, 0 }
 0x128   : > { %s3287_s22 = sand.u32 (!%p3594_p0), 1, %s2855_s18  }
 0x129   : > { %450 = sbr.rel (%p3594_p0) target bundleno = 3058 (0xbf2), region = 64  ;;  %s2106_s1 = sshll.u32 (!%p3594_p0), %s3287_s22, 3 }
 0x12a   : > { %s453_s15 = scalar_lea.sflag (!%p3594_p0), [#allocation3], %s3287_s22  ;;  %s456_s14 = scalar_lea.vmem (!%p3594_p0), [#allocation2], %s2106_s1 }
 0x130   : > { %2822 = dma.done.wait (%p3230_p6), %s453_s15, 128  }
 0x131   : > { %2824 = vsyncadd (%p3230_p6), %s453_s15, 4294967168  ;;  %p3595_p4 = scmp.eq.s32.totalorder %s2972_s23, 0 }
 0x133   : > { %2826 = dma.done.wait (%p3595_p4), [#allocation6], 512   ;;  %p3596_p10 = pmov %p3595_p4 }
 0x134   : > { %p3597_p11 = pmov %p3595_p4 }
 0x135   : > { %2828 = vsyncadd (%p3596_p10), [#allocation6], 4294966784 }
 0x136   : > { %2830 = dma.done.wait (%p3597_p11), [#allocation9], 272   ;;  %p3598_p8 = pmov %p3595_p4 }
 0x137   : > { %p3599_p5 = pmov %p3595_p4 }
 0x138   : > { %2832 = vsyncadd (%p3598_p8), [#allocation9], 4294967024 }
 0x139   : > { %2834 = dma.done.wait (%p3599_p5), [#allocation12], 528   ;;  %p3600_p7 = pmov %p3595_p4 }
 0x13a   : > { %p3601_p6 = pmov %p3595_p4 }
 0x13b   : > { %2836 = vsyncadd (%p3600_p7), [#allocation12], 4294966768 }
 0x13c   : > { %2838 = dma.done.wait (%p3601_p6), [#allocation15], 32   ;;  %p3602_p9 = pmov %p3595_p4 }
 0x13d   : > { %p3603_p12 = pmov %p3595_p4 }
 0x13e   : > { %2840 = vsyncadd (%p3602_p9), [#allocation15], 4294967264 }
 0x13f   : > { %2842 = dma.done.wait (%p3603_p12), [#allocation18], 32   ;;  %p3604_p13 = pmov %p3595_p4 }
 0x140   : > { %v2878_v0 = vmov 0.0   ;;  %vm2879_vm0 = vmmov 0   ;;  %v2433_v1 = vld [vmem:[#allocation5] sm:$0xff]   ;;  %v2434_v2 = vld [vmem:[#allocation5 + $0x8] sm:$0xff]   ;;  %v3323_v3 = vld [vmem:[%s456_s14] sm:$0xff]  ;;  %vm554_vm1 = vcmask 261120   ;;  %v613_v14 = vlaneseq }
 0x141   : > { %2844 = vsyncadd (%p3604_p13), [#allocation18], 4294967264  ;;  %2188 = vmatprep.subr.bf16.mxu0 %v2878_v0  ;;  %2192 = vmatprep.mubr.msk.bf16.mxu0 %vm2879_vm0, %v2878_v0  ;;  %v537_v4 = vpack.c.bf16 %v3323_v3, %v3323_v3  ;;  %s2880_s12 = smov 104   ;;  %s2881_s24 = smov 120   ;;  %v2884_v12 = vmov 1983009808  }
 0x142   : > { %2196 = vmatprep.subr.bf16.mxu1 %v2878_v0  ;;  %2198 = vmatprep.mubr.msk.bf16.mxu1 %vm2879_vm0, %v2878_v0  ;;  %s2882_s16 = smov 96   ;;  %s2883_s0 = smov 112   ;;  %v611_v13 = vunpack.c.l.s4 %v2884_v12  ;;  %v614_v16 = vshrl.u32 %v613_v14, 7  ;;  %v2885_v17 = vmov 1934713408   ;;  %vm1052_vm2 = vcmask 64512  }
 0x143   : > { %2189 = vmatpush3.bf16.msra.mxu0 %v2433_v1  ;;  %v643_v18 = vunpack.c.l.s4 %v2885_v17  ;;  %s2886_s21 = smov 64   ;;  %vm1288_vm3 = vcmask 1043456   ;;  %s2887_s11 = smov 16   ;;  %vm1619_vm4 = vcmask 130048   ;;  %vm1621_vm5 = vcmask 195584  }
 0x144   : > { %2190 = vmatprep.subr.bf16.mxu0 %v2878_v0  ;;  %v612_v15 = vunpack.c.0.s8 %v611_v13  ;;  %s2888_s28 = smov 8   ;;  %s2889_s26 = smov 24   ;;  %vm1829_vm8 = vcmask 523264  }
 0x145   : > { %v644_v24 = vunpack.c.0.s8 %v643_v18  ;;  %s2155_s2 = sshll.u32 %s2972_s23, 7  ;;  %s534_s15 = scalar_lea.vmem [#allocation20], %s2106_s1 }
 0x146   : > { %v3351_v21 = vsub.s32 %v612_v15, %v614_v16  ;;  %s1925_s14 = sshll.u32 %s534_s15, 4  ;;  %p3606_p3 = scmp.ne.s32.totalorder %s3589_s13, 0  ;;  %s3515_s14 = int_to_ptr.vmem [resolvable:$true] %s1925_s14 }
 0x147   : > { %2191 = vmatpush3.bf16.msra.mxu0 %v2434_v2  ;;  %v3361_v31 = vsub.s32 %v644_v24, %v614_v16  ;;  %s2890_s23 = smov [#allocation20]  }
 0x148   : > { %2202 = vmatprep.subr.bf16.mxu0 %v2878_v0  ;;  %s2781_s1 = sshll.u32 %s2890_s23, 4  ;;  %s2782_s1 = int_to_ptr.vmem [resolvable:$false] %s2781_s1 }
 0x149   : > { %p2784_p4 = scmp.lt.s32.totalorder %s3515_s14, %s2782_s1 }
 0x14a   : > { %2193 = vmatmul.mubr.msk.bf16.vlgmr.msra.gmra.mrb[0].mxu0 %vm554_vm1, %v537_v4 }
 0x14b   : > { %2204 = vmatprep.mubr.msk.bf16.mxu0 %vm2879_vm0, %v2878_v0 }
 0x21d   : > { %v3332_v5 = vpop.f32.mrb[0].mxu0 }
 0x21e   : > { %605 = vrot.lane.b32.xlu1 %v3332_v5, %s2880_s12  ;;  %599 = vrot.lane.b32.xlu0 %v3332_v5, %s2881_s24  ;;  %v2194_v6 = vpop.f32.mrb[1].mxu0 }
 0x21f   : > { %v595_v7 = vpop.f32.mrb[2].mxu0 }
 0x220   : > { %v2195_v8 = vpop.f32.mrb[3].mxu0 }
 0x222   : > { %748 = vrot.lane.b32.xlu1 %v3332_v5, %s2882_s16  ;;  %602 = vrot.lane.b32.xlu0 %v3332_v5, %s2883_s0 }
 0x290   : > { %v3338_v9 = vpop.permute.xlu0 %599  ;;  %v3341_v10 = vpop.permute.xlu1 %605 }
 0x291   : > { %750 = vrot.lane.b32.xlu0 %v3338_v9, %s2882_s16  ;;  %v624_v22 = vcombine.low %v3338_v9, %v3341_v10  ;;  %v625_v23 = vcombine.high %v3338_v9, %v3341_v10 }
 0x293   : > { %v632_v27 = vrot.slane %v624_v22, %v3351_v21  ;;  %v639_v28 = vrot.slane %v625_v23, %v3351_v21 }
 0x294   : > { %v3343_v11 = vpop.permute.xlu0 %602  ;;  %v749_v29 = vpop.permute.xlu1 %748 }
 0x295   : > { %754 = vrot.lane.b32.xlu0 %v3341_v10, %s2882_s16  ;;  %752 = vrot.lane.b32.xlu1 %v3343_v11, %s2882_s16  ;;  %v608_v19 = vcombine.low %v3332_v5, %v3343_v11  ;;  %v609_v20 = vcombine.high %v3332_v5, %v3343_v11  ;;  %s3605_s16 = sld [smem:[#allocation32_spill]] }
 0x297   : > { %v616_v25 = vrot.slane %v608_v19, %v3351_v21  ;;  %v623_v26 = vrot.slane %v609_v20, %v3351_v21 }
 0x299   : > { %v640_v32 = vcombine.low %v616_v25, %v632_v27  ;;  %v641_v33 = vcombine.high %v616_v25, %v632_v27  ;;  %v656_v34 = vcombine.low %v623_v26, %v639_v28  ;;  %v657_v35 = vcombine.high %v623_v26, %v639_v28 }
 0x29b   : > { %v648_v42 = vrot.slane %v640_v32, %v3361_v31  ;;  %v655_v43 = vrot.slane %v641_v33, %v3361_v31  ;;  %v664_v44 = vrot.slane %v656_v34, %v3361_v31  ;;  %v671_v45 = vrot.slane %v657_v35, %v3361_v31  ;;  %s3513_s0 = scalar_lea.hbm %s3605_s16, %s2155_s2 }
 0x29d   : > { %v676_v54 = vcombine.low %v648_v42, %v655_v43  ;;  %v2121_v55 = vcombine.high %v648_v42, %v655_v43  ;;  %v692_v56 = vcombine.low %v664_v44, %v671_v45  ;;  %v2122_v57 = vcombine.high %v664_v44, %v671_v45 }
 0x29f   : > { %v683_v4 = vrot.slane %v676_v54, %v3351_v21  ;;  %v691_v6 = vrot.slane %v2121_v55, %v3351_v21  ;;  %v699_v7 = vrot.slane %v692_v56, %v3351_v21  ;;  %v707_v8 = vrot.slane %v2122_v57, %v3351_v21 }
 0x2a1   : > { %v708_v23 = vcombine.low %v683_v4, %v691_v6  ;;  %v724_v24 = vcombine.low %v699_v7, %v707_v8 }
 0x2a3   : > { %v716_v32 = vrot.slane %v708_v23, %v3361_v31  ;;  %v732_v33 = vrot.slane %v724_v24, %v3361_v31 }
 0x303   : > { %v751_v30 = vpop.permute.xlu0 %750 }
 0x307   : > { %v753_v36 = vpop.permute.xlu1 %752  ;;  %v755_v37 = vpop.permute.xlu0 %754 }
 0x308   : > { %v760_v38 = vcombine.low %v749_v29, %v753_v36  ;;  %v761_v39 = vcombine.high %v749_v29, %v753_v36  ;;  %v776_v40 = vcombine.low %v751_v30, %v755_v37  ;;  %v777_v41 = vcombine.high %v751_v30, %v755_v37 }
 0x30a   : > { %v768_v46 = vrot.slane %v760_v38, %v3351_v21  ;;  %v775_v47 = vrot.slane %v761_v39, %v3351_v21  ;;  %v784_v48 = vrot.slane %v776_v40, %v3351_v21  ;;  %v791_v49 = vrot.slane %v777_v41, %v3351_v21 }
 0x30b   : > { %v709_v38 = vcombine.high %v683_v4, %v691_v6  ;;  %v725_v39 = vcombine.high %v699_v7, %v707_v8  ;;  %v740_v40 = vcombine.low %v716_v32, %v732_v33  ;;  %v741_v41 = vcombine.high %v716_v32, %v732_v33 }
 0x30c   : > { %v792_v50 = vcombine.low %v768_v46, %v784_v48  ;;  %v793_v51 = vcombine.high %v768_v46, %v784_v48  ;;  %v808_v52 = vcombine.low %v775_v47, %v791_v49  ;;  %v809_v53 = vcombine.high %v775_v47, %v791_v49 }
 0x30d   : > { %v744_v44 = vpack.c.bf16 %v740_v40, %v740_v40  ;;  %v745_v45 = vpack.c.bf16 %v741_v41, %v741_v41  ;;  %v723_v46 = vrot.slane %v709_v38, %v3361_v31  ;;  %v739_v47 = vrot.slane %v725_v39, %v3361_v31 }
 0x30e   : > { %v800_v58 = vrot.slane %v792_v50, %v3361_v31  ;;  %v807_v59 = vrot.slane %v793_v51, %v3361_v31  ;;  %v816_v60 = vrot.slane %v808_v52, %v3361_v31  ;;  %v823_v61 = vrot.slane %v809_v53, %v3361_v31 }
 0x30f   : > { %v742_v50 = vcombine.low %v723_v46, %v739_v47  ;;  %v743_v51 = vcombine.high %v723_v46, %v739_v47 }
 0x310   : > { %v828_v62 = vcombine.low %v800_v58, %v807_v59  ;;  %v2123_v63 = vcombine.high %v800_v58, %v807_v59  ;;  %v844_v1 = vcombine.low %v816_v60, %v823_v61  ;;  %v2124_v2 = vcombine.high %v816_v60, %v823_v61 }
 0x311   : > { %v746_v52 = vpack.c.bf16 %v742_v50, %v742_v50  ;;  %v747_v53 = vpack.c.bf16 %v743_v51, %v743_v51 }
 0x312   : > { %v835_v12 = vrot.slane %v828_v62, %v3351_v21  ;;  %v843_v13 = vrot.slane %v2123_v63, %v3351_v21  ;;  %v851_v14 = vrot.slane %v844_v1, %v3351_v21  ;;  %v859_v15 = vrot.slane %v2124_v2, %v3351_v21 }
 0x314   : > { %v860_v16 = vcombine.low %v835_v12, %v843_v13  ;;  %v876_v17 = vcombine.low %v851_v14, %v859_v15  ;;  %v861_v18 = vcombine.high %v835_v12, %v843_v13  ;;  %v877_v19 = vcombine.high %v851_v14, %v859_v15 }
 0x316   : > { %v868_v20 = vrot.slane %v860_v16, %v3361_v31  ;;  %v884_v22 = vrot.slane %v876_v17, %v3361_v31  ;;  %v875_v27 = vrot.slane %v861_v18, %v3361_v31  ;;  %v891_v28 = vrot.slane %v877_v19, %v3361_v31 }
 0x318   : > { %v892_v25 = vcombine.low %v868_v20, %v884_v22  ;;  %v893_v26 = vcombine.high %v868_v20, %v884_v22  ;;  %v894_v36 = vcombine.low %v875_v27, %v891_v28  ;;  %v895_v37 = vcombine.high %v875_v27, %v891_v28 }
 0x31a   : > { %v896_v29 = vpack.c.bf16 %v892_v25, %v892_v25  ;;  %v897_v30 = vpack.c.bf16 %v893_v26, %v893_v26  ;;  %v898_v42 = vpack.c.bf16 %v894_v36, %v894_v36  ;;  %v899_v43 = vpack.c.bf16 %v895_v37, %v895_v37 }
 0x31c   : > { %v1057_v34 = vsel %vm1052_vm2, %v896_v29, 0  ;;  %v1103_v35 = vsel %vm1052_vm2, %v897_v30, 0  ;;  %v1149_v48 = vsel %vm1052_vm2, %v898_v42, 0  ;;  %v1195_v49 = vsel %vm1052_vm2, %v899_v43, 0 }
 0x31d   : > { %2197 = vmatpush3.bf16.xpose.msra.mxu1 %v1057_v34  ;;  %2203 = vmatpush3.bf16.xpose.msra.mxu0 %v1103_v35 }
 0x31e   : > { %2208 = vmatprep.subr.bf16.mxu1 %v2878_v0  ;;  %2214 = vmatprep.subr.bf16.mxu0 %v2878_v0 }
 0x324   : > { %2199 = vmatmul.mubr.msk.bf16.vlgmr.msra.gmra.mrb[0].mxu1 %vm1052_vm2, %v744_v44  ;;  %2205 = vmatmul.mubr.msk.bf16.vlgmr.msra.gmra.mrb[4].mxu0 %vm1052_vm2, %v745_v45 }
 0x325   : > { %2209 = vmatpush3.bf16.xpose.msra.mxu1 %v1149_v48  ;;  %2215 = vmatpush3.bf16.xpose.msra.mxu0 %v1195_v49 }
 0x326   : > { %2210 = vmatprep.mubr.msk.bf16.mxu1 %vm2879_vm0, %v2878_v0  ;;  %2216 = vmatprep.mubr.msk.bf16.mxu0 %vm2879_vm0, %v2878_v0 }
 0x327   : > { %2220 = vmatprep.subr.bf16.mxu1 %v2878_v0  ;;  %2226 = vmatprep.subr.bf16.mxu0 %v2878_v0 }
 0x32c   : > { %2211 = vmatmul.mubr.msk.bf16.vlgmr.msra.gmra.mrb[4].mxu1 %vm1052_vm2, %v746_v52  ;;  %2217 = vmatmul.mubr.msk.bf16.vlgmr.msra.gmra.mrb[8].mxu0 %vm1052_vm2, %v747_v53 }
 0x32d   : > { %2222 = vmatprep.mubr.msk.bf16.mxu1 %vm2879_vm0, %v2878_v0  ;;  %2228 = vmatprep.mubr.msk.bf16.mxu0 %vm2879_vm0, %v2878_v0 }
 0x3f7   : > { %v1093_v54 = vpop.f32.mrb[0].mxu1  ;;  %v1139_v55 = vpop.f32.mrb[4].mxu0 }
 0x3f8   : > { %v2200_v56 = vpop.f32.mrb[1].mxu1  ;;  %v2206_v57 = vpop.f32.mrb[5].mxu0  ;;  %v1237_v58 = vsel %vm1052_vm2, %v1093_v54, -inf  ;;  %v1240_v59 = vsel %vm1052_vm2, %v1139_v55, -inf }
 0x3f9   : > { %1238 = vmax.xlane.f32.xlu1 %v1237_v58  ;;  %v1096_v60 = vpop.f32.mrb[2].mxu1  ;;  %1241 = vmax.xlane.f32.xlu0 %v1240_v59  ;;  %v1142_v61 = vpop.f32.mrb[6].mxu0 }
 0x3fa   : > { %v2201_v62 = vpop.f32.mrb[3].mxu1  ;;  %v2207_v63 = vpop.f32.mrb[7].mxu0 }
 0x3ff   : > { %v1185_v1 = vpop.f32.mrb[4].mxu1  ;;  %v1231_v2 = vpop.f32.mrb[8].mxu0 }
 0x400   : > { %v2212_v4 = vpop.f32.mrb[5].mxu1  ;;  %v2218_v6 = vpop.f32.mrb[9].mxu0  ;;  %v1243_v7 = vsel %vm1052_vm2, %v1185_v1, -inf  ;;  %v1246_v8 = vsel %vm1052_vm2, %v1231_v2, -inf }
 0x401   : > { %v1188_v12 = vpop.f32.mrb[6].mxu1  ;;  %1244 = vmax.xlane.f32.xlu0 %v1243_v7  ;;  %1247 = vmax.xlane.f32.xlu1 %v1246_v8  ;;  %v1234_v13 = vpop.f32.mrb[10].mxu0 }
 0x402   : > { %v2213_v14 = vpop.f32.mrb[7].mxu1  ;;  %v2219_v15 = vpop.f32.mrb[11].mxu0 }
 0x412   : > { %902 = vrot.lane.b32.xlu1 %v3338_v9, %s2886_s21 }
 0x417   : > { %900 = vrot.lane.b32.xlu0 %v3332_v5, %s2886_s21 }
 0x486   : > { %v1239_v16 = vpop.xlane.xlu1 %1238  ;;  %v1242_v17 = vpop.xlane.xlu0 %1241 }
 0x487   : > { %v1249_v18 = vsub.f32 %v1093_v54, %v1239_v16  ;;  %v1250_v19 = vsub.f32 %v1139_v55, %v1242_v17 }
 0x489   : > { %v1253_v20 = vmul.f32 1.442695, %v1249_v18  ;;  %v1255_v22 = vmul.f32 1.442695, %v1250_v19 }
 0x48b   : > { %2443 = vpow2.f32 %v1253_v20 }
 0x48c   : > { %2445 = vpow2.f32 %v1255_v22 }
 0x48e   : > { %v1248_v5 = vpop.xlane.xlu1 %1247  ;;  %v1245_v26 = vpop.xlane.xlu0 %1244 }
 0x48f   : > { %v1252_v27 = vsub.f32 %v1231_v2, %v1248_v5  ;;  %v1251_v28 = vsub.f32 %v1185_v1, %v1245_v26 }
 0x491   : > { %v1259_v29 = vmul.f32 1.442695, %v1252_v27  ;;  %v1257_v30 = vmul.f32 1.442695, %v1251_v28 }
 0x492   : > { %v903_v35 = vpop.permute.xlu1 %902 }
 0x493   : > { %2447 = vpow2.f32 %v1259_v29 }
 0x494   : > { %2449 = vpow2.f32 %v1257_v30 }
 0x495   : > { %v3417_v23 = vpop.eup %2443 }
 0x496   : > { %v3419_v24 = vpop.eup %2445  ;;  %v1261_v25 = vsel %vm1052_vm2, %v3417_v23, 0.0 }
 0x497   : > { %1262 = vadd.xlane.f32.xlu0 %v1261_v25  ;;  %v1264_v9 = vsel %vm1052_vm2, %v3419_v24, 0.0 }
 0x498   : > { %1265 = vadd.xlane.f32.xlu1 %v1264_v9 }
 0x49d   : > { %v3427_v32 = vpop.eup %2447 }
 0x49e   : > { %v3429_v33 = vpop.eup %2449  ;;  %v1270_v34 = vsel %vm1052_vm2, %v3427_v32, 0.0 }
 0x4a9   : > { %904 = vrot.lane.b32.xlu1 %v3343_v11, %s2886_s21  ;;  %v1267_v11 = vsel %vm1052_vm2, %v3429_v33, 0.0 }
 0x4ad   : > { %906 = vrot.lane.b32.xlu0 %v3341_v10, %s2886_s21  ;;  %v901_v10 = vpop.permute.xlu0 %900  ;;  %s1912_s21 = scalar_lea.sflag [#allocation4], %s3287_s22 }
 0x4cc   : > { %1271 = vadd.xlane.f32.xlu0 %v1270_v34 }
 0x4cd   : > { %1268 = vadd.xlane.f32.xlu1 %v1267_v11 }
 0x524   : > { %v1263_v36 = vpop.xlane.xlu0 %1262 }
 0x525   : > { %v1266_v37 = vpop.xlane.xlu1 %1265  ;;  %2451 = vrcp.f32 %v1263_v36 }
 0x526   : > { %2453 = vrcp.f32 %v1266_v37 }
 0x528   : > { %v907_v38 = vpop.permute.xlu0 %906 }
 0x529   : > { %v928_v39 = vcombine.low %v903_v35, %v907_v38  ;;  %v929_v40 = vcombine.high %v903_v35, %v907_v38  ;;  %v905_v41 = vpop.permute.xlu1 %904 }
 0x52a   : > { %v912_v42 = vcombine.low %v901_v10, %v905_v41  ;;  %v913_v43 = vcombine.high %v901_v10, %v905_v41 }
 0x52b   : > { %v936_v44 = vrot.slane %v928_v39, %v3351_v21  ;;  %v943_v45 = vrot.slane %v929_v40, %v3351_v21 }
 0x52c   : > { %v920_v46 = vrot.slane %v912_v42, %v3351_v21  ;;  %v927_v47 = vrot.slane %v913_v43, %v3351_v21 }
 0x52e   : > { %v944_v48 = vcombine.low %v920_v46, %v936_v44  ;;  %v945_v49 = vcombine.high %v920_v46, %v936_v44  ;;  %v960_v50 = vcombine.low %v927_v47, %v943_v45  ;;  %v961_v51 = vcombine.high %v927_v47, %v943_v45 }
 0x52f   : > { %v2452_v12 = vpop.eup %2451 }
 0x530   : > { %v952_v52 = vrot.slane %v944_v48, %v3361_v31  ;;  %v959_v53 = vrot.slane %v945_v49, %v3361_v31  ;;  %v968_v54 = vrot.slane %v960_v50, %v3361_v31  ;;  %v975_v55 = vrot.slane %v961_v51, %v3361_v31  ;;  %v2454_v15 = vpop.eup %2453 }
 0x531   : > { %v1277_v20 = vmul.f32 %v2452_v12, %v3417_v23  ;;  %v1278_v22 = vmul.f32 %v2454_v15, %v3419_v24 }
 0x532   : > { %v980_v56 = vcombine.low %v952_v52, %v959_v53  ;;  %v2125_v57 = vcombine.high %v952_v52, %v959_v53  ;;  %v996_v58 = vcombine.low %v968_v54, %v975_v55  ;;  %v2126_v59 = vcombine.high %v968_v54, %v975_v55 }
 0x533   : > { %v1281_v29 = vpack.c.bf16 %v1277_v20, %v1277_v20  ;;  %v1282_v30 = vpack.c.bf16 %v1278_v22, %v1278_v22 }
 0x534   : > { %v987_v60 = vrot.slane %v980_v56, %v3351_v21  ;;  %v995_v61 = vrot.slane %v2125_v57, %v3351_v21  ;;  %v1003_v62 = vrot.slane %v996_v58, %v3351_v21  ;;  %v1011_v63 = vrot.slane %v2126_v59, %v3351_v21 }
 0x536   : > { %v1012_v1 = vcombine.low %v987_v60, %v995_v61  ;;  %v1013_v2 = vcombine.high %v987_v60, %v995_v61  ;;  %v1028_v4 = vcombine.low %v1003_v62, %v1011_v63  ;;  %v1029_v6 = vcombine.high %v1003_v62, %v1011_v63 }
 0x538   : > { %v1020_v7 = vrot.slane %v1012_v1, %v3361_v31  ;;  %v1027_v8 = vrot.slane %v1013_v2, %v3361_v31  ;;  %v1036_v13 = vrot.slane %v1028_v4, %v3361_v31  ;;  %v1043_v14 = vrot.slane %v1029_v6, %v3361_v31  ;;  %v2435_v4 = vld [vmem:[#allocation7] sm:$0xff]  }
 0x53a   : > { %v1044_v16 = vcombine.low %v1020_v7, %v1036_v13  ;;  %v1045_v17 = vcombine.high %v1020_v7, %v1036_v13  ;;  %v1046_v18 = vcombine.low %v1027_v8, %v1043_v14  ;;  %v1047_v19 = vcombine.high %v1027_v8, %v1043_v14 }
 0x53c   : > { %v1048_v25 = vpack.c.bf16 %v1044_v16, %v1044_v16  ;;  %v1049_v9 = vpack.c.bf16 %v1045_v17, %v1045_v17  ;;  %v1050_v27 = vpack.c.bf16 %v1046_v18, %v1046_v18  ;;  %v1051_v28 = vpack.c.bf16 %v1047_v19, %v1047_v19  ;;  %v2436_v17 = vld [vmem:[#allocation7 + $0x8] sm:$0xff]  }
 0x53e   : > { %v1290_v5 = vsel %vm1288_vm3, %v1048_v25, 0  ;;  %v1336_v26 = vsel %vm1288_vm3, %v1049_v9, 0  ;;  %v1382_v23 = vsel %vm1288_vm3, %v1050_v27, 0  ;;  %v1428_v24 = vsel %vm1288_vm3, %v1051_v28, 0 }
 0x53f   : > { %2221 = vmatpush3.bf16.msra.mxu1 %v1290_v5  ;;  %2227 = vmatpush3.bf16.msra.mxu0 %v1336_v26 }
 0x540   : > { %2232 = vmatprep.subr.bf16.mxu1 %v2878_v0  ;;  %2238 = vmatprep.subr.bf16.mxu0 %v2878_v0 }
 0x542   : > { %2223 = vmatmul.mubr.msk.bf16.vlgmr.msra.gmra.mrb[8].mxu1 %vm1052_vm2, %v1281_v29  ;;  %2229 = vmatmul.mubr.msk.bf16.vlgmr.msra.gmra.mrb[12].mxu0 %vm1052_vm2, %v1282_v30 }
 0x543   : > { %2233 = vmatpush3.bf16.msra.mxu1 %v1382_v23  ;;  %2239 = vmatpush3.bf16.msra.mxu0 %v1428_v24 }
 0x544   : > { %2234 = vmatprep.mubr.msk.bf16.mxu1 %vm2879_vm0, %v2878_v0  ;;  %2240 = vmatprep.mubr.msk.bf16.mxu0 %vm2879_vm0, %v2878_v0 }
 0x545   : > { %2244 = vmatprep.subr.bf16.mxu1 %v2878_v0  ;;  %2252 = vmatprep.subr.bf16.mxu0 %v2878_v0 }
 0x559   : > { %v1272_v34 = vpop.xlane.xlu0 %1271 }
 0x55a   : > { %2455 = vrcp.f32 %v1272_v34  ;;  %v1269_v11 = vpop.xlane.xlu1 %1268 }
 0x55b   : > { %2457 = vrcp.f32 %v1269_v11 }
 0x564   : > { %v2456_v10 = vpop.eup %2455 }
 0x565   : > { %v2458_v35 = vpop.eup %2457  ;;  %v1280_v36 = vmul.f32 %v2456_v10, %v3427_v32 }
 0x566   : > { %v1279_v37 = vmul.f32 %v2458_v35, %v3429_v33 }
 0x567   : > { %v1284_v38 = vpack.c.bf16 %v1280_v36, %v1280_v36 }
 0x568   : > { %v1283_v39 = vpack.c.bf16 %v1279_v37, %v1279_v37 }
 0x569   : > { %2241 = vmatmul.mubr.msk.bf16.vlgmr.msra.gmra.mrb[16].mxu0 %vm1052_vm2, %v1284_v38 }
 0x56a   : > { %2235 = vmatmul.mubr.msk.bf16.vlgmr.msra.gmra.mrb[12].mxu1 %vm1052_vm2, %v1283_v39  ;;  %2256 = vmatprep.mubr.msk.bf16.mxu0 %vm2879_vm0, %v2878_v0 }
 0x56b   : > { %2248 = vmatprep.mubr.msk.bf16.mxu1 %vm2879_vm0, %v2878_v0  ;;  %2245 = vmatpush3.bf16.msra.mxu1 %v2435_v4  ;;  %v2441_v4 = vld [vmem:[#allocation11 + $0x10] sm:$0xff]  }
 0x56c   : > { %2246 = vmatprep.subr.bf16.mxu1 %v2878_v0 }
 0x56f   : > { %2247 = vmatpush3.bf16.msra.mxu1 %v2436_v17 }
 0x570   : > { %2260 = vmatprep.subr.bf16.mxu1 %v2878_v0 }
 0x615   : > { %v1326_v40 = vpop.f32.mrb[8].mxu1  ;;  %v1372_v41 = vpop.f32.mrb[12].mxu0 }
 0x616   : > { %v2224_v42 = vpop.f32.mrb[9].mxu1  ;;  %v2230_v43 = vpop.f32.mrb[13].mxu0 }
 0x617   : > { %v1329_v44 = vpop.f32.mrb[10].mxu1  ;;  %v1375_v32 = vpop.f32.mrb[14].mxu0 }
 0x618   : > { %v2225_v45 = vpop.f32.mrb[11].mxu1  ;;  %v2231_v33 = vpop.f32.mrb[15].mxu0 }
 0x63c   : > { %v1464_v46 = vpop.f32.mrb[16].mxu0 }
 0x63d   : > { %v1418_v47 = vpop.f32.mrb[12].mxu1  ;;  %v1486_v48 = vcombine.low %v1372_v41, %v1464_v46  ;;  %v1487_v49 = vcombine.high %v1372_v41, %v1464_v46  ;;  %v2242_v50 = vpop.f32.mrb[17].mxu0 }
 0x63e   : > { %v1470_v51 = vcombine.low %v1326_v40, %v1418_v47  ;;  %v1471_v52 = vcombine.high %v1326_v40, %v1418_v47  ;;  %v2236_v53 = vpop.f32.mrb[13].mxu1  ;;  %v1467_v54 = vpop.f32.mrb[18].mxu0  ;;  %v2440_v50 = vld [vmem:[#allocation11 + $0x8] sm:$0xff]  }
 0x63f   : > { %v1494_v55 = vrot.slane %v1486_v48, %v3351_v21  ;;  %v1501_v56 = vrot.slane %v1487_v49, %v3351_v21  ;;  %v1421_v57 = vpop.f32.mrb[14].mxu1  ;;  %v2243_v58 = vpop.f32.mrb[19].mxu0  ;;  %v2437_v48 = vld [vmem:[#allocation8] sm:$0xff]   ;;  %v2438_v49 = vld [vmem:[#allocation8 + $0x8] sm:$0xff]  }
 0x640   : > { %v1478_v59 = vrot.slane %v1470_v51, %v3351_v21  ;;  %v1485_v60 = vrot.slane %v1471_v52, %v3351_v21  ;;  %v2237_v61 = vpop.f32.mrb[15].mxu1  ;;  %2253 = vmatpush3.bf16.msra.mxu0 %v2437_v48 }
 0x641   : > { %2254 = vmatprep.subr.bf16.mxu0 %v2878_v0 }
 0x642   : > { %v1502_v62 = vcombine.low %v1478_v59, %v1494_v55  ;;  %v1503_v63 = vcombine.high %v1478_v59, %v1494_v55  ;;  %v1518_v1 = vcombine.low %v1485_v60, %v1501_v56  ;;  %v1519_v2 = vcombine.high %v1485_v60, %v1501_v56  ;;  %v2140_v60 = vld [vmem:[#allocation14] ss:$0 sm:$0xff] }
 0x644   : > { %v1510_v6 = vrot.slane %v1502_v62, %v3361_v31  ;;  %v1517_v7 = vrot.slane %v1503_v63, %v3361_v31  ;;  %v1526_v8 = vrot.slane %v1518_v1, %v3361_v31  ;;  %v1533_v12 = vrot.slane %v1519_v2, %v3361_v31  ;;  %2255 = vmatpush3.bf16.msra.mxu0 %v2438_v49  ;;  %v2141_v62 = vld [vmem:[#allocation16] ss:$0 sm:$0xff] }
 0x646   : > { %v1538_v13 = vcombine.low %v1510_v6, %v1517_v7  ;;  %v2135_v14 = vcombine.high %v1510_v6, %v1517_v7  ;;  %v1554_v15 = vcombine.low %v1526_v8, %v1533_v12  ;;  %v2136_v16 = vcombine.high %v1526_v8, %v1533_v12  ;;  %v2442_v6 = vld [vmem:[#allocation11 + $0x18] sm:$0xff]  }
 0x647   : > { %v2142_v7 = vld [vmem:[#allocation10] ss:$0 sm:$0xff] }
 0x648   : > { %v1545_v18 = vrot.slane %v1538_v13, %v3351_v21  ;;  %v1553_v19 = vrot.slane %v2135_v14, %v3351_v21  ;;  %v1561_v20 = vrot.slane %v1554_v15, %v3351_v21  ;;  %v1569_v22 = vrot.slane %v2136_v16, %v3351_v21 }
 0x64a   : > { %v1571_v25 = vcombine.high %v1545_v18, %v1553_v19  ;;  %v1587_v9 = vcombine.high %v1561_v20, %v1569_v22  ;;  %v1570_v5 = vcombine.low %v1545_v18, %v1553_v19  ;;  %v1586_v26 = vcombine.low %v1561_v20, %v1569_v22  ;;  %v2146_v18 = vld [vmem:[#allocation13] ss:$0 sm:$0xff] }
 0x64c   : > { %v1585_v27 = vrot.slane %v1571_v25, %v3361_v31  ;;  %v1601_v28 = vrot.slane %v1587_v9, %v3361_v31  ;;  %v1578_v29 = vrot.slane %v1570_v5, %v3361_v31  ;;  %v1594_v30 = vrot.slane %v1586_v26, %v3361_v31 }
 0x64e   : > { %v1604_v23 = vcombine.low %v1585_v27, %v1601_v28  ;;  %v1603_v24 = vcombine.high %v1578_v29, %v1594_v30  ;;  %v1605_v34 = vcombine.high %v1585_v27, %v1601_v28  ;;  %v1602_v11 = vcombine.low %v1578_v29, %v1594_v30 }
 0x650   : > { %1611 = vrot.lane.b32.xlu1 %v1604_v23, %s2887_s11  ;;  %1607 = vrot.lane.b32.xlu0 %v1603_v24, %s2888_s28  ;;  %s2777_s11 = scalar_lea.vmem %s3515_s14, 128  ;;  %s2783_s28 = scalar_lea.vmem %s2782_s1, 256 }
 0x651   : > { %p2778_p1 = scmp.ne.s32.totalorder %s3515_s14, %s2777_s11  ;;  %p2785_p10 = scmp.lt.s32.totalorder %s2783_s28, %s2777_s11 }
 0x653   : > { %p2779_p2 = pnand %p2778_p1, %p3606_p3  ;;  %p2786_p11 = por %p2785_p10, %p2784_p4 }
 0x654   : > { %1615 = vrot.lane.b32.xlu1 %v1605_v34, %s2889_s26 }
 0x655   : > { %p2780_p0 = pneg %p2779_p2 }
 0x657   : > { %p2787_p8 = pnand %p2786_p11, %p2780_p0 }
 0x6c2   : > { %v1612_v21 = vpop.permute.xlu1 %1611  ;;  %v1608_v10 = vpop.permute.xlu0 %1607 }
 0x6c3   : > { %v1618_v35 = vsel %vm1052_vm2, %v1602_v11, %v1608_v10 }
 0x6c4   : > { %v1620_v37 = vsel %vm1619_vm4, %v1618_v35, %v1612_v21 }
 0x6c6   : > { %v1616_v36 = vpop.permute.xlu1 %1615 }
 0x6c7   : > { %v1622_v38 = vsel %vm1621_vm5, %v1620_v37, %v1616_v36 }
 0x6c8   : > { %v1623_v31 = vpack.c.bf16 %v1622_v38, %v1622_v38  ;;  %v2152_v38 = vld [vmem:[#allocation17] ss:$0 sm:$0xff] }
 0x6ca   : > { %2249 = vmatmul.mubr.msk.bf16.vlgmr.msra.gmra.mrb[16].mxu1 %vm554_vm1, %v1623_v31 }
 0x6cb   : > { %2268 = vmatprep.mubr.msk.bf16.mxu1 %vm2879_vm0, %v2878_v0 }
 0x79d   : > { %v1677_v39 = vpop.f32.mrb[16].mxu1 }
 0x79e   : > { %v1683_v40 = vadd.f32 %v1677_v39, %v3323_v3  ;;  %v2250_v41 = vpop.f32.mrb[17].mxu1  ;;  %v2439_v3 = vld [vmem:[#allocation11] sm:$0xff]   ;;  %v2153_v39 = vld [vmem:[#allocation19] ss:$0 sm:$0xff] }
 0x79f   : > { %v1680_v42 = vpop.f32.mrb[18].mxu1  ;;  %2261 = vmatpush3.bf16.msra.mxu1 %v2439_v3 }
 0x7a0   : > { %v2251_v43 = vpop.f32.mrb[19].mxu1  ;;  %v1686_v44 = vsel %vm554_vm1, %v1683_v40, 0.0  ;;  %2262 = vmatprep.subr.bf16.mxu1 %v2878_v0 }
 0x7a1   : > { %1687 = vadd.xlane.f32.xlu0 %v1686_v44 }
 0x7a3   : > { %2263 = vmatpush3.bf16.msra.mxu1 %v2440_v50 }
 0x7a4   : > { %2264 = vmatprep.subr.bf16.mxu1 %v2878_v0 }
 0x7a7   : > { %2265 = vmatpush3.bf16.msra.mxu1 %v2441_v4 }
 0x7a8   : > { %2266 = vmatprep.subr.bf16.mxu1 %v2878_v0 }
 0x7ab   : > { %2267 = vmatpush3.bf16.msra.mxu1 %v2442_v6 }
 0x82e   : > { %v1688_v32 = vpop.xlane.xlu0 %1687 }
 0x82f   : > { %v1690_v45 = vmul.f32 0.03125, %v1688_v32 }
 0x831   : > { %v1691_v33 = vsub.f32 %v1683_v40, %v1690_v45 }
 0x833   : > { %v1692_v46 = vmul.f32 %v1691_v33, %v1691_v33 }
 0x835   : > { %v1693_v47 = vsel %vm554_vm1, %v1692_v46, 0.0 }
 0x836   : > { %1694 = vadd.xlane.f32.xlu1 %v1693_v47 }
 0x8c3   : > { %v1695_v51 = vpop.xlane.xlu1 %1694 }
 0x8c4   : > { %v1696_v52 = vmul.f32 0.032258064, %v1695_v51 }
 0x8c6   : > { %2459 = vrsqrt.f32 %v1696_v52  ;;  %vm1699_vm6 = vcmp.eq.f32.partialorder %v1696_v52, inf  ;;  %v1702_v55 = vand.u32 2147483648, %v1696_v52  ;;  %vm1701_vm7 = vcmp.eq.f32.partialorder %v1696_v52, 0.0 }
 0x8d0   : > { %v2460_v53 = vpop.eup %2459 }
 0x8d1   : > { %v1698_v54 = vmul.f32 %v2460_v53, %v1696_v52 }
 0x8d3   : > { %v1700_v56 = vsel %vm1699_vm6, %v1696_v52, %v1698_v54 }
 0x8d4   : > { %v1703_v57 = vsel %vm1701_vm7, %v1702_v55, %v1700_v56 }
 0x8d5   : > { %v1704_v58 = vadd.f32 1e-06, %v1703_v57 }
 0x8d7   : > { %2461 = vrcp.f32 %v1704_v58 }
 0x8e1   : > { %v2462_v59 = vpop.eup %2461 }
 0x8e2   : > { %v1706_v61 = vmul.f32 %v2462_v59, %v1691_v33 }
 0x8e4   : > { %v1713_v63 = vmul.f32 %v2140_v60, %v1706_v61 }
 0x8e6   : > { %v1720_v1 = vadd.f32 %v2141_v62, %v1713_v63 }
 0x8e8   : > { %v1721_v2 = vpack.c.bf16 %v1720_v1, %v1720_v1 }
 0x8ea   : > { %2257 = vmatmul.mubr.msk.bf16.vlgmr.msra.gmra.mrb[20].mxu0 %vm554_vm1, %v1721_v2 }
 0x9bd   : > { %v1782_v8 = vpop.f32.mrb[20].mxu0 }
 0x9be   : > { %v1783_v12 = vadd.f32 %v2142_v7, %v1782_v8  ;;  %v2258_v13 = vpop.f32.mrb[21].mxu0 }
 0x9bf   : > { %v1785_v14 = vpop.f32.mrb[22].mxu0 }
 0x9c0   : > { %v1788_v15 = vmax.f32 %v1783_v12, 0.0  ;;  %v2259_v16 = vpop.f32.mrb[23].mxu0 }
 0x9c2   : > { %v1789_v17 = vpack.c.bf16 %v1788_v15, %v1788_v15 }
 0x9c4   : > { %2269 = vmatmul.mubr.msk.bf16.vlgmr.msra.gmra.mrb[20].mxu1 %vm1829_vm8, %v1789_v17 }
 0xa97   : > { %v1867_v19 = vpop.f32.mrb[20].mxu1 }
 0xa98   : > { %v1868_v20 = vadd.f32 %v2146_v18, %v1867_v19  ;;  %v2270_v22 = vpop.f32.mrb[21].mxu1 }
 0xa99   : > { %v1870_v25 = vpop.f32.mrb[22].mxu1 }
 0xa9a   : > { %v2271_v9 = vpop.f32.mrb[23].mxu1  ;;  %v1873_v5 = vadd.f32 %v1868_v20, %v1720_v1 }
 0xa9c   : > { %v1876_v0 = vsel %vm554_vm1, %v1873_v5, 0.0 }
 0xa9d   : > { %1877 = vadd.xlane.f32.xlu0 %v1876_v0 }
 0xb2a   : > { %v1878_v26 = vpop.xlane.xlu0 %1877 }
 0xb2b   : > { %v1879_v27 = vmul.f32 0.03125, %v1878_v26 }
 0xb2d   : > { %v1880_v28 = vsub.f32 %v1873_v5, %v1879_v27 }
 0xb2f   : > { %v1881_v29 = vmul.f32 %v1880_v28, %v1880_v28 }
 0xb31   : > { %v1882_v30 = vsel %vm554_vm1, %v1881_v29, 0.0 }
 0xb32   : > { %1883 = vadd.xlane.f32.xlu0 %v1882_v30 }
 0xbbf   : > { %v1884_v23 = vpop.xlane.xlu0 %1883 }
 0xbc0   : > { %v1885_v24 = vmul.f32 0.032258064, %v1884_v23 }
 0xbc2   : > { %2463 = vrsqrt.f32 %v1885_v24  ;;  %vm1888_vm9 = vcmp.eq.f32.partialorder %v1885_v24, inf  ;;  %v1891_v21 = vand.u32 2147483648, %v1885_v24  ;;  %vm1890_vm10 = vcmp.eq.f32.partialorder %v1885_v24, 0.0 }
 0xbcc   : > { %v2464_v34 = vpop.eup %2463 }
 0xbcd   : > { %v1887_v11 = vmul.f32 %v2464_v34, %v1885_v24 }
 0xbcf   : > { %v1889_v10 = vsel %vm1888_vm9, %v1885_v24, %v1887_v11 }
 0xbd0   : > { %v1892_v35 = vsel %vm1890_vm10, %v1891_v21, %v1889_v10 }
 0xbd1   : > { %v1893_v36 = vadd.f32 1e-06, %v1892_v35 }
 0xbd3   : > { %2465 = vrcp.f32 %v1893_v36 }
 0xbdd   : > { %v2466_v37 = vpop.eup %2465 }
 0xbde   : > { %v1895_v31 = vmul.f32 %v2466_v37, %v1880_v28 }
 0xbe0   : > { %v1902_v40 = vmul.f32 %v2152_v38, %v1895_v31 }
 0xbe2   : > { %v1909_v41 = vadd.f32 %v2153_v39, %v1902_v40 }
 0xbe4   : > { %1910 = vst.msk [vmem:[%s534_s15] sm:$0xff] %vm554_vm1, %v1909_v41 }
 0xbe5   : > { %2790 = shalt.err (!%p2787_p8)
}
 0xbe6   : > { %s2791_s22 = scalar_lea.hbm %s3513_s0, 128  ;;  %s2795_s15 = scalar_lea.hbm %s3605_s16, 256 }
 0xbe7   : > { %p2792_p5 = scmp.ne.s32.totalorder %s3513_s0, %s2791_s22  ;;  %p2796_p9 = scmp.lt.u32.totalorder %s3513_s0, %s3605_s16 }
 0xbe8   : > { %p2797_p12 = scmp.lt.u32.totalorder %s2795_s15, %s2791_s22  ;;  %p2799_p1 = scmp.lt.u32.totalorder %s2791_s22, %s3513_s0 }
 0xbe9   : > { %p2793_p7 = pnand %p2792_p5, %p3606_p3 }
 0xbea   : > { %p2798_p13 = por %p2797_p12, %p2796_p9 }
 0xbeb   : > { %p2794_p6 = pneg %p2793_p7 }
 0xbec   : > { %p2800_p2 = por %p2799_p1, %p2798_p13 }
 0xbee   : > { %p2801_p0 = pnand %p2800_p2, %p2794_p6 }
 0xbf0   : > { %2804 = shalt.err (!%p2801_p0)
}
 0xbf1   : > { %2314 = dma.vmem_to_hbm [thread:$0]  (%p3606_p3), %s3515_s14, 128, %s3513_s0, %s1912_s21  }
 0xbf2 PF: > { %s1937_s11 = sand.u32 1, %s2851_s17   ;;  %p3607_p4 = scmp.ne.s32.totalorder %s3590_s25, 0 }
 0xbf3   : > { %p3608_p10 = scmp.ge.s32.totalorder %s2863_s20, 2  ;;  %s1938_s23 = scalar_lea.sflag [#allocation4], %s1937_s11 }
 0xbf5   : > { %p2352_p11 = pnand %p3608_p10, %p3607_p4 }
 0xbf7   : > { %2846 = dma.done.wait (!%p2352_p11), %s1938_s23, 128  }
 0xbf8   : > { %2848 = vsyncadd (!%p2352_p11), %s1938_s23, 4294967168  ;;  %p29_p8 = scmp.ge.s32.totalorder %s3211_s27, 4   ;;  %s3609_s17 = smov %s2855_s18 }
 0xbf9   : > { %s3610_s18 = smov %s2859_s19  ;;  %s3611_s19 = smov %s3222_s30 }
 0xbfa   : > { %s3612_s20 = smov %s3211_s27  ;;  %31 = sbr.rel (!%p29_p8) target bundleno = 15 (0xf), region = 149 }
 0xc01   :  { %1943 = vsyncpa [#allocation3], 1 }
 0xc02   :  { %1945 = vsyncpa [#allocation3 + $0x1], 1 }
 0xc03   :  { %1946 = vsyncpa [#allocation6], 1 }
 0xc04   :  { %1947 = vsyncpa [#allocation9], 1 }
 0xc05   :  { %1948 = vsyncpa [#allocation12], 1 }
 0xc06   :  { %1949 = vsyncpa [#allocation15], 1 }
 0xc07   :  { %1950 = vsyncpa [#allocation18], 1 }
 0xc08   :  { %1951 = vsyncpa [#allocation4], 1 }
 0xc09   :  { %1953 = vsyncpa [#allocation4 + $0x1], 1 }

// kernel: tpu_custom_call.1
= control target key start
LH: loop header
LB: loop body
LE: loop exit
PB: predicated region body
PF: predicated region fallthrough
CT: control target
= control target key end

     0   :  { %s3558_s0 = inlined_call_operand.hbm [shape: f32[2,8,32], index: 0, kind: input, shape index: {}]   ;;  %s3559_s1 = inlined_call_operand.hbm [shape: bf16[32,96], index: 1, kind: input, shape index: {}]   ;;  %s3560_s2 = inlined_call_operand.hbm [shape: bf16[32,32], index: 2, kind: input, shape index: {}]   ;;  %s3561_s3 = inlined_call_operand.hbm [shape: bf16[32,64], index: 3, kind: input, shape index: {}]   ;;  %s3562_s4 = inlined_call_operand.hbm [shape: f32[1,64], index: 4, kind: input, shape index: {}]   ;;  %s3563_s5 = inlined_call_operand.hbm [shape: bf16[64,32], index: 5, kind: input, shape index: {}]   ;;  %s3564_s6 = inlined_call_operand.hbm [shape: f32[1,32], index: 6, kind: input, shape index: {}]   ;;  %s3565_s7 = inlined_call_operand.hbm [shape: f32[1,32], index: 7, kind: input, shape index: {}]   ;;  %s3566_s8 = inlined_call_operand.hbm [shape: f32[1,32], index: 8, kind: input, shape index: {}]   ;;  %s3567_s9 = inlined_call_operand.hbm [shape: f32[1,32], index: 9, kind: input, shape index: {}]   ;;  %s3568_s10 = inlined_call_operand.hbm [shape: f32[1,32], index: 10, kind: input, shape index: {}]   ;;  %s3569_s11 = inlined_call_operand.hbm [shape: f32[2,8,32], index: 11, kind: output, shape index: {}]  }
   0x1   :  { %3576 = sst [smem:[#allocation29_spill]] %s3558_s0 }
   0x2   :  { %3577 = sst [smem:[#allocation30_spill]] %s3559_s1 }
   0x3   :  { %3578 = sst [smem:[#allocation31_spill]] %s3560_s2 }
   0x4   :  { %3579 = sst [smem:[#allocation32_spill]] %s3569_s11 }
   0x5   :  { %16 = vsyncpa [#allocation3], 0 }
   0x6   :  { %18 = vsyncpa [#allocation3 + $0x1], 0 }
   0x7   :  { %19 = vsyncpa [#allocation6], 0 }
   0x8   :  { %20 = vsyncpa [#allocation9], 0 }
   0x9   :  { %21 = vsyncpa [#allocation12], 0 }
   0xa   :  { %22 = vsyncpa [#allocation15], 0 }
   0xb   :  { %23 = vsyncpa [#allocation18], 0 }
   0xc   :  { %24 = vsyncpa [#allocation4], 0 }
   0xd   :  { %26 = vsyncpa [#allocation4 + $0x1], 0  ;;  %s2951_s17 = smov 0   ;;  %s2953_s18 = smov 0  }
   0xe   :  { %s2955_s19 = smov 0   ;;  %s2957_s20 = smov 0  }
   0xf LB: > { %s2865_s21 = smov [#allocation5]   ;;  %s2972_s23 = sadd.s32 4294967295, %s2863_s20   ;;  %s2863_s20 = sphi %s2957_s20, %s3612_s20   ;;  %s2859_s19 = sphi %s2955_s19, %s3611_s19   ;;  %s2855_s18 = sphi %s2953_s18, %s3610_s18   ;;  %s2851_s17 = sphi %s2951_s17, %s3609_s17  }
  0x10   : > { %s311_s22 = sshll.u32 %s2865_s21, 4  ;;  %p2091_p0 = scmp.ge.s32.totalorder %s2863_s20, 1  ;;  %s2977_s22 = int_to_ptr.vmem [resolvable:$true] %s311_s22 }
  0x11   : > { %p3573_p1 = scmp.eq.s32.totalorder %s2972_s23, 0  ;;  %p299_p2 = scmp.lt.s32.totalorder %s2863_s20, 3 }
  0x12   : > { %s2866_s25 = smov [#allocation8]   ;;  %s2867_s28 = smov [#allocation11]  }
  0x13   : > { %p2979_p3 = pnand %p2091_p0, %p299_p2  ;;  %s337_s26 = sshll.u32 %s2866_s25, 4  ;;  %s2992_s26 = int_to_ptr.vmem [resolvable:$true] %s337_s26 }
  0x14   : > { %s361_s29 = sshll.u32 %s2867_s28, 4  ;;  %s3583_s1 = sld [smem:[#allocation30_spill]]  ;;  %s2994_s29 = int_to_ptr.vmem [resolvable:$true] %s361_s29 }
  0x15   : > { %s3580_s24 = scalar_select %p2979_p3, 1, 0 }
  0x16   : > { %p2316_p5 = pneg %p2979_p3 }
  0x17   : > { %3581 = sst [smem:[#allocation28_spill]] %s3580_s24 }
  0x18   : > { %p2988_p6 = pnand %p2316_p5, %p3573_p1 }
  0x1a   : > { %s2467_s13 = scalar_lea.hbm %s3583_s1, 256  ;;  %p3004_p8 = pneg %p2988_p6 }
  0x1b   : > { %p2468_p7 = scmp.ne.s32.totalorder %s3583_s1, %s2467_s13  ;;  %p2474_p11 = scmp.lt.u32.totalorder %s2467_s13, %s3583_s1 }
  0x1d   : > { %p2470_p9 = pnand %p3004_p8, %p2468_p7 }
  0x1f   : > { %p2471_p10 = pneg %p2470_p9 }
  0x21   : > { %p2476_p12 = pnand %p2474_p11, %p2471_p10 }
  0x23   : > { %2479 = shalt.err (!%p2476_p12)
}
  0x24   : > { %s2480_s28 = scalar_lea.vmem %s2977_s22, 256  ;;  %p2488_p5 = scmp.lt.s32.totalorder %s2977_s22, %s2977_s22 }
  0x25   : > { %p2481_p13 = scmp.ne.s32.totalorder %s2977_s22, %s2480_s28  ;;  %p2489_p4 = scmp.lt.s32.totalorder %s2480_s28, %s2480_s28 }
  0x27   : > { %p2483_p0 = pnand %p2481_p13, %p3004_p8  ;;  %p2490_p7 = por %p2489_p4, %p2488_p5 }
  0x29   : > { %p2484_p2 = pneg %p2483_p0 }
  0x2b   : > { %p2491_p9 = pnand %p2490_p7, %p2484_p2 }
  0x2d   : > { %2494 = shalt.err (!%p2491_p9)
}
  0x2e   : > { %s2868_s30 = smov 64   ;;  %s2869_s12 = smov 4  }
  0x2f   : > { %2319 = dma.hbm_to_vmem [thread:$0]  (!%p2988_p6), %s3583_s1, 256, %s2977_s22, [#allocation6], %s2868_s30, %s2868_s30, %s2869_s12  }
  0x30   : > { %s2495_s25 = scalar_lea.hbm %s3561_s3, 256 }
  0x31   : > { %p2496_p4 = scmp.ne.s32.totalorder %s3561_s3, %s2495_s25  ;;  %p2502_p12 = scmp.lt.u32.totalorder %s2495_s25, %s3561_s3 }
  0x33   : > { %p2498_p10 = pnand %p2496_p4, %p3004_p8 }
  0x35   : > { %p2499_p11 = pneg %p2498_p10 }
  0x37   : > { %p2504_p13 = pnand %p2502_p12, %p2499_p11 }
  0x39   : > { %2507 = shalt.err (!%p2504_p13)
}
  0x3a   : > { %s2508_s22 = scalar_lea.vmem %s2992_s26, 256  ;;  %p2516_p7 = scmp.lt.s32.totalorder %s2992_s26, %s2992_s26 }
  0x3b   : > { %p2509_p0 = scmp.ne.s32.totalorder %s2992_s26, %s2508_s22  ;;  %p2517_p9 = scmp.lt.s32.totalorder %s2508_s22, %s2508_s22 }
  0x3d   : > { %p2511_p2 = pnand %p2509_p0, %p3004_p8  ;;  %p2518_p4 = por %p2517_p9, %p2516_p7 }
  0x3f   : > { %p2512_p5 = pneg %p2511_p2 }
  0x41   : > { %p2519_p10 = pnand %p2518_p4, %p2512_p5 }
  0x43   : > { %2522 = shalt.err (!%p2519_p10)
}
  0x44   : > { %2325 = dma.hbm_to_vmem [thread:$0]  (!%p2988_p6), %s3561_s3, 256, %s2992_s26, [#allocation9], %s2868_s30, %s2868_s30, %s2869_s12  }
  0x45   : > { %s2523_s14 = scalar_lea.hbm %s3563_s5, 512 }
  0x46   : > { %p2524_p11 = scmp.ne.s32.totalorder %s3563_s5, %s2523_s14  ;;  %p2530_p0 = scmp.lt.u32.totalorder %s2523_s14, %s3563_s5 }
  0x48   : > { %p2526_p12 = pnand %p2524_p11, %p3004_p8 }
  0x4a   : > { %p2527_p13 = pneg %p2526_p12 }
  0x4c   : > { %p2532_p2 = pnand %p2530_p0, %p2527_p13 }
  0x4e   : > { %2535 = shalt.err (!%p2532_p2)
}
  0x4f   : > { %s2536_s26 = scalar_lea.vmem %s2994_s29, 512  ;;  %p2544_p4 = scmp.lt.s32.totalorder %s2994_s29, %s2994_s29 }
  0x50   : > { %p2537_p5 = scmp.ne.s32.totalorder %s2994_s29, %s2536_s26  ;;  %p2545_p10 = scmp.lt.s32.totalorder %s2536_s26, %s2536_s26 }
  0x52   : > { %p2539_p7 = pnand %p2537_p5, %p3004_p8  ;;  %p2546_p11 = por %p2545_p10, %p2544_p4 }
  0x54   : > { %p2540_p9 = pneg %p2539_p7 }
  0x56   : > { %p2547_p12 = pnand %p2546_p11, %p2540_p9 }
  0x58   : > { %2550 = shalt.err (!%p2547_p12)
}
  0x59   : > { %2331 = dma.hbm_to_vmem [thread:$0]  (!%p2988_p6), %s3563_s5, 512, %s2994_s29, [#allocation12], %s2868_s30, %s2868_s30, %s2869_s12  }
  0x5a   : > { %s2870_s11 = smov [#allocation14]   ;;  %s2871_s13 = smov [#allocation17]  }
  0x5b   : > { %s386_s24 = sshll.u32 %s2870_s11, 4  ;;  %s408_s14 = sshll.u32 %s2871_s13, 4  ;;  %s387_s24 = int_to_ptr.vmem [resolvable:$true] %s386_s24  ;;  %s409_s14 = int_to_ptr.vmem [resolvable:$true] %s408_s14 }
  0x5c   : > { %s2551_s25 = scalar_lea.hbm %s3565_s7, 16 }
  0x5d   : > { %p2552_p13 = scmp.ne.s32.totalorder %s3565_s7, %s2551_s25  ;;  %p2558_p5 = scmp.lt.u32.totalorder %s2551_s25, %s3565_s7 }
  0x5f   : > { %p2554_p0 = pnand %p2552_p13, %p3004_p8 }
  0x61   : > { %p2555_p2 = pneg %p2554_p0 }
  0x63   : > { %p2560_p7 = pnand %p2558_p5, %p2555_p2 }
  0x65   : > { %2563 = shalt.err (!%p2560_p7)
}
  0x66   : > { %s2564_s29 = scalar_lea.vmem %s387_s24, 16  ;;  %s2571_s0 = scalar_lea.vmem %s387_s24, 32 }
  0x67   : > { %p2565_p9 = scmp.ne.s32.totalorder %s387_s24, %s2564_s29  ;;  %p2572_p11 = scmp.lt.s32.totalorder %s387_s24, %s387_s24 }
  0x68   : > { %p2573_p12 = scmp.lt.s32.totalorder %s2571_s0, %s2564_s29 }
  0x69   : > { %p2567_p4 = pnand %p2565_p9, %p3004_p8 }
  0x6a   : > { %p2574_p1 = por %p2573_p12, %p2572_p11 }
  0x6b   : > { %p2568_p10 = pneg %p2567_p4 }
  0x6d   : > { %p2575_p3 = pnand %p2574_p1, %p2568_p10 }
  0x6f   : > { %2578 = shalt.err (!%p2575_p3)
}
  0x70   : > { %2337 = dma.hbm_to_vmem [thread:$0]  (!%p2988_p6), %s3565_s7, 16, %s387_s24, [#allocation15]  }
  0x71   : > { %s2579_s21 = scalar_lea.hbm %s3567_s9, 16 }
  0x72   : > { %p2580_p13 = scmp.ne.s32.totalorder %s3567_s9, %s2579_s21  ;;  %p2586_p3 = scmp.lt.u32.totalorder %s2579_s21, %s3567_s9 }
  0x74   : > { %p2582_p0 = pnand %p2580_p13, %p3004_p8 }
  0x76   : > { %p2583_p1 = pneg %p2582_p0 }
  0x78   : > { %p2588_p2 = pnand %p2586_p3, %p2583_p1 }
  0x7a   : > { %2591 = shalt.err (!%p2588_p2)
}
  0x7b   : > { %s2592_s29 = scalar_lea.vmem %s409_s14, 16  ;;  %s2599_s24 = scalar_lea.vmem %s409_s14, 32 }
  0x7c   : > { %p2593_p5 = scmp.ne.s32.totalorder %s409_s14, %s2592_s29  ;;  %p2600_p4 = scmp.lt.s32.totalorder %s409_s14, %s409_s14 }
  0x7d   : > { %p2601_p10 = scmp.lt.s32.totalorder %s2599_s24, %s2592_s29 }
  0x7e   : > { %p2595_p7 = pnand %p2593_p5, %p3004_p8 }
  0x7f   : > { %p2602_p11 = por %p2601_p10, %p2600_p4 }
  0x80   : > { %p2596_p9 = pneg %p2595_p7 }
  0x82   : > { %p2603_p12 = pnand %p2602_p11, %p2596_p9 }
  0x84   : > { %2606 = shalt.err (!%p2603_p12)
}
  0x85   : > { %2343 = dma.hbm_to_vmem [thread:$0]  (!%p2988_p6), %s3567_s9, 16, %s409_s14, [#allocation18]  }
  0x86   : > { %s2872_s13 = smov [#allocation7]   ;;  %s2873_s15 = smov [#allocation10]  }
  0x87   : > { %s324_s1 = sshll.u32 %s2872_s13, 4  ;;  %s351_s21 = sshll.u32 %s2873_s15, 4  ;;  %s325_s1 = int_to_ptr.vmem [resolvable:$true] %s324_s1  ;;  %s352_s21 = int_to_ptr.vmem [resolvable:$true] %s351_s21 }
  0x88   : > { %s3585_s2 = sld [smem:[#allocation31_spill]] }
  0x8e   : > { %s2607_s26 = scalar_lea.hbm %s3585_s2, 256 }
  0x8f   : > { %p2608_p13 = scmp.ne.s32.totalorder %s3585_s2, %s2607_s26  ;;  %p2614_p3 = scmp.lt.u32.totalorder %s2607_s26, %s3585_s2 }
  0x91   : > { %p2610_p0 = pnand %p2608_p13, %p3004_p8 }
  0x93   : > { %p2611_p1 = pneg %p2610_p0 }
  0x95   : > { %p2616_p2 = pnand %p2614_p3, %p2611_p1 }
  0x97   : > { %2619 = shalt.err (!%p2616_p2)
}
  0x98   : > { %s2620_s14 = scalar_lea.vmem %s325_s1, 256  ;;  %p2628_p4 = scmp.lt.s32.totalorder %s325_s1, %s325_s1 }
  0x99   : > { %p2621_p5 = scmp.ne.s32.totalorder %s325_s1, %s2620_s14  ;;  %p2629_p10 = scmp.lt.s32.totalorder %s2620_s14, %s2620_s14 }
  0x9b   : > { %p2623_p7 = pnand %p2621_p5, %p3004_p8  ;;  %p2630_p11 = por %p2629_p10, %p2628_p4 }
  0x9d   : > { %p2624_p9 = pneg %p2623_p7 }
  0x9f   : > { %p2631_p12 = pnand %p2630_p11, %p2624_p9 }
  0xa1   : > { %2634 = shalt.err (!%p2631_p12)
}
  0xa2   : > { %2322 = dma.hbm_to_vmem [thread:$0]  (!%p2988_p6), %s3585_s2, 256, %s325_s1, [#allocation6], %s2868_s30, %s2868_s30, %s2869_s12  }
  0xa3   : > { %s2635_s28 = scalar_lea.hbm %s3562_s4, 16 }
  0xa4   : > { %p2636_p13 = scmp.ne.s32.totalorder %s3562_s4, %s2635_s28  ;;  %p2642_p3 = scmp.lt.u32.totalorder %s2635_s28, %s3562_s4 }
  0xa6   : > { %p2638_p0 = pnand %p2636_p13, %p3004_p8 }
  0xa8   : > { %p2639_p1 = pneg %p2638_p0 }
  0xaa   : > { %p2644_p2 = pnand %p2642_p3, %p2639_p1 }
  0xac   : > { %2647 = shalt.err (!%p2644_p2)
}
  0xad   : > { %s2648_s0 = scalar_lea.vmem %s352_s21, 16  ;;  %s2655_s30 = scalar_lea.vmem %s352_s21, 32 }
  0xae   : > { %p2649_p5 = scmp.ne.s32.totalorder %s352_s21, %s2648_s0  ;;  %p2656_p4 = scmp.lt.s32.totalorder %s352_s21, %s352_s21 }
  0xaf   : > { %p2657_p10 = scmp.lt.s32.totalorder %s2655_s30, %s2648_s0 }
  0xb0   : > { %p2651_p7 = pnand %p2649_p5, %p3004_p8 }
  0xb1   : > { %p2658_p11 = por %p2657_p10, %p2656_p4 }
  0xb2   : > { %p2652_p9 = pneg %p2651_p7 }
  0xb4   : > { %p2659_p12 = pnand %p2658_p11, %p2652_p9 }
  0xb6   : > { %2662 = shalt.err (!%p2659_p12)
}
  0xb7   : > { %2328 = dma.hbm_to_vmem [thread:$0]  (!%p2988_p6), %s3562_s4, 16, %s352_s21, [#allocation9]  }
  0xb8   : > { %s2874_s14 = smov [#allocation13]   ;;  %s2875_s13 = smov [#allocation16]  }
  0xb9   : > { %s375_s11 = sshll.u32 %s2874_s14, 4  ;;  %s397_s15 = sshll.u32 %s2875_s13, 4  ;;  %s376_s11 = int_to_ptr.vmem [resolvable:$true] %s375_s11  ;;  %s398_s15 = int_to_ptr.vmem [resolvable:$true] %s397_s15 }
  0xba   : > { %s2663_s26 = scalar_lea.hbm %s3564_s6, 16 }
  0xbb   : > { %p2664_p13 = scmp.ne.s32.totalorder %s3564_s6, %s2663_s26  ;;  %p2670_p3 = scmp.lt.u32.totalorder %s2663_s26, %s3564_s6 }
  0xbd   : > { %p2666_p0 = pnand %p2664_p13, %p3004_p8 }
  0xbf   : > { %p2667_p1 = pneg %p2666_p0 }
  0xc1   : > { %p2672_p2 = pnand %p2670_p3, %p2667_p1 }
  0xc3   : > { %2675 = shalt.err (!%p2672_p2)
}
  0xc4   : > { %s2676_s21 = scalar_lea.vmem %s376_s11, 16  ;;  %s2683_s30 = scalar_lea.vmem %s376_s11, 32 }
  0xc5   : > { %p2677_p5 = scmp.ne.s32.totalorder %s376_s11, %s2676_s21  ;;  %p2684_p4 = scmp.lt.s32.totalorder %s376_s11, %s376_s11 }
  0xc6   : > { %p2685_p10 = scmp.lt.s32.totalorder %s2683_s30, %s2676_s21 }
  0xc7   : > { %p2679_p7 = pnand %p2677_p5, %p3004_p8 }
  0xc8   : > { %p2686_p11 = por %p2685_p10, %p2684_p4 }
  0xc9   : > { %p2680_p9 = pneg %p2679_p7 }
  0xcb   : > { %p2687_p12 = pnand %p2686_p11, %p2680_p9 }
  0xcd   : > { %2690 = shalt.err (!%p2687_p12)
}
  0xce   : > { %2334 = dma.hbm_to_vmem [thread:$0]  (!%p2988_p6), %s3564_s6, 16, %s376_s11, [#allocation12]  }
  0xcf   : > { %s2691_s25 = scalar_lea.hbm %s3566_s8, 16 }
  0xd0   : > { %p2692_p13 = scmp.ne.s32.totalorder %s3566_s8, %s2691_s25  ;;  %p2698_p3 = scmp.lt.u32.totalorder %s2691_s25, %s3566_s8 }
  0xd2   : > { %p2694_p0 = pnand %p2692_p13, %p3004_p8 }
  0xd4   : > { %p2695_p1 = pneg %p2694_p0 }
  0xd6   : > { %p2700_p2 = pnand %p2698_p3, %p2695_p1 }
  0xd8   : > { %2703 = shalt.err (!%p2700_p2)
}
  0xd9   : > { %s2704_s24 = scalar_lea.vmem %s398_s15, 16  ;;  %s2711_s11 = scalar_lea.vmem %s398_s15, 32 }
  0xda   : > { %p2705_p5 = scmp.ne.s32.totalorder %s398_s15, %s2704_s24  ;;  %p2712_p4 = scmp.lt.s32.totalorder %s398_s15, %s398_s15 }
  0xdb   : > { %p2713_p10 = scmp.lt.s32.totalorder %s2711_s11, %s2704_s24 }
  0xdc   : > { %p2707_p7 = pnand %p2705_p5, %p3004_p8 }
  0xdd   : > { %p2714_p11 = por %p2713_p10, %p2712_p4 }
  0xde   : > { %p2708_p9 = pneg %p2707_p7 }
  0xe0   : > { %p2715_p12 = pnand %p2714_p11, %p2708_p9 }
  0xe2   : > { %2718 = shalt.err (!%p2715_p12)
}
  0xe3   : > { %2340 = dma.hbm_to_vmem [thread:$0]  (!%p2988_p6), %s3566_s8, 16, %s398_s15, [#allocation15]  }
  0xe4   : > { %s2876_s30 = smov [#allocation19]   ;;  %s2719_s13 = scalar_lea.hbm %s3568_s10, 16 }
  0xe5   : > { %s419_s12 = sshll.u32 %s2876_s30, 4  ;;  %p2720_p13 = scmp.ne.s32.totalorder %s3568_s10, %s2719_s13  ;;  %s420_s12 = int_to_ptr.vmem [resolvable:$true] %s419_s12 }
  0xe6   : > { %p2726_p3 = scmp.lt.u32.totalorder %s2719_s13, %s3568_s10 }
  0xe7   : > { %p2722_p0 = pnand %p2720_p13, %p3004_p8 }
  0xe9   : > { %p2723_p1 = pneg %p2722_p0 }
  0xeb   : > { %p2728_p2 = pnand %p2726_p3, %p2723_p1 }
  0xed   : > { %2731 = shalt.err (!%p2728_p2)
}
  0xee   : > { %s2732_s15 = scalar_lea.vmem %s420_s12, 16  ;;  %s2739_s29 = scalar_lea.vmem %s420_s12, 32 }
  0xef   : > { %p2733_p5 = scmp.ne.s32.totalorder %s420_s12, %s2732_s15  ;;  %p2740_p4 = scmp.lt.s32.totalorder %s420_s12, %s420_s12 }
  0xf0   : > { %p2741_p10 = scmp.lt.s32.totalorder %s2739_s29, %s2732_s15 }
  0xf1   : > { %p2735_p7 = pnand %p2733_p5, %p3004_p8 }
  0xf2   : > { %p2742_p11 = por %p2741_p10, %p2740_p4 }
  0xf3   : > { %p2736_p9 = pneg %p2735_p7 }
  0xf5   : > { %p2743_p12 = pnand %p2742_p11, %p2736_p9 }
  0xf7   : > { %2746 = shalt.err (!%p2743_p12)
}
  0xf8   : > { %2346 = dma.hbm_to_vmem [thread:$0]  (!%p2988_p6), %s3568_s10, 16, %s420_s12, [#allocation18]  }
  0xf9   : > { %s2090_s16 = sadd.s32 4294967294, %s2863_s20   ;;  %s3211_s27 = sadd.s32 1, %s2863_s20  }
  0xfa   : > { %s36_s0 = ssub.s32 %s2863_s20, %s3211_s27  ;;  %s39_s21 = sadd.s32 1, %s2859_s19 }
  0xfb   : > { %p37_p8 = scmp.eq.s32.totalorder %s36_s0, 0  ;;  %p46_p13 = scmp.ne.s32.totalorder %s2859_s19, %s2855_s18 }
  0xfc   : > { %p47_p0 = scmp.eq.s32.totalorder %s2863_s20, 0  ;;  %p52_p1 = scmp.ne.s32.totalorder %s2855_s18, %s2851_s17 }
  0xfd   : > { %s3222_s30 = scalar_select %p37_p8, %s2859_s19, %s39_s21  }
  0xfe   : > { %p3224_p3 = por %p47_p0, %p46_p13  ;;  %p3587_p2 = scmp.eq.s32.totalorder %s2972_s23, 0 }
  0xff   : > { %p286_p5 = scmp.eq.s32.totalorder %s2972_s23, 1  ;;  %p292_p7 = scmp.eq.s32.totalorder %s2090_s16, 1 }
 0x100   : > { %p3230_p6 = por %p3587_p2, %p52_p1  ;;  %p2365_p9 = scmp.lt.s32.totalorder %s2863_s20, 2 }
 0x101   : > { %s430_s14 = sand.u32 1, %s2859_s19   ;;  %p3237_p4 = por %p286_p5, %p46_p13 }
 0x102   : > { %p3241_p10 = por %p292_p7, %p52_p1  ;;  %s2103_s28 = sshll.u32 %s430_s14, 3 }
 0x103   : > { %s3589_s13 = scalar_select %p3237_p4, 1, 0 }
 0x104   : > { %s3590_s25 = scalar_select %p3241_p10, 1, 0 }
 0x105   : > { %s2104_s26 = sshll.u32 %s2863_s20, 7  ;;  %s3591_s29 = sld [smem:[#allocation29_spill]] }
 0x106   : > { %s434_s11 = scalar_lea.vmem [#allocation2], %s2103_s28  ;;  %p3255_p11 = pnand %p2365_p9, %p3224_p3 }
 0x107   : > { %s441_s16 = sshll.u32 %s434_s11, 4  ;;  %s431_s21 = scalar_lea.sflag [#allocation3], %s430_s14  ;;  %s3251_s16 = int_to_ptr.vmem [resolvable:$true] %s441_s16 }
 0x108   : > { %p2749_p8 = pneg %p3255_p11 }
 0x10b   : > { %s3249_s24 = scalar_lea.hbm %s3591_s29, %s2104_s26  ;;  %s2752_s22 = scalar_lea.hbm %s3591_s29, 256 }
 0x10c   : > { %s2747_s2 = scalar_lea.hbm %s3249_s24, 128  ;;  %p2753_p1 = scmp.lt.u32.totalorder %s3249_s24, %s3591_s29 }
 0x10d   : > { %p2748_p12 = scmp.ne.s32.totalorder %s3249_s24, %s2747_s2  ;;  %p2754_p3 = scmp.lt.u32.totalorder %s2752_s22, %s2747_s2 }
 0x10e   : > { %p2756_p5 = scmp.lt.u32.totalorder %s2747_s2, %s3249_s24 }
 0x10f   : > { %p2750_p13 = pnand %p2749_p8, %p2748_p12  ;;  %p2755_p2 = por %p2754_p3, %p2753_p1 }
 0x111   : > { %p2751_p0 = pneg %p2750_p13  ;;  %p2757_p7 = por %p2756_p5, %p2755_p2 }
 0x113   : > { %p2758_p9 = pnand %p2757_p7, %p2751_p0 }
 0x115   : > { %2761 = shalt.err (!%p2758_p9)
}
 0x116   : > { %s2762_s14 = scalar_lea.vmem %s3251_s16, 128  ;;  %s2877_s11 = smov [#allocation2]  }
 0x117   : > { %p2763_p12 = scmp.ne.s32.totalorder %s3251_s16, %s2762_s14  ;;  %s2767_s28 = sshll.u32 %s2877_s11, 4  ;;  %s2768_s28 = int_to_ptr.vmem [resolvable:$false] %s2767_s28 }
 0x118   : > { %s2769_s26 = scalar_lea.vmem %s2768_s28, 256  ;;  %p2770_p4 = scmp.lt.s32.totalorder %s3251_s16, %s2768_s28 }
 0x119   : > { %p2765_p13 = pnand %p2763_p12, %p2749_p8  ;;  %p2771_p1 = scmp.lt.s32.totalorder %s2769_s26, %s2762_s14 }
 0x11b   : > { %p2766_p10 = pneg %p2765_p13  ;;  %p2772_p3 = por %p2771_p1, %p2770_p4 }
 0x11d   : > { %p2773_p2 = pnand %p2772_p3, %p2766_p10 }
 0x11f   : > { %2776 = shalt.err (!%p2773_p2)
}
 0x120   : > { %2350 = dma.hbm_to_vmem [thread:$0]  (!%p3255_p11), %s3249_s24, 128, %s3251_s16, %s431_s21  }
 0x121   : > { %s3593_s2 = sld [smem:[#allocation28_spill]] }
 0x127   : > { %p3594_p0 = scmp.ne.s32.totalorder %s3593_s2, 0 }
 0x128   : > { %s3287_s22 = sand.u32 (!%p3594_p0), 1, %s2855_s18  }
 0x129   : > { %450 = sbr.rel (%p3594_p0) target bundleno = 3058 (0xbf2), region = 64  ;;  %s2106_s1 = sshll.u32 (!%p3594_p0), %s3287_s22, 3 }
 0x12a   : > { %s453_s15 = scalar_lea.sflag (!%p3594_p0), [#allocation3], %s3287_s22  ;;  %s456_s14 = scalar_lea.vmem (!%p3594_p0), [#allocation2], %s2106_s1 }
 0x130   : > { %2822 = dma.done.wait (%p3230_p6), %s453_s15, 128  }
 0x131   : > { %2824 = vsyncadd (%p3230_p6), %s453_s15, 4294967168  ;;  %p3595_p4 = scmp.eq.s32.totalorder %s2972_s23, 0 }
 0x133   : > { %2826 = dma.done.wait (%p3595_p4), [#allocation6], 512   ;;  %p3596_p10 = pmov %p3595_p4 }
 0x134   : > { %p3597_p11 = pmov %p3595_p4 }
 0x135   : > { %2828 = vsyncadd (%p3596_p10), [#allocation6], 4294966784 }
 0x136   : > { %2830 = dma.done.wait (%p3597_p11), [#allocation9], 272   ;;  %p3598_p8 = pmov %p3595_p4 }
 0x137   : > { %p3599_p5 = pmov %p3595_p4 }
 0x138   : > { %2832 = vsyncadd (%p3598_p8), [#allocation9], 4294967024 }
 0x139   : > { %2834 = dma.done.wait (%p3599_p5), [#allocation12], 528   ;;  %p3600_p7 = pmov %p3595_p4 }
 0x13a   : > { %p3601_p6 = pmov %p3595_p4 }
 0x13b   : > { %2836 = vsyncadd (%p3600_p7), [#allocation12], 4294966768 }
 0x13c   : > { %2838 = dma.done.wait (%p3601_p6), [#allocation15], 32   ;;  %p3602_p9 = pmov %p3595_p4 }
 0x13d   : > { %p3603_p12 = pmov %p3595_p4 }
 0x13e   : > { %2840 = vsyncadd (%p3602_p9), [#allocation15], 4294967264 }
 0x13f   : > { %2842 = dma.done.wait (%p3603_p12), [#allocation18], 32   ;;  %p3604_p13 = pmov %p3595_p4 }
 0x140   : > { %v2878_v0 = vmov 0.0   ;;  %vm2879_vm0 = vmmov 0   ;;  %v2433_v1 = vld [vmem:[#allocation5] sm:$0xff]   ;;  %v2434_v2 = vld [vmem:[#allocation5 + $0x8] sm:$0xff]   ;;  %v3323_v3 = vld [vmem:[%s456_s14] sm:$0xff]  ;;  %vm554_vm1 = vcmask 261120   ;;  %v613_v14 = vlaneseq }
 0x141   : > { %2844 = vsyncadd (%p3604_p13), [#allocation18], 4294967264  ;;  %2188 = vmatprep.subr.bf16.mxu0 %v2878_v0  ;;  %2192 = vmatprep.mubr.msk.bf16.mxu0 %vm2879_vm0, %v2878_v0  ;;  %v537_v4 = vpack.c.bf16 %v3323_v3, %v3323_v3  ;;  %s2880_s12 = smov 104   ;;  %s2881_s24 = smov 120   ;;  %v2884_v12 = vmov 1983009808  }
 0x142   : > { %2196 = vmatprep.subr.bf16.mxu1 %v2878_v0  ;;  %2198 = vmatprep.mubr.msk.bf16.mxu1 %vm2879_vm0, %v2878_v0  ;;  %s2882_s16 = smov 96   ;;  %s2883_s0 = smov 112   ;;  %v611_v13 = vunpack.c.l.s4 %v2884_v12  ;;  %v614_v16 = vshrl.u32 %v613_v14, 7  ;;  %v2885_v17 = vmov 1934713408   ;;  %vm1052_vm2 = vcmask 64512  }
 0x143   : > { %2189 = vmatpush3.bf16.msra.mxu0 %v2433_v1  ;;  %v643_v18 = vunpack.c.l.s4 %v2885_v17  ;;  %s2886_s21 = smov 64   ;;  %vm1288_vm3 = vcmask 1043456   ;;  %s2887_s11 = smov 16   ;;  %vm1619_vm4 = vcmask 130048   ;;  %vm1621_vm5 = vcmask 195584  }
 0x144   : > { %2190 = vmatprep.subr.bf16.mxu0 %v2878_v0  ;;  %v612_v15 = vunpack.c.0.s8 %v611_v13  ;;  %s2888_s28 = smov 8   ;;  %s2889_s26 = smov 24   ;;  %vm1829_vm8 = vcmask 523264  }
 0x145   : > { %v644_v24 = vunpack.c.0.s8 %v643_v18  ;;  %s2155_s2 = sshll.u32 %s2972_s23, 7  ;;  %s534_s15 = scalar_lea.vmem [#allocation20], %s2106_s1 }
 0x146   : > { %v3351_v21 = vsub.s32 %v612_v15, %v614_v16  ;;  %s1925_s14 = sshll.u32 %s534_s15, 4  ;;  %p3606_p3 = scmp.ne.s32.totalorder %s3589_s13, 0  ;;  %s3515_s14 = int_to_ptr.vmem [resolvable:$true] %s1925_s14 }
 0x147   : > { %2191 = vmatpush3.bf16.msra.mxu0 %v2434_v2  ;;  %v3361_v31 = vsub.s32 %v644_v24, %v614_v16  ;;  %s2890_s23 = smov [#allocation20]  }
 0x148   : > { %2202 = vmatprep.subr.bf16.mxu0 %v2878_v0  ;;  %s2781_s1 = sshll.u32 %s2890_s23, 4  ;;  %s2782_s1 = int_to_ptr.vmem [resolvable:$false] %s2781_s1 }
 0x149   : > { %p2784_p4 = scmp.lt.s32.totalorder %s3515_s14, %s2782_s1 }
 0x14a   : > { %2193 = vmatmul.mubr.msk.bf16.vlgmr.msra.gmra.mrb[0].mxu0 %vm554_vm1, %v537_v4 }
 0x14b   : > { %2204 = vmatprep.mubr.msk.bf16.mxu0 %vm2879_vm0, %v2878_v0 }
 0x21d   : > { %v3332_v5 = vpop.f32.mrb[0].mxu0 }
 0x21e   : > { %605 = vrot.lane.b32.xlu1 %v3332_v5, %s2880_s12  ;;  %599 = vrot.lane.b32.xlu0 %v3332_v5, %s2881_s24  ;;  %v2194_v6 = vpop.f32.mrb[1].mxu0 }
 0x21f   : > { %v595_v7 = vpop.f32.mrb[2].mxu0 }
 0x220   : > { %v2195_v8 = vpop.f32.mrb[3].mxu0 }
 0x222   : > { %748 = vrot.lane.b32.xlu1 %v3332_v5, %s2882_s16  ;;  %602 = vrot.lane.b32.xlu0 %v3332_v5, %s2883_s0 }
 0x290   : > { %v3338_v9 = vpop.permute.xlu0 %599  ;;  %v3341_v10 = vpop.permute.xlu1 %605 }
 0x291   : > { %750 = vrot.lane.b32.xlu0 %v3338_v9, %s2882_s16  ;;  %v624_v22 = vcombine.low %v3338_v9, %v3341_v10  ;;  %v625_v23 = vcombine.high %v3338_v9, %v3341_v10 }
 0x293   : > { %v632_v27 = vrot.slane %v624_v22, %v3351_v21  ;;  %v639_v28 = vrot.slane %v625_v23, %v3351_v21 }
 0x294   : > { %v3343_v11 = vpop.permute.xlu0 %602  ;;  %v749_v29 = vpop.permute.xlu1 %748 }
 0x295   : > { %754 = vrot.lane.b32.xlu0 %v3341_v10, %s2882_s16  ;;  %752 = vrot.lane.b32.xlu1 %v3343_v11, %s2882_s16  ;;  %v608_v19 = vcombine.low %v3332_v5, %v3343_v11  ;;  %v609_v20 = vcombine.high %v3332_v5, %v3343_v11  ;;  %s3605_s16 = sld [smem:[#allocation32_spill]] }
 0x297   : > { %v616_v25 = vrot.slane %v608_v19, %v3351_v21  ;;  %v623_v26 = vrot.slane %v609_v20, %v3351_v21 }
 0x299   : > { %v640_v32 = vcombine.low %v616_v25, %v632_v27  ;;  %v641_v33 = vcombine.high %v616_v25, %v632_v27  ;;  %v656_v34 = vcombine.low %v623_v26, %v639_v28  ;;  %v657_v35 = vcombine.high %v623_v26, %v639_v28 }
 0x29b   : > { %v648_v42 = vrot.slane %v640_v32, %v3361_v31  ;;  %v655_v43 = vrot.slane %v641_v33, %v3361_v31  ;;  %v664_v44 = vrot.slane %v656_v34, %v3361_v31  ;;  %v671_v45 = vrot.slane %v657_v35, %v3361_v31  ;;  %s3513_s0 = scalar_lea.hbm %s3605_s16, %s2155_s2 }
 0x29d   : > { %v676_v54 = vcombine.low %v648_v42, %v655_v43  ;;  %v2121_v55 = vcombine.high %v648_v42, %v655_v43  ;;  %v692_v56 = vcombine.low %v664_v44, %v671_v45  ;;  %v2122_v57 = vcombine.high %v664_v44, %v671_v45 }
 0x29f   : > { %v683_v4 = vrot.slane %v676_v54, %v3351_v21  ;;  %v691_v6 = vrot.slane %v2121_v55, %v3351_v21  ;;  %v699_v7 = vrot.slane %v692_v56, %v3351_v21  ;;  %v707_v8 = vrot.slane %v2122_v57, %v3351_v21 }
 0x2a1   : > { %v708_v23 = vcombine.low %v683_v4, %v691_v6  ;;  %v724_v24 = vcombine.low %v699_v7, %v707_v8 }
 0x2a3   : > { %v716_v32 = vrot.slane %v708_v23, %v3361_v31  ;;  %v732_v33 = vrot.slane %v724_v24, %v3361_v31 }
 0x303   : > { %v751_v30 = vpop.permute.xlu0 %750 }
 0x307   : > { %v753_v36 = vpop.permute.xlu1 %752  ;;  %v755_v37 = vpop.permute.xlu0 %754 }
 0x308   : > { %v760_v38 = vcombine.low %v749_v29, %v753_v36  ;;  %v761_v39 = vcombine.high %v749_v29, %v753_v36  ;;  %v776_v40 = vcombine.low %v751_v30, %v755_v37  ;;  %v777_v41 = vcombine.high %v751_v30, %v755_v37 }
 0x30a   : > { %v768_v46 = vrot.slane %v760_v38, %v3351_v21  ;;  %v775_v47 = vrot.slane %v761_v39, %v3351_v21  ;;  %v784_v48 = vrot.slane %v776_v40, %v3351_v21  ;;  %v791_v49 = vrot.slane %v777_v41, %v3351_v21 }
 0x30b   : > { %v709_v38 = vcombine.high %v683_v4, %v691_v6  ;;  %v725_v39 = vcombine.high %v699_v7, %v707_v8  ;;  %v740_v40 = vcombine.low %v716_v32, %v732_v33  ;;  %v741_v41 = vcombine.high %v716_v32, %v732_v33 }
 0x30c   : > { %v792_v50 = vcombine.low %v768_v46, %v784_v48  ;;  %v793_v51 = vcombine.high %v768_v46, %v784_v48  ;;  %v808_v52 = vcombine.low %v775_v47, %v791_v49  ;;  %v809_v53 = vcombine.high %v775_v47, %v791_v49 }
 0x30d   : > { %v744_v44 = vpack.c.bf16 %v740_v40, %v740_v40  ;;  %v745_v45 = vpack.c.bf16 %v741_v41, %v741_v41  ;;  %v723_v46 = vrot.slane %v709_v38, %v3361_v31  ;;  %v739_v47 = vrot.slane %v725_v39, %v3361_v31 }
 0x30e   : > { %v800_v58 = vrot.slane %v792_v50, %v3361_v31  ;;  %v807_v59 = vrot.slane %v793_v51, %v3361_v31  ;;  %v816_v60 = vrot.slane %v808_v52, %v3361_v31  ;;  %v823_v61 = vrot.slane %v809_v53, %v3361_v31 }
 0x30f   : > { %v742_v50 = vcombine.low %v723_v46, %v739_v47  ;;  %v743_v51 = vcombine.high %v723_v46, %v739_v47 }
 0x310   : > { %v828_v62 = vcombine.low %v800_v58, %v807_v59  ;;  %v2123_v63 = vcombine.high %v800_v58, %v807_v59  ;;  %v844_v1 = vcombine.low %v816_v60, %v823_v61  ;;  %v2124_v2 = vcombine.high %v816_v60, %v823_v61 }
 0x311   : > { %v746_v52 = vpack.c.bf16 %v742_v50, %v742_v50  ;;  %v747_v53 = vpack.c.bf16 %v743_v51, %v743_v51 }
 0x312   : > { %v835_v12 = vrot.slane %v828_v62, %v3351_v21  ;;  %v843_v13 = vrot.slane %v2123_v63, %v3351_v21  ;;  %v851_v14 = vrot.slane %v844_v1, %v3351_v21  ;;  %v859_v15 = vrot.slane %v2124_v2, %v3351_v21 }
 0x314   : > { %v860_v16 = vcombine.low %v835_v12, %v843_v13  ;;  %v876_v17 = vcombine.low %v851_v14, %v859_v15  ;;  %v861_v18 = vcombine.high %v835_v12, %v843_v13  ;;  %v877_v19 = vcombine.high %v851_v14, %v859_v15 }
 0x316   : > { %v868_v20 = vrot.slane %v860_v16, %v3361_v31  ;;  %v884_v22 = vrot.slane %v876_v17, %v3361_v31  ;;  %v875_v27 = vrot.slane %v861_v18, %v3361_v31  ;;  %v891_v28 = vrot.slane %v877_v19, %v3361_v31 }
 0x318   : > { %v892_v25 = vcombine.low %v868_v20, %v884_v22  ;;  %v893_v26 = vcombine.high %v868_v20, %v884_v22  ;;  %v894_v36 = vcombine.low %v875_v27, %v891_v28  ;;  %v895_v37 = vcombine.high %v875_v27, %v891_v28 }
 0x31a   : > { %v896_v29 = vpack.c.bf16 %v892_v25, %v892_v25  ;;  %v897_v30 = vpack.c.bf16 %v893_v26, %v893_v26  ;;  %v898_v42 = vpack.c.bf16 %v894_v36, %v894_v36  ;;  %v899_v43 = vpack.c.bf16 %v895_v37, %v895_v37 }
 0x31c   : > { %v1057_v34 = vsel %vm1052_vm2, %v896_v29, 0  ;;  %v1103_v35 = vsel %vm1052_vm2, %v897_v30, 0  ;;  %v1149_v48 = vsel %vm1052_vm2, %v898_v42, 0  ;;  %v1195_v49 = vsel %vm1052_vm2, %v899_v43, 0 }
 0x31d   : > { %2197 = vmatpush3.bf16.xpose.msra.mxu1 %v1057_v34  ;;  %2203 = vmatpush3.bf16.xpose.msra.mxu0 %v1103_v35 }
 0x31e   : > { %2208 = vmatprep.subr.bf16.mxu1 %v2878_v0  ;;  %2214 = vmatprep.subr.bf16.mxu0 %v2878_v0 }
 0x324   : > { %2199 = vmatmul.mubr.msk.bf16.vlgmr.msra.gmra.mrb[0].mxu1 %vm1052_vm2, %v744_v44  ;;  %2205 = vmatmul.mubr.msk.bf16.vlgmr.msra.gmra.mrb[4].mxu0 %vm1052_vm2, %v745_v45 }
 0x325   : > { %2209 = vmatpush3.bf16.xpose.msra.mxu1 %v1149_v48  ;;  %2215 = vmatpush3.bf16.xpose.msra.mxu0 %v1195_v49 }
 0x326   : > { %2210 = vmatprep.mubr.msk.bf16.mxu1 %vm2879_vm0, %v2878_v0  ;;  %2216 = vmatprep.mubr.msk.bf16.mxu0 %vm2879_vm0, %v2878_v0 }
 0x327   : > { %2220 = vmatprep.subr.bf16.mxu1 %v2878_v0  ;;  %2226 = vmatprep.subr.bf16.mxu0 %v2878_v0 }
 0x32c   : > { %2211 = vmatmul.mubr.msk.bf16.vlgmr.msra.gmra.mrb[4].mxu1 %vm1052_vm2, %v746_v52  ;;  %2217 = vmatmul.mubr.msk.bf16.vlgmr.msra.gmra.mrb[8].mxu0 %vm1052_vm2, %v747_v53 }
 0x32d   : > { %2222 = vmatprep.mubr.msk.bf16.mxu1 %vm2879_vm0, %v2878_v0  ;;  %2228 = vmatprep.mubr.msk.bf16.mxu0 %vm2879_vm0, %v2878_v0 }
 0x3f7   : > { %v1093_v54 = vpop.f32.mrb[0].mxu1  ;;  %v1139_v55 = vpop.f32.mrb[4].mxu0 }
 0x3f8   : > { %v2200_v56 = vpop.f32.mrb[1].mxu1  ;;  %v2206_v57 = vpop.f32.mrb[5].mxu0  ;;  %v1237_v58 = vsel %vm1052_vm2, %v1093_v54, -inf  ;;  %v1240_v59 = vsel %vm1052_vm2, %v1139_v55, -inf }
 0x3f9   : > { %1238 = vmax.xlane.f32.xlu1 %v1237_v58  ;;  %v1096_v60 = vpop.f32.mrb[2].mxu1  ;;  %1241 = vmax.xlane.f32.xlu0 %v1240_v59  ;;  %v1142_v61 = vpop.f32.mrb[6].mxu0 }
 0x3fa   : > { %v2201_v62 = vpop.f32.mrb[3].mxu1  ;;  %v2207_v63 = vpop.f32.mrb[7].mxu0 }
 0x3ff   : > { %v1185_v1 = vpop.f32.mrb[4].mxu1  ;;  %v1231_v2 = vpop.f32.mrb[8].mxu0 }
 0x400   : > { %v2212_v4 = vpop.f32.mrb[5].mxu1  ;;  %v2218_v6 = vpop.f32.mrb[9].mxu0  ;;  %v1243_v7 = vsel %vm1052_vm2, %v1185_v1, -inf  ;;  %v1246_v8 = vsel %vm1052_vm2, %v1231_v2, -inf }
 0x401   : > { %v1188_v12 = vpop.f32.mrb[6].mxu1  ;;  %1244 = vmax.xlane.f32.xlu0 %v1243_v7  ;;  %1247 = vmax.xlane.f32.xlu1 %v1246_v8  ;;  %v1234_v13 = vpop.f32.mrb[10].mxu0 }
 0x402   : > { %v2213_v14 = vpop.f32.mrb[7].mxu1  ;;  %v2219_v15 = vpop.f32.mrb[11].mxu0 }
 0x412   : > { %902 = vrot.lane.b32.xlu1 %v3338_v9, %s2886_s21 }
 0x417   : > { %900 = vrot.lane.b32.xlu0 %v3332_v5, %s2886_s21 }
 0x486   : > { %v1239_v16 = vpop.xlane.xlu1 %1238  ;;  %v1242_v17 = vpop.xlane.xlu0 %1241 }
 0x487   : > { %v1249_v18 = vsub.f32 %v1093_v54, %v1239_v16  ;;  %v1250_v19 = vsub.f32 %v1139_v55, %v1242_v17 }
 0x489   : > { %v1253_v20 = vmul.f32 1.442695, %v1249_v18  ;;  %v1255_v22 = vmul.f32 1.442695, %v1250_v19 }
 0x48b   : > { %2443 = vpow2.f32 %v1253_v20 }
 0x48c   : > { %2445 = vpow2.f32 %v1255_v22 }
 0x48e   : > { %v1248_v5 = vpop.xlane.xlu1 %1247  ;;  %v1245_v26 = vpop.xlane.xlu0 %1244 }
 0x48f   : > { %v1252_v27 = vsub.f32 %v1231_v2, %v1248_v5  ;;  %v1251_v28 = vsub.f32 %v1185_v1, %v1245_v26 }
 0x491   : > { %v1259_v29 = vmul.f32 1.442695, %v1252_v27  ;;  %v1257_v30 = vmul.f32 1.442695, %v1251_v28 }
 0x492   : > { %v903_v35 = vpop.permute.xlu1 %902 }
 0x493   : > { %2447 = vpow2.f32 %v1259_v29 }
 0x494   : > { %2449 = vpow2.f32 %v1257_v30 }
 0x495   : > { %v3417_v23 = vpop.eup %2443 }
 0x496   : > { %v3419_v24 = vpop.eup %2445  ;;  %v1261_v25 = vsel %vm1052_vm2, %v3417_v23, 0.0 }
 0x497   : > { %1262 = vadd.xlane.f32.xlu0 %v1261_v25  ;;  %v1264_v9 = vsel %vm1052_vm2, %v3419_v24, 0.0 }
 0x498   : > { %1265 = vadd.xlane.f32.xlu1 %v1264_v9 }
 0x49d   : > { %v3427_v32 = vpop.eup %2447 }
 0x49e   : > { %v3429_v33 = vpop.eup %2449  ;;  %v1270_v34 = vsel %vm1052_vm2, %v3427_v32, 0.0 }
 0x4a9   : > { %904 = vrot.lane.b32.xlu1 %v3343_v11, %s2886_s21  ;;  %v1267_v11 = vsel %vm1052_vm2, %v3429_v33, 0.0 }
 0x4ad   : > { %906 = vrot.lane.b32.xlu0 %v3341_v10, %s2886_s21  ;;  %v901_v10 = vpop.permute.xlu0 %900  ;;  %s1912_s21 = scalar_lea.sflag [#allocation4], %s3287_s22 }
 0x4cc   : > { %1271 = vadd.xlane.f32.xlu0 %v1270_v34 }
 0x4cd   : > { %1268 = vadd.xlane.f32.xlu1 %v1267_v11 }
 0x524   : > { %v1263_v36 = vpop.xlane.xlu0 %1262 }
 0x525   : > { %v1266_v37 = vpop.xlane.xlu1 %1265  ;;  %2451 = vrcp.f32 %v1263_v36 }
 0x526   : > { %2453 = vrcp.f32 %v1266_v37 }
 0x528   : > { %v907_v38 = vpop.permute.xlu0 %906 }
 0x529   : > { %v928_v39 = vcombine.low %v903_v35, %v907_v38  ;;  %v929_v40 = vcombine.high %v903_v35, %v907_v38  ;;  %v905_v41 = vpop.permute.xlu1 %904 }
 0x52a   : > { %v912_v42 = vcombine.low %v901_v10, %v905_v41  ;;  %v913_v43 = vcombine.high %v901_v10, %v905_v41 }
 0x52b   : > { %v936_v44 = vrot.slane %v928_v39, %v3351_v21  ;;  %v943_v45 = vrot.slane %v929_v40, %v3351_v21 }
 0x52c   : > { %v920_v46 = vrot.slane %v912_v42, %v3351_v21  ;;  %v927_v47 = vrot.slane %v913_v43, %v3351_v21 }
 0x52e   : > { %v944_v48 = vcombine.low %v920_v46, %v936_v44  ;;  %v945_v49 = vcombine.high %v920_v46, %v936_v44  ;;  %v960_v50 = vcombine.low %v927_v47, %v943_v45  ;;  %v961_v51 = vcombine.high %v927_v47, %v943_v45 }
 0x52f   : > { %v2452_v12 = vpop.eup %2451 }
 0x530   : > { %v952_v52 = vrot.slane %v944_v48, %v3361_v31  ;;  %v959_v53 = vrot.slane %v945_v49, %v3361_v31  ;;  %v968_v54 = vrot.slane %v960_v50, %v3361_v31  ;;  %v975_v55 = vrot.slane %v961_v51, %v3361_v31  ;;  %v2454_v15 = vpop.eup %2453 }
 0x531   : > { %v1277_v20 = vmul.f32 %v2452_v12, %v3417_v23  ;;  %v1278_v22 = vmul.f32 %v2454_v15, %v3419_v24 }
 0x532   : > { %v980_v56 = vcombine.low %v952_v52, %v959_v53  ;;  %v2125_v57 = vcombine.high %v952_v52, %v959_v53  ;;  %v996_v58 = vcombine.low %v968_v54, %v975_v55  ;;  %v2126_v59 = vcombine.high %v968_v54, %v975_v55 }
 0x533   : > { %v1281_v29 = vpack.c.bf16 %v1277_v20, %v1277_v20  ;;  %v1282_v30 = vpack.c.bf16 %v1278_v22, %v1278_v22 }
 0x534   : > { %v987_v60 = vrot.slane %v980_v56, %v3351_v21  ;;  %v995_v61 = vrot.slane %v2125_v57, %v3351_v21  ;;  %v1003_v62 = vrot.slane %v996_v58, %v3351_v21  ;;  %v1011_v63 = vrot.slane %v2126_v59, %v3351_v21 }
 0x536   : > { %v1012_v1 = vcombine.low %v987_v60, %v995_v61  ;;  %v1013_v2 = vcombine.high %v987_v60, %v995_v61  ;;  %v1028_v4 = vcombine.low %v1003_v62, %v1011_v63  ;;  %v1029_v6 = vcombine.high %v1003_v62, %v1011_v63 }
 0x538   : > { %v1020_v7 = vrot.slane %v1012_v1, %v3361_v31  ;;  %v1027_v8 = vrot.slane %v1013_v2, %v3361_v31  ;;  %v1036_v13 = vrot.slane %v1028_v4, %v3361_v31  ;;  %v1043_v14 = vrot.slane %v1029_v6, %v3361_v31  ;;  %v2435_v4 = vld [vmem:[#allocation7] sm:$0xff]  }
 0x53a   : > { %v1044_v16 = vcombine.low %v1020_v7, %v1036_v13  ;;  %v1045_v17 = vcombine.high %v1020_v7, %v1036_v13  ;;  %v1046_v18 = vcombine.low %v1027_v8, %v1043_v14  ;;  %v1047_v19 = vcombine.high %v1027_v8, %v1043_v14 }
 0x53c   : > { %v1048_v25 = vpack.c.bf16 %v1044_v16, %v1044_v16  ;;  %v1049_v9 = vpack.c.bf16 %v1045_v17, %v1045_v17  ;;  %v1050_v27 = vpack.c.bf16 %v1046_v18, %v1046_v18  ;;  %v1051_v28 = vpack.c.bf16 %v1047_v19, %v1047_v19  ;;  %v2436_v17 = vld [vmem:[#allocation7 + $0x8] sm:$0xff]  }
 0x53e   : > { %v1290_v5 = vsel %vm1288_vm3, %v1048_v25, 0  ;;  %v1336_v26 = vsel %vm1288_vm3, %v1049_v9, 0  ;;  %v1382_v23 = vsel %vm1288_vm3, %v1050_v27, 0  ;;  %v1428_v24 = vsel %vm1288_vm3, %v1051_v28, 0 }
 0x53f   : > { %2221 = vmatpush3.bf16.msra.mxu1 %v1290_v5  ;;  %2227 = vmatpush3.bf16.msra.mxu0 %v1336_v26 }
 0x540   : > { %2232 = vmatprep.subr.bf16.mxu1 %v2878_v0  ;;  %2238 = vmatprep.subr.bf16.mxu0 %v2878_v0 }
 0x542   : > { %2223 = vmatmul.mubr.msk.bf16.vlgmr.msra.gmra.mrb[8].mxu1 %vm1052_vm2, %v1281_v29  ;;  %2229 = vmatmul.mubr.msk.bf16.vlgmr.msra.gmra.mrb[12].mxu0 %vm1052_vm2, %v1282_v30 }
 0x543   : > { %2233 = vmatpush3.bf16.msra.mxu1 %v1382_v23  ;;  %2239 = vmatpush3.bf16.msra.mxu0 %v1428_v24 }
 0x544   : > { %2234 = vmatprep.mubr.msk.bf16.mxu1 %vm2879_vm0, %v2878_v0  ;;  %2240 = vmatprep.mubr.msk.bf16.mxu0 %vm2879_vm0, %v2878_v0 }
 0x545   : > { %2244 = vmatprep.subr.bf16.mxu1 %v2878_v0  ;;  %2252 = vmatprep.subr.bf16.mxu0 %v2878_v0 }
 0x559   : > { %v1272_v34 = vpop.xlane.xlu0 %1271 }
 0x55a   : > { %2455 = vrcp.f32 %v1272_v34  ;;  %v1269_v11 = vpop.xlane.xlu1 %1268 }
 0x55b   : > { %2457 = vrcp.f32 %v1269_v11 }
 0x564   : > { %v2456_v10 = vpop.eup %2455 }
 0x565   : > { %v2458_v35 = vpop.eup %2457  ;;  %v1280_v36 = vmul.f32 %v2456_v10, %v3427_v32 }
 0x566   : > { %v1279_v37 = vmul.f32 %v2458_v35, %v3429_v33 }
 0x567   : > { %v1284_v38 = vpack.c.bf16 %v1280_v36, %v1280_v36 }
 0x568   : > { %v1283_v39 = vpack.c.bf16 %v1279_v37, %v1279_v37 }
 0x569   : > { %2241 = vmatmul.mubr.msk.bf16.vlgmr.msra.gmra.mrb[16].mxu0 %vm1052_vm2, %v1284_v38 }
 0x56a   : > { %2235 = vmatmul.mubr.msk.bf16.vlgmr.msra.gmra.mrb[12].mxu1 %vm1052_vm2, %v1283_v39  ;;  %2256 = vmatprep.mubr.msk.bf16.mxu0 %vm2879_vm0, %v2878_v0 }
 0x56b   : > { %2248 = vmatprep.mubr.msk.bf16.mxu1 %vm2879_vm0, %v2878_v0  ;;  %2245 = vmatpush3.bf16.msra.mxu1 %v2435_v4  ;;  %v2441_v4 = vld [vmem:[#allocation11 + $0x10] sm:$0xff]  }
 0x56c   : > { %2246 = vmatprep.subr.bf16.mxu1 %v2878_v0 }
 0x56f   : > { %2247 = vmatpush3.bf16.msra.mxu1 %v2436_v17 }
 0x570   : > { %2260 = vmatprep.subr.bf16.mxu1 %v2878_v0 }
 0x615   : > { %v1326_v40 = vpop.f32.mrb[8].mxu1  ;;  %v1372_v41 = vpop.f32.mrb[12].mxu0 }
 0x616   : > { %v2224_v42 = vpop.f32.mrb[9].mxu1  ;;  %v2230_v43 = vpop.f32.mrb[13].mxu0 }
 0x617   : > { %v1329_v44 = vpop.f32.mrb[10].mxu1  ;;  %v1375_v32 = vpop.f32.mrb[14].mxu0 }
 0x618   : > { %v2225_v45 = vpop.f32.mrb[11].mxu1  ;;  %v2231_v33 = vpop.f32.mrb[15].mxu0 }
 0x63c   : > { %v1464_v46 = vpop.f32.mrb[16].mxu0 }
 0x63d   : > { %v1418_v47 = vpop.f32.mrb[12].mxu1  ;;  %v1486_v48 = vcombine.low %v1372_v41, %v1464_v46  ;;  %v1487_v49 = vcombine.high %v1372_v41, %v1464_v46  ;;  %v2242_v50 = vpop.f32.mrb[17].mxu0 }
 0x63e   : > { %v1470_v51 = vcombine.low %v1326_v40, %v1418_v47  ;;  %v1471_v52 = vcombine.high %v1326_v40, %v1418_v47  ;;  %v2236_v53 = vpop.f32.mrb[13].mxu1  ;;  %v1467_v54 = vpop.f32.mrb[18].mxu0  ;;  %v2440_v50 = vld [vmem:[#allocation11 + $0x8] sm:$0xff]  }
 0x63f   : > { %v1494_v55 = vrot.slane %v1486_v48, %v3351_v21  ;;  %v1501_v56 = vrot.slane %v1487_v49, %v3351_v21  ;;  %v1421_v57 = vpop.f32.mrb[14].mxu1  ;;  %v2243_v58 = vpop.f32.mrb[19].mxu0  ;;  %v2437_v48 = vld [vmem:[#allocation8] sm:$0xff]   ;;  %v2438_v49 = vld [vmem:[#allocation8 + $0x8] sm:$0xff]  }
 0x640   : > { %v1478_v59 = vrot.slane %v1470_v51, %v3351_v21  ;;  %v1485_v60 = vrot.slane %v1471_v52, %v3351_v21  ;;  %v2237_v61 = vpop.f32.mrb[15].mxu1  ;;  %2253 = vmatpush3.bf16.msra.mxu0 %v2437_v48 }
 0x641   : > { %2254 = vmatprep.subr.bf16.mxu0 %v2878_v0 }
 0x642   : > { %v1502_v62 = vcombine.low %v1478_v59, %v1494_v55  ;;  %v1503_v63 = vcombine.high %v1478_v59, %v1494_v55  ;;  %v1518_v1 = vcombine.low %v1485_v60, %v1501_v56  ;;  %v1519_v2 = vcombine.high %v1485_v60, %v1501_v56  ;;  %v2140_v60 = vld [vmem:[#allocation14] ss:$0 sm:$0xff] }
 0x644   : > { %v1510_v6 = vrot.slane %v1502_v62, %v3361_v31  ;;  %v1517_v7 = vrot.slane %v1503_v63, %v3361_v31  ;;  %v1526_v8 = vrot.slane %v1518_v1, %v3361_v31  ;;  %v1533_v12 = vrot.slane %v1519_v2, %v3361_v31  ;;  %2255 = vmatpush3.bf16.msra.mxu0 %v2438_v49  ;;  %v2141_v62 = vld [vmem:[#allocation16] ss:$0 sm:$0xff] }
 0x646   : > { %v1538_v13 = vcombine.low %v1510_v6, %v1517_v7  ;;  %v2135_v14 = vcombine.high %v1510_v6, %v1517_v7  ;;  %v1554_v15 = vcombine.low %v1526_v8, %v1533_v12  ;;  %v2136_v16 = vcombine.high %v1526_v8, %v1533_v12  ;;  %v2442_v6 = vld [vmem:[#allocation11 + $0x18] sm:$0xff]  }
 0x647   : > { %v2142_v7 = vld [vmem:[#allocation10] ss:$0 sm:$0xff] }
 0x648   : > { %v1545_v18 = vrot.slane %v1538_v13, %v3351_v21  ;;  %v1553_v19 = vrot.slane %v2135_v14, %v3351_v21  ;;  %v1561_v20 = vrot.slane %v1554_v15, %v3351_v21  ;;  %v1569_v22 = vrot.slane %v2136_v16, %v3351_v21 }
 0x64a   : > { %v1571_v25 = vcombine.high %v1545_v18, %v1553_v19  ;;  %v1587_v9 = vcombine.high %v1561_v20, %v1569_v22  ;;  %v1570_v5 = vcombine.low %v1545_v18, %v1553_v19  ;;  %v1586_v26 = vcombine.low %v1561_v20, %v1569_v22  ;;  %v2146_v18 = vld [vmem:[#allocation13] ss:$0 sm:$0xff] }
 0x64c   : > { %v1585_v27 = vrot.slane %v1571_v25, %v3361_v31  ;;  %v1601_v28 = vrot.slane %v1587_v9, %v3361_v31  ;;  %v1578_v29 = vrot.slane %v1570_v5, %v3361_v31  ;;  %v1594_v30 = vrot.slane %v1586_v26, %v3361_v31 }
 0x64e   : > { %v1604_v23 = vcombine.low %v1585_v27, %v1601_v28  ;;  %v1603_v24 = vcombine.high %v1578_v29, %v1594_v30  ;;  %v1605_v34 = vcombine.high %v1585_v27, %v1601_v28  ;;  %v1602_v11 = vcombine.low %v1578_v29, %v1594_v30 }
 0x650   : > { %1611 = vrot.lane.b32.xlu1 %v1604_v23, %s2887_s11  ;;  %1607 = vrot.lane.b32.xlu0 %v1603_v24, %s2888_s28  ;;  %s2777_s11 = scalar_lea.vmem %s3515_s14, 128  ;;  %s2783_s28 = scalar_lea.vmem %s2782_s1, 256 }
 0x651   : > { %p2778_p1 = scmp.ne.s32.totalorder %s3515_s14, %s2777_s11  ;;  %p2785_p10 = scmp.lt.s32.totalorder %s2783_s28, %s2777_s11 }
 0x653   : > { %p2779_p2 = pnand %p2778_p1, %p3606_p3  ;;  %p2786_p11 = por %p2785_p10, %p2784_p4 }
 0x654   : > { %1615 = vrot.lane.b32.xlu1 %v1605_v34, %s2889_s26 }
 0x655   : > { %p2780_p0 = pneg %p2779_p2 }
 0x657   : > { %p2787_p8 = pnand %p2786_p11, %p2780_p0 }
 0x6c2   : > { %v1612_v21 = vpop.permute.xlu1 %1611  ;;  %v1608_v10 = vpop.permute.xlu0 %1607 }
 0x6c3   : > { %v1618_v35 = vsel %vm1052_vm2, %v1602_v11, %v1608_v10 }
 0x6c4   : > { %v1620_v37 = vsel %vm1619_vm4, %v1618_v35, %v1612_v21 }
 0x6c6   : > { %v1616_v36 = vpop.permute.xlu1 %1615 }
 0x6c7   : > { %v1622_v38 = vsel %vm1621_vm5, %v1620_v37, %v1616_v36 }
 0x6c8   : > { %v1623_v31 = vpack.c.bf16 %v1622_v38, %v1622_v38  ;;  %v2152_v38 = vld [vmem:[#allocation17] ss:$0 sm:$0xff] }
 0x6ca   : > { %2249 = vmatmul.mubr.msk.bf16.vlgmr.msra.gmra.mrb[16].mxu1 %vm554_vm1, %v1623_v31 }
 0x6cb   : > { %2268 = vmatprep.mubr.msk.bf16.mxu1 %vm2879_vm0, %v2878_v0 }
 0x79d   : > { %v1677_v39 = vpop.f32.mrb[16].mxu1 }
 0x79e   : > { %v1683_v40 = vadd.f32 %v1677_v39, %v3323_v3  ;;  %v2250_v41 = vpop.f32.mrb[17].mxu1  ;;  %v2439_v3 = vld [vmem:[#allocation11] sm:$0xff]   ;;  %v2153_v39 = vld [vmem:[#allocation19] ss:$0 sm:$0xff] }
 0x79f   : > { %v1680_v42 = vpop.f32.mrb[18].mxu1  ;;  %2261 = vmatpush3.bf16.msra.mxu1 %v2439_v3 }
 0x7a0   : > { %v2251_v43 = vpop.f32.mrb[19].mxu1  ;;  %v1686_v44 = vsel %vm554_vm1, %v1683_v40, 0.0  ;;  %2262 = vmatprep.subr.bf16.mxu1 %v2878_v0 }
 0x7a1   : > { %1687 = vadd.xlane.f32.xlu0 %v1686_v44 }
 0x7a3   : > { %2263 = vmatpush3.bf16.msra.mxu1 %v2440_v50 }
 0x7a4   : > { %2264 = vmatprep.subr.bf16.mxu1 %v2878_v0 }
 0x7a7   : > { %2265 = vmatpush3.bf16.msra.mxu1 %v2441_v4 }
 0x7a8   : > { %2266 = vmatprep.subr.bf16.mxu1 %v2878_v0 }
 0x7ab   : > { %2267 = vmatpush3.bf16.msra.mxu1 %v2442_v6 }
 0x82e   : > { %v1688_v32 = vpop.xlane.xlu0 %1687 }
 0x82f   : > { %v1690_v45 = vmul.f32 0.03125, %v1688_v32 }
 0x831   : > { %v1691_v33 = vsub.f32 %v1683_v40, %v1690_v45 }
 0x833   : > { %v1692_v46 = vmul.f32 %v1691_v33, %v1691_v33 }
 0x835   : > { %v1693_v47 = vsel %vm554_vm1, %v1692_v46, 0.0 }
 0x836   : > { %1694 = vadd.xlane.f32.xlu1 %v1693_v47 }
 0x8c3   : > { %v1695_v51 = vpop.xlane.xlu1 %1694 }
 0x8c4   : > { %v1696_v52 = vmul.f32 0.032258064, %v1695_v51 }
 0x8c6   : > { %2459 = vrsqrt.f32 %v1696_v52  ;;  %vm1699_vm6 = vcmp.eq.f32.partialorder %v1696_v52, inf  ;;  %v1702_v55 = vand.u32 2147483648, %v1696_v52  ;;  %vm1701_vm7 = vcmp.eq.f32.partialorder %v1696_v52, 0.0 }
 0x8d0   : > { %v2460_v53 = vpop.eup %2459 }
 0x8d1   : > { %v1698_v54 = vmul.f32 %v2460_v53, %v1696_v52 }
 0x8d3   : > { %v1700_v56 = vsel %vm1699_vm6, %v1696_v52, %v1698_v54 }
 0x8d4   : > { %v1703_v57 = vsel %vm1701_vm7, %v1702_v55, %v1700_v56 }
 0x8d5   : > { %v1704_v58 = vadd.f32 1e-06, %v1703_v57 }
 0x8d7   : > { %2461 = vrcp.f32 %v1704_v58 }
 0x8e1   : > { %v2462_v59 = vpop.eup %2461 }
 0x8e2   : > { %v1706_v61 = vmul.f32 %v2462_v59, %v1691_v33 }
 0x8e4   : > { %v1713_v63 = vmul.f32 %v2140_v60, %v1706_v61 }
 0x8e6   : > { %v1720_v1 = vadd.f32 %v2141_v62, %v1713_v63 }
 0x8e8   : > { %v1721_v2 = vpack.c.bf16 %v1720_v1, %v1720_v1 }
 0x8ea   : > { %2257 = vmatmul.mubr.msk.bf16.vlgmr.msra.gmra.mrb[20].mxu0 %vm554_vm1, %v1721_v2 }
 0x9bd   : > { %v1782_v8 = vpop.f32.mrb[20].mxu0 }
 0x9be   : > { %v1783_v12 = vadd.f32 %v2142_v7, %v1782_v8  ;;  %v2258_v13 = vpop.f32.mrb[21].mxu0 }
 0x9bf   : > { %v1785_v14 = vpop.f32.mrb[22].mxu0 }
 0x9c0   : > { %v1788_v15 = vmax.f32 %v1783_v12, 0.0  ;;  %v2259_v16 = vpop.f32.mrb[23].mxu0 }
 0x9c2   : > { %v1789_v17 = vpack.c.bf16 %v1788_v15, %v1788_v15 }
 0x9c4   : > { %2269 = vmatmul.mubr.msk.bf16.vlgmr.msra.gmra.mrb[20].mxu1 %vm1829_vm8, %v1789_v17 }
 0xa97   : > { %v1867_v19 = vpop.f32.mrb[20].mxu1 }
 0xa98   : > { %v1868_v20 = vadd.f32 %v2146_v18, %v1867_v19  ;;  %v2270_v22 = vpop.f32.mrb[21].mxu1 }
 0xa99   : > { %v1870_v25 = vpop.f32.mrb[22].mxu1 }
 0xa9a   : > { %v2271_v9 = vpop.f32.mrb[23].mxu1  ;;  %v1873_v5 = vadd.f32 %v1868_v20, %v1720_v1 }
 0xa9c   : > { %v1876_v0 = vsel %vm554_vm1, %v1873_v5, 0.0 }
 0xa9d   : > { %1877 = vadd.xlane.f32.xlu0 %v1876_v0 }
 0xb2a   : > { %v1878_v26 = vpop.xlane.xlu0 %1877 }
 0xb2b   : > { %v1879_v27 = vmul.f32 0.03125, %v1878_v26 }
 0xb2d   : > { %v1880_v28 = vsub.f32 %v1873_v5, %v1879_v27 }
 0xb2f   : > { %v1881_v29 = vmul.f32 %v1880_v28, %v1880_v28 }
 0xb31   : > { %v1882_v30 = vsel %vm554_vm1, %v1881_v29, 0.0 }
 0xb32   : > { %1883 = vadd.xlane.f32.xlu0 %v1882_v30 }
 0xbbf   : > { %v1884_v23 = vpop.xlane.xlu0 %1883 }
 0xbc0   : > { %v1885_v24 = vmul.f32 0.032258064, %v1884_v23 }
 0xbc2   : > { %2463 = vrsqrt.f32 %v1885_v24  ;;  %vm1888_vm9 = vcmp.eq.f32.partialorder %v1885_v24, inf  ;;  %v1891_v21 = vand.u32 2147483648, %v1885_v24  ;;  %vm1890_vm10 = vcmp.eq.f32.partialorder %v1885_v24, 0.0 }
 0xbcc   : > { %v2464_v34 = vpop.eup %2463 }
 0xbcd   : > { %v1887_v11 = vmul.f32 %v2464_v34, %v1885_v24 }
 0xbcf   : > { %v1889_v10 = vsel %vm1888_vm9, %v1885_v24, %v1887_v11 }
 0xbd0   : > { %v1892_v35 = vsel %vm1890_vm10, %v1891_v21, %v1889_v10 }
 0xbd1   : > { %v1893_v36 = vadd.f32 1e-06, %v1892_v35 }
 0xbd3   : > { %2465 = vrcp.f32 %v1893_v36 }
 0xbdd   : > { %v2466_v37 = vpop.eup %2465 }
 0xbde   : > { %v1895_v31 = vmul.f32 %v2466_v37, %v1880_v28 }
 0xbe0   : > { %v1902_v40 = vmul.f32 %v2152_v38, %v1895_v31 }
 0xbe2   : > { %v1909_v41 = vadd.f32 %v2153_v39, %v1902_v40 }
 0xbe4   : > { %1910 = vst.msk [vmem:[%s534_s15] sm:$0xff] %vm554_vm1, %v1909_v41 }
 0xbe5   : > { %2790 = shalt.err (!%p2787_p8)
}
 0xbe6   : > { %s2791_s22 = scalar_lea.hbm %s3513_s0, 128  ;;  %s2795_s15 = scalar_lea.hbm %s3605_s16, 256 }
 0xbe7   : > { %p2792_p5 = scmp.ne.s32.totalorder %s3513_s0, %s2791_s22  ;;  %p2796_p9 = scmp.lt.u32.totalorder %s3513_s0, %s3605_s16 }
 0xbe8   : > { %p2797_p12 = scmp.lt.u32.totalorder %s2795_s15, %s2791_s22  ;;  %p2799_p1 = scmp.lt.u32.totalorder %s2791_s22, %s3513_s0 }
 0xbe9   : > { %p2793_p7 = pnand %p2792_p5, %p3606_p3 }
 0xbea   : > { %p2798_p13 = por %p2797_p12, %p2796_p9 }
 0xbeb   : > { %p2794_p6 = pneg %p2793_p7 }
 0xbec   : > { %p2800_p2 = por %p2799_p1, %p2798_p13 }
 0xbee   : > { %p2801_p0 = pnand %p2800_p2, %p2794_p6 }
 0xbf0   : > { %2804 = shalt.err (!%p2801_p0)
}
 0xbf1   : > { %2314 = dma.vmem_to_hbm [thread:$0]  (%p3606_p3), %s3515_s14, 128, %s3513_s0, %s1912_s21  }
 0xbf2 PF: > { %s1937_s11 = sand.u32 1, %s2851_s17   ;;  %p3607_p4 = scmp.ne.s32.totalorder %s3590_s25, 0 }
 0xbf3   : > { %p3608_p10 = scmp.ge.s32.totalorder %s2863_s20, 2  ;;  %s1938_s23 = scalar_lea.sflag [#allocation4], %s1937_s11 }
 0xbf5   : > { %p2352_p11 = pnand %p3608_p10, %p3607_p4 }
 0xbf7   : > { %2846 = dma.done.wait (!%p2352_p11), %s1938_s23, 128  }
 0xbf8   : > { %2848 = vsyncadd (!%p2352_p11), %s1938_s23, 4294967168  ;;  %p29_p8 = scmp.ge.s32.totalorder %s3211_s27, 4   ;;  %s3609_s17 = smov %s2855_s18 }
 0xbf9   : > { %s3610_s18 = smov %s2859_s19  ;;  %s3611_s19 = smov %s3222_s30 }
 0xbfa   : > { %s3612_s20 = smov %s3211_s27  ;;  %31 = sbr.rel (!%p29_p8) target bundleno = 15 (0xf), region = 149 }
 0xc01   :  { %1943 = vsyncpa [#allocation3], 1 }
 0xc02   :  { %1945 = vsyncpa [#allocation3 + $0x1], 1 }
 0xc03   :  { %1946 = vsyncpa [#allocation6], 1 }
 0xc04   :  { %1947 = vsyncpa [#allocation9], 1 }
 0xc05   :  { %1948 = vsyncpa [#allocation12], 1 }
 0xc06   :  { %1949 = vsyncpa [#allocation15], 1 }
 0xc07   :  { %1950 = vsyncpa [#allocation18], 1 }
 0xc08   :  { %1951 = vsyncpa [#allocation4], 1 }
 0xc09   :  { %1953 = vsyncpa [#allocation4 + $0x1], 1 }

// kernel: tpu_custom_call.1
= control target key start
LH: loop header
LB: loop body
LE: loop exit
PB: predicated region body
PF: predicated region fallthrough
CT: control target
= control target key end

     0   :  { %s2897_s0 = inlined_call_operand.hbm [shape: f32[2,8,32], index: 0, kind: input, shape index: {}]   ;;  %s2898_s1 = inlined_call_operand.hbm [shape: bf16[32,96], index: 1, kind: input, shape index: {}]   ;;  %s2899_s2 = inlined_call_operand.hbm [shape: bf16[32,32], index: 2, kind: input, shape index: {}]   ;;  %s2900_s3 = inlined_call_operand.hbm [shape: bf16[32,64], index: 3, kind: input, shape index: {}]   ;;  %s2901_s4 = inlined_call_operand.hbm [shape: f32[1,64], index: 4, kind: input, shape index: {}]   ;;  %s2902_s5 = inlined_call_operand.hbm [shape: bf16[64,32], index: 5, kind: input, shape index: {}]   ;;  %s2903_s6 = inlined_call_operand.hbm [shape: f32[1,32], index: 6, kind: input, shape index: {}]   ;;  %s2904_s7 = inlined_call_operand.hbm [shape: f32[1,32], index: 7, kind: input, shape index: {}]   ;;  %s2905_s8 = inlined_call_operand.hbm [shape: f32[1,32], index: 8, kind: input, shape index: {}]   ;;  %s2906_s9 = inlined_call_operand.hbm [shape: f32[1,32], index: 9, kind: input, shape index: {}]   ;;  %s2907_s10 = inlined_call_operand.hbm [shape: f32[1,32], index: 10, kind: input, shape index: {}]   ;;  %s2908_s11 = inlined_call_operand.hbm [shape: f32[2,8,32], index: 11, kind: output, shape index: {}]  }
   0x1   :  { %2915 = sst [smem:[#allocation29_spill]] %s2897_s0 }
   0x2   :  { %2916 = sst [smem:[#allocation30_spill]] %s2898_s1 }
   0x3   :  { %2917 = sst [smem:[#allocation31_spill]] %s2899_s2 }
   0x4   :  { %2918 = sst [smem:[#allocation32_spill]] %s2908_s11 }
   0x5   :  { %16 = vsyncpa [#allocation3], 0 }
   0x6   :  { %18 = vsyncpa [#allocation3 + $0x1], 0 }
   0x7   :  { %19 = vsyncpa [#allocation6], 0 }
   0x8   :  { %20 = vsyncpa [#allocation9], 0 }
   0x9   :  { %21 = vsyncpa [#allocation12], 0 }
   0xa   :  { %22 = vsyncpa [#allocation15], 0 }
   0xb   :  { %23 = vsyncpa [#allocation18], 0 }
   0xc   :  { %24 = vsyncpa [#allocation4], 0 }
   0xd   :  { %26 = vsyncpa [#allocation4 + $0x1], 0  ;;  %s2387_s17 = smov 0   ;;  %s2389_s18 = smov 0  }
   0xe   :  { %s2391_s19 = smov 0   ;;  %s2393_s20 = smov 0  }
   0xf LB: > { %s2297_s21 = smov [#allocation5]   ;;  %s2408_s23 = sadd.s32 4294967295, %s2295_s20   ;;  %s2295_s20 = sphi %s2393_s20, %s2951_s20   ;;  %s2291_s19 = sphi %s2391_s19, %s2950_s19   ;;  %s2287_s18 = sphi %s2389_s18, %s2949_s18   ;;  %s2283_s17 = sphi %s2387_s17, %s2948_s17  }
  0x10   : > { %s311_s22 = sshll.u32 %s2297_s21, 4  ;;  %p1527_p0 = scmp.ge.s32.totalorder %s2295_s20, 1  ;;  %s2413_s22 = int_to_ptr.vmem [resolvable:$true] %s311_s22 }
  0x11   : > { %p2912_p1 = scmp.eq.s32.totalorder %s2408_s23, 0  ;;  %p299_p2 = scmp.lt.s32.totalorder %s2295_s20, 3 }
  0x12   : > { %s2298_s25 = smov [#allocation8]   ;;  %s2299_s28 = smov [#allocation11]  }
  0x13   : > { %p2415_p3 = pnand %p1527_p0, %p299_p2  ;;  %s337_s26 = sshll.u32 %s2298_s25, 4  ;;  %s2428_s26 = int_to_ptr.vmem [resolvable:$true] %s337_s26 }
  0x14   : > { %s361_s29 = sshll.u32 %s2299_s28, 4  ;;  %s2922_s1 = sld [smem:[#allocation30_spill]]  ;;  %s2430_s29 = int_to_ptr.vmem [resolvable:$true] %s361_s29 }
  0x15   : > { %s2919_s24 = scalar_select %p2415_p3, 1, 0 }
  0x16   : > { %p1744_p5 = pneg %p2415_p3 }
  0x17   : > { %2920 = sst [smem:[#allocation28_spill]] %s2919_s24 }
  0x18   : > { %p2424_p6 = pnand %p1744_p5, %p2912_p1 }
  0x1a   : > { %s1899_s13 = scalar_lea.hbm %s2922_s1, 256  ;;  %p2440_p8 = pneg %p2424_p6 }
  0x1b   : > { %p1900_p7 = scmp.ne.s32.totalorder %s2922_s1, %s1899_s13  ;;  %p1906_p11 = scmp.lt.u32.totalorder %s1899_s13, %s2922_s1 }
  0x1d   : > { %p1902_p9 = pnand %p2440_p8, %p1900_p7 }
  0x1f   : > { %p1903_p10 = pneg %p1902_p9 }
  0x21   : > { %p1908_p12 = pnand %p1906_p11, %p1903_p10 }
  0x23   : > { %1911 = shalt.err (!%p1908_p12)
}
  0x24   : > { %s1912_s28 = scalar_lea.vmem %s2413_s22, 256  ;;  %p1920_p5 = scmp.lt.s32.totalorder %s2413_s22, %s2413_s22 }
  0x25   : > { %p1913_p13 = scmp.ne.s32.totalorder %s2413_s22, %s1912_s28  ;;  %p1921_p4 = scmp.lt.s32.totalorder %s1912_s28, %s1912_s28 }
  0x27   : > { %p1915_p0 = pnand %p1913_p13, %p2440_p8  ;;  %p1922_p7 = por %p1921_p4, %p1920_p5 }
  0x29   : > { %p1916_p2 = pneg %p1915_p0 }
  0x2b   : > { %p1923_p9 = pnand %p1922_p7, %p1916_p2 }
  0x2d   : > { %1926 = shalt.err (!%p1923_p9)
}
  0x2e   : > { %s2300_s30 = smov 64   ;;  %s2301_s12 = smov 4  }
  0x2f   : > { %1747 = dma.hbm_to_vmem [thread:$0]  (!%p2424_p6), %s2922_s1, 256, %s2413_s22, [#allocation6], %s2300_s30, %s2300_s30, %s2301_s12  }
  0x30   : > { %s1927_s25 = scalar_lea.hbm %s2900_s3, 256 }
  0x31   : > { %p1928_p4 = scmp.ne.s32.totalorder %s2900_s3, %s1927_s25  ;;  %p1934_p12 = scmp.lt.u32.totalorder %s1927_s25, %s2900_s3 }
  0x33   : > { %p1930_p10 = pnand %p1928_p4, %p2440_p8 }
  0x35   : > { %p1931_p11 = pneg %p1930_p10 }
  0x37   : > { %p1936_p13 = pnand %p1934_p12, %p1931_p11 }
  0x39   : > { %1939 = shalt.err (!%p1936_p13)
}
  0x3a   : > { %s1940_s22 = scalar_lea.vmem %s2428_s26, 256  ;;  %p1948_p7 = scmp.lt.s32.totalorder %s2428_s26, %s2428_s26 }
  0x3b   : > { %p1941_p0 = scmp.ne.s32.totalorder %s2428_s26, %s1940_s22  ;;  %p1949_p9 = scmp.lt.s32.totalorder %s1940_s22, %s1940_s22 }
  0x3d   : > { %p1943_p2 = pnand %p1941_p0, %p2440_p8  ;;  %p1950_p4 = por %p1949_p9, %p1948_p7 }
  0x3f   : > { %p1944_p5 = pneg %p1943_p2 }
  0x41   : > { %p1951_p10 = pnand %p1950_p4, %p1944_p5 }
  0x43   : > { %1954 = shalt.err (!%p1951_p10)
}
  0x44   : > { %1753 = dma.hbm_to_vmem [thread:$0]  (!%p2424_p6), %s2900_s3, 256, %s2428_s26, [#allocation9], %s2300_s30, %s2300_s30, %s2301_s12  }
  0x45   : > { %s1955_s14 = scalar_lea.hbm %s2902_s5, 512 }
  0x46   : > { %p1956_p11 = scmp.ne.s32.totalorder %s2902_s5, %s1955_s14  ;;  %p1962_p0 = scmp.lt.u32.totalorder %s1955_s14, %s2902_s5 }
  0x48   : > { %p1958_p12 = pnand %p1956_p11, %p2440_p8 }
  0x4a   : > { %p1959_p13 = pneg %p1958_p12 }
  0x4c   : > { %p1964_p2 = pnand %p1962_p0, %p1959_p13 }
  0x4e   : > { %1967 = shalt.err (!%p1964_p2)
}
  0x4f   : > { %s1968_s26 = scalar_lea.vmem %s2430_s29, 512  ;;  %p1976_p4 = scmp.lt.s32.totalorder %s2430_s29, %s2430_s29 }
  0x50   : > { %p1969_p5 = scmp.ne.s32.totalorder %s2430_s29, %s1968_s26  ;;  %p1977_p10 = scmp.lt.s32.totalorder %s1968_s26, %s1968_s26 }
  0x52   : > { %p1971_p7 = pnand %p1969_p5, %p2440_p8  ;;  %p1978_p11 = por %p1977_p10, %p1976_p4 }
  0x54   : > { %p1972_p9 = pneg %p1971_p7 }
  0x56   : > { %p1979_p12 = pnand %p1978_p11, %p1972_p9 }
  0x58   : > { %1982 = shalt.err (!%p1979_p12)
}
  0x59   : > { %1759 = dma.hbm_to_vmem [thread:$0]  (!%p2424_p6), %s2902_s5, 512, %s2430_s29, [#allocation12], %s2300_s30, %s2300_s30, %s2301_s12  }
  0x5a   : > { %s2302_s11 = smov [#allocation14]   ;;  %s2303_s13 = smov [#allocation17]  }
  0x5b   : > { %s386_s24 = sshll.u32 %s2302_s11, 4  ;;  %s408_s14 = sshll.u32 %s2303_s13, 4  ;;  %s387_s24 = int_to_ptr.vmem [resolvable:$true] %s386_s24  ;;  %s409_s14 = int_to_ptr.vmem [resolvable:$true] %s408_s14 }
  0x5c   : > { %s1983_s25 = scalar_lea.hbm %s2904_s7, 16 }
  0x5d   : > { %p1984_p13 = scmp.ne.s32.totalorder %s2904_s7, %s1983_s25  ;;  %p1990_p5 = scmp.lt.u32.totalorder %s1983_s25, %s2904_s7 }
  0x5f   : > { %p1986_p0 = pnand %p1984_p13, %p2440_p8 }
  0x61   : > { %p1987_p2 = pneg %p1986_p0 }
  0x63   : > { %p1992_p7 = pnand %p1990_p5, %p1987_p2 }
  0x65   : > { %1995 = shalt.err (!%p1992_p7)
}
  0x66   : > { %s1996_s29 = scalar_lea.vmem %s387_s24, 16  ;;  %s2003_s0 = scalar_lea.vmem %s387_s24, 32 }
  0x67   : > { %p1997_p9 = scmp.ne.s32.totalorder %s387_s24, %s1996_s29  ;;  %p2004_p11 = scmp.lt.s32.totalorder %s387_s24, %s387_s24 }
  0x68   : > { %p2005_p12 = scmp.lt.s32.totalorder %s2003_s0, %s1996_s29 }
  0x69   : > { %p1999_p4 = pnand %p1997_p9, %p2440_p8 }
  0x6a   : > { %p2006_p1 = por %p2005_p12, %p2004_p11 }
  0x6b   : > { %p2000_p10 = pneg %p1999_p4 }
  0x6d   : > { %p2007_p3 = pnand %p2006_p1, %p2000_p10 }
  0x6f   : > { %2010 = shalt.err (!%p2007_p3)
}
  0x70   : > { %1765 = dma.hbm_to_vmem [thread:$0]  (!%p2424_p6), %s2904_s7, 16, %s387_s24, [#allocation15]  }
  0x71   : > { %s2011_s21 = scalar_lea.hbm %s2906_s9, 16 }
  0x72   : > { %p2012_p13 = scmp.ne.s32.totalorder %s2906_s9, %s2011_s21  ;;  %p2018_p3 = scmp.lt.u32.totalorder %s2011_s21, %s2906_s9 }
  0x74   : > { %p2014_p0 = pnand %p2012_p13, %p2440_p8 }
  0x76   : > { %p2015_p1 = pneg %p2014_p0 }
  0x78   : > { %p2020_p2 = pnand %p2018_p3, %p2015_p1 }
  0x7a   : > { %2023 = shalt.err (!%p2020_p2)
}
  0x7b   : > { %s2024_s29 = scalar_lea.vmem %s409_s14, 16  ;;  %s2031_s24 = scalar_lea.vmem %s409_s14, 32 }
  0x7c   : > { %p2025_p5 = scmp.ne.s32.totalorder %s409_s14, %s2024_s29  ;;  %p2032_p4 = scmp.lt.s32.totalorder %s409_s14, %s409_s14 }
  0x7d   : > { %p2033_p10 = scmp.lt.s32.totalorder %s2031_s24, %s2024_s29 }
  0x7e   : > { %p2027_p7 = pnand %p2025_p5, %p2440_p8 }
  0x7f   : > { %p2034_p11 = por %p2033_p10, %p2032_p4 }
  0x80   : > { %p2028_p9 = pneg %p2027_p7 }
  0x82   : > { %p2035_p12 = pnand %p2034_p11, %p2028_p9 }
  0x84   : > { %2038 = shalt.err (!%p2035_p12)
}
  0x85   : > { %1771 = dma.hbm_to_vmem [thread:$0]  (!%p2424_p6), %s2906_s9, 16, %s409_s14, [#allocation18]  }
  0x86   : > { %s2304_s13 = smov [#allocation7]   ;;  %s2305_s15 = smov [#allocation10]  }
  0x87   : > { %s324_s1 = sshll.u32 %s2304_s13, 4  ;;  %s351_s21 = sshll.u32 %s2305_s15, 4  ;;  %s325_s1 = int_to_ptr.vmem [resolvable:$true] %s324_s1  ;;  %s352_s21 = int_to_ptr.vmem [resolvable:$true] %s351_s21 }
  0x88   : > { %s2924_s2 = sld [smem:[#allocation31_spill]] }
  0x8e   : > { %s2039_s26 = scalar_lea.hbm %s2924_s2, 256 }
  0x8f   : > { %p2040_p13 = scmp.ne.s32.totalorder %s2924_s2, %s2039_s26  ;;  %p2046_p3 = scmp.lt.u32.totalorder %s2039_s26, %s2924_s2 }
  0x91   : > { %p2042_p0 = pnand %p2040_p13, %p2440_p8 }
  0x93   : > { %p2043_p1 = pneg %p2042_p0 }
  0x95   : > { %p2048_p2 = pnand %p2046_p3, %p2043_p1 }
  0x97   : > { %2051 = shalt.err (!%p2048_p2)
}
  0x98   : > { %s2052_s14 = scalar_lea.vmem %s325_s1, 256  ;;  %p2060_p4 = scmp.lt.s32.totalorder %s325_s1, %s325_s1 }
  0x99   : > { %p2053_p5 = scmp.ne.s32.totalorder %s325_s1, %s2052_s14  ;;  %p2061_p10 = scmp.lt.s32.totalorder %s2052_s14, %s2052_s14 }
  0x9b   : > { %p2055_p7 = pnand %p2053_p5, %p2440_p8  ;;  %p2062_p11 = por %p2061_p10, %p2060_p4 }
  0x9d   : > { %p2056_p9 = pneg %p2055_p7 }
  0x9f   : > { %p2063_p12 = pnand %p2062_p11, %p2056_p9 }
  0xa1   : > { %2066 = shalt.err (!%p2063_p12)
}
  0xa2   : > { %1750 = dma.hbm_to_vmem [thread:$0]  (!%p2424_p6), %s2924_s2, 256, %s325_s1, [#allocation6], %s2300_s30, %s2300_s30, %s2301_s12  }
  0xa3   : > { %s2067_s28 = scalar_lea.hbm %s2901_s4, 16 }
  0xa4   : > { %p2068_p13 = scmp.ne.s32.totalorder %s2901_s4, %s2067_s28  ;;  %p2074_p3 = scmp.lt.u32.totalorder %s2067_s28, %s2901_s4 }
  0xa6   : > { %p2070_p0 = pnand %p2068_p13, %p2440_p8 }
  0xa8   : > { %p2071_p1 = pneg %p2070_p0 }
  0xaa   : > { %p2076_p2 = pnand %p2074_p3, %p2071_p1 }
  0xac   : > { %2079 = shalt.err (!%p2076_p2)
}
  0xad   : > { %s2080_s0 = scalar_lea.vmem %s352_s21, 16  ;;  %s2087_s30 = scalar_lea.vmem %s352_s21, 32 }
  0xae   : > { %p2081_p5 = scmp.ne.s32.totalorder %s352_s21, %s2080_s0  ;;  %p2088_p4 = scmp.lt.s32.totalorder %s352_s21, %s352_s21 }
  0xaf   : > { %p2089_p10 = scmp.lt.s32.totalorder %s2087_s30, %s2080_s0 }
  0xb0   : > { %p2083_p7 = pnand %p2081_p5, %p2440_p8 }
  0xb1   : > { %p2090_p11 = por %p2089_p10, %p2088_p4 }
  0xb2   : > { %p2084_p9 = pneg %p2083_p7 }
  0xb4   : > { %p2091_p12 = pnand %p2090_p11, %p2084_p9 }
  0xb6   : > { %2094 = shalt.err (!%p2091_p12)
}
  0xb7   : > { %1756 = dma.hbm_to_vmem [thread:$0]  (!%p2424_p6), %s2901_s4, 16, %s352_s21, [#allocation9]  }
  0xb8   : > { %s2306_s14 = smov [#allocation13]   ;;  %s2307_s13 = smov [#allocation16]  }
  0xb9   : > { %s375_s11 = sshll.u32 %s2306_s14, 4  ;;  %s397_s15 = sshll.u32 %s2307_s13, 4  ;;  %s376_s11 = int_to_ptr.vmem [resolvable:$true] %s375_s11  ;;  %s398_s15 = int_to_ptr.vmem [resolvable:$true] %s397_s15 }
  0xba   : > { %s2095_s26 = scalar_lea.hbm %s2903_s6, 16 }
  0xbb   : > { %p2096_p13 = scmp.ne.s32.totalorder %s2903_s6, %s2095_s26  ;;  %p2102_p3 = scmp.lt.u32.totalorder %s2095_s26, %s2903_s6 }
  0xbd   : > { %p2098_p0 = pnand %p2096_p13, %p2440_p8 }
  0xbf   : > { %p2099_p1 = pneg %p2098_p0 }
  0xc1   : > { %p2104_p2 = pnand %p2102_p3, %p2099_p1 }
  0xc3   : > { %2107 = shalt.err (!%p2104_p2)
}
  0xc4   : > { %s2108_s21 = scalar_lea.vmem %s376_s11, 16  ;;  %s2115_s30 = scalar_lea.vmem %s376_s11, 32 }
  0xc5   : > { %p2109_p5 = scmp.ne.s32.totalorder %s376_s11, %s2108_s21  ;;  %p2116_p4 = scmp.lt.s32.totalorder %s376_s11, %s376_s11 }
  0xc6   : > { %p2117_p10 = scmp.lt.s32.totalorder %s2115_s30, %s2108_s21 }
  0xc7   : > { %p2111_p7 = pnand %p2109_p5, %p2440_p8 }
  0xc8   : > { %p2118_p11 = por %p2117_p10, %p2116_p4 }
  0xc9   : > { %p2112_p9 = pneg %p2111_p7 }
  0xcb   : > { %p2119_p12 = pnand %p2118_p11, %p2112_p9 }
  0xcd   : > { %2122 = shalt.err (!%p2119_p12)
}
  0xce   : > { %1762 = dma.hbm_to_vmem [thread:$0]  (!%p2424_p6), %s2903_s6, 16, %s376_s11, [#allocation12]  }
  0xcf   : > { %s2123_s25 = scalar_lea.hbm %s2905_s8, 16 }
  0xd0   : > { %p2124_p13 = scmp.ne.s32.totalorder %s2905_s8, %s2123_s25  ;;  %p2130_p3 = scmp.lt.u32.totalorder %s2123_s25, %s2905_s8 }
  0xd2   : > { %p2126_p0 = pnand %p2124_p13, %p2440_p8 }
  0xd4   : > { %p2127_p1 = pneg %p2126_p0 }
  0xd6   : > { %p2132_p2 = pnand %p2130_p3, %p2127_p1 }
  0xd8   : > { %2135 = shalt.err (!%p2132_p2)
}
  0xd9   : > { %s2136_s24 = scalar_lea.vmem %s398_s15, 16  ;;  %s2143_s11 = scalar_lea.vmem %s398_s15, 32 }
  0xda   : > { %p2137_p5 = scmp.ne.s32.totalorder %s398_s15, %s2136_s24  ;;  %p2144_p4 = scmp.lt.s32.totalorder %s398_s15, %s398_s15 }
  0xdb   : > { %p2145_p10 = scmp.lt.s32.totalorder %s2143_s11, %s2136_s24 }
  0xdc   : > { %p2139_p7 = pnand %p2137_p5, %p2440_p8 }
  0xdd   : > { %p2146_p11 = por %p2145_p10, %p2144_p4 }
  0xde   : > { %p2140_p9 = pneg %p2139_p7 }
  0xe0   : > { %p2147_p12 = pnand %p2146_p11, %p2140_p9 }
  0xe2   : > { %2150 = shalt.err (!%p2147_p12)
}
  0xe3   : > { %1768 = dma.hbm_to_vmem [thread:$0]  (!%p2424_p6), %s2905_s8, 16, %s398_s15, [#allocation15]  }
  0xe4   : > { %s2308_s30 = smov [#allocation19]   ;;  %s2151_s13 = scalar_lea.hbm %s2907_s10, 16 }
  0xe5   : > { %s419_s12 = sshll.u32 %s2308_s30, 4  ;;  %p2152_p13 = scmp.ne.s32.totalorder %s2907_s10, %s2151_s13  ;;  %s420_s12 = int_to_ptr.vmem [resolvable:$true] %s419_s12 }
  0xe6   : > { %p2158_p3 = scmp.lt.u32.totalorder %s2151_s13, %s2907_s10 }
  0xe7   : > { %p2154_p0 = pnand %p2152_p13, %p2440_p8 }
  0xe9   : > { %p2155_p1 = pneg %p2154_p0 }
  0xeb   : > { %p2160_p2 = pnand %p2158_p3, %p2155_p1 }
  0xed   : > { %2163 = shalt.err (!%p2160_p2)
}
  0xee   : > { %s2164_s15 = scalar_lea.vmem %s420_s12, 16  ;;  %s2171_s29 = scalar_lea.vmem %s420_s12, 32 }
  0xef   : > { %p2165_p5 = scmp.ne.s32.totalorder %s420_s12, %s2164_s15  ;;  %p2172_p4 = scmp.lt.s32.totalorder %s420_s12, %s420_s12 }
  0xf0   : > { %p2173_p10 = scmp.lt.s32.totalorder %s2171_s29, %s2164_s15 }
  0xf1   : > { %p2167_p7 = pnand %p2165_p5, %p2440_p8 }
  0xf2   : > { %p2174_p11 = por %p2173_p10, %p2172_p4 }
  0xf3   : > { %p2168_p9 = pneg %p2167_p7 }
  0xf5   : > { %p2175_p12 = pnand %p2174_p11, %p2168_p9 }
  0xf7   : > { %2178 = shalt.err (!%p2175_p12)
}
  0xf8   : > { %1774 = dma.hbm_to_vmem [thread:$0]  (!%p2424_p6), %s2907_s10, 16, %s420_s12, [#allocation18]  }
  0xf9   : > { %s1526_s16 = sadd.s32 4294967294, %s2295_s20   ;;  %s2647_s27 = sadd.s32 1, %s2295_s20  }
  0xfa   : > { %s36_s0 = ssub.s32 %s2295_s20, %s2647_s27  ;;  %s39_s21 = sadd.s32 1, %s2291_s19 }
  0xfb   : > { %p37_p8 = scmp.eq.s32.totalorder %s36_s0, 0  ;;  %p46_p13 = scmp.ne.s32.totalorder %s2291_s19, %s2287_s18 }
  0xfc   : > { %p47_p0 = scmp.eq.s32.totalorder %s2295_s20, 0  ;;  %p52_p1 = scmp.ne.s32.totalorder %s2287_s18, %s2283_s17 }
  0xfd   : > { %s2658_s30 = scalar_select %p37_p8, %s2291_s19, %s39_s21  }
  0xfe   : > { %p2660_p3 = por %p47_p0, %p46_p13  ;;  %p2926_p2 = scmp.eq.s32.totalorder %s2408_s23, 0 }
  0xff   : > { %p286_p5 = scmp.eq.s32.totalorder %s2408_s23, 1  ;;  %p292_p7 = scmp.eq.s32.totalorder %s1526_s16, 1 }
 0x100   : > { %p2666_p6 = por %p2926_p2, %p52_p1  ;;  %p1793_p9 = scmp.lt.s32.totalorder %s2295_s20, 2 }
 0x101   : > { %s430_s14 = sand.u32 1, %s2291_s19   ;;  %p2673_p4 = por %p286_p5, %p46_p13 }
 0x102   : > { %p2677_p10 = por %p292_p7, %p52_p1  ;;  %s1539_s28 = sshll.u32 %s430_s14, 3 }
 0x103   : > { %s2928_s13 = scalar_select %p2673_p4, 1, 0 }
 0x104   : > { %s2929_s25 = scalar_select %p2677_p10, 1, 0 }
 0x105   : > { %s1540_s26 = sshll.u32 %s2295_s20, 7  ;;  %s2930_s29 = sld [smem:[#allocation29_spill]] }
 0x106   : > { %s434_s11 = scalar_lea.vmem [#allocation2], %s1539_s28  ;;  %p2691_p11 = pnand %p1793_p9, %p2660_p3 }
 0x107   : > { %s441_s16 = sshll.u32 %s434_s11, 4  ;;  %s431_s21 = scalar_lea.sflag [#allocation3], %s430_s14  ;;  %s2687_s16 = int_to_ptr.vmem [resolvable:$true] %s441_s16 }
 0x108   : > { %p2181_p8 = pneg %p2691_p11 }
 0x10b   : > { %s2685_s24 = scalar_lea.hbm %s2930_s29, %s1540_s26  ;;  %s2184_s22 = scalar_lea.hbm %s2930_s29, 256 }
 0x10c   : > { %s2179_s2 = scalar_lea.hbm %s2685_s24, 128  ;;  %p2185_p1 = scmp.lt.u32.totalorder %s2685_s24, %s2930_s29 }
 0x10d   : > { %p2180_p12 = scmp.ne.s32.totalorder %s2685_s24, %s2179_s2  ;;  %p2186_p3 = scmp.lt.u32.totalorder %s2184_s22, %s2179_s2 }
 0x10e   : > { %p2188_p5 = scmp.lt.u32.totalorder %s2179_s2, %s2685_s24 }
 0x10f   : > { %p2182_p13 = pnand %p2181_p8, %p2180_p12  ;;  %p2187_p2 = por %p2186_p3, %p2185_p1 }
 0x111   : > { %p2183_p0 = pneg %p2182_p13  ;;  %p2189_p7 = por %p2188_p5, %p2187_p2 }
 0x113   : > { %p2190_p9 = pnand %p2189_p7, %p2183_p0 }
 0x115   : > { %2193 = shalt.err (!%p2190_p9)
}
 0x116   : > { %s2194_s14 = scalar_lea.vmem %s2687_s16, 128  ;;  %s2309_s11 = smov [#allocation2]  }
 0x117   : > { %p2195_p12 = scmp.ne.s32.totalorder %s2687_s16, %s2194_s14  ;;  %s2199_s28 = sshll.u32 %s2309_s11, 4  ;;  %s2200_s28 = int_to_ptr.vmem [resolvable:$false] %s2199_s28 }
 0x118   : > { %s2201_s26 = scalar_lea.vmem %s2200_s28, 256  ;;  %p2202_p4 = scmp.lt.s32.totalorder %s2687_s16, %s2200_s28 }
 0x119   : > { %p2197_p13 = pnand %p2195_p12, %p2181_p8  ;;  %p2203_p1 = scmp.lt.s32.totalorder %s2201_s26, %s2194_s14 }
 0x11b   : > { %p2198_p10 = pneg %p2197_p13  ;;  %p2204_p3 = por %p2203_p1, %p2202_p4 }
 0x11d   : > { %p2205_p2 = pnand %p2204_p3, %p2198_p10 }
 0x11f   : > { %2208 = shalt.err (!%p2205_p2)
}
 0x120   : > { %1778 = dma.hbm_to_vmem [thread:$0]  (!%p2691_p11), %s2685_s24, 128, %s2687_s16, %s431_s21  }
 0x121   : > { %s2932_s2 = sld [smem:[#allocation28_spill]] }
 0x127   : > { %p2933_p0 = scmp.ne.s32.totalorder %s2932_s2, 0 }
 0x128   : > { %s2723_s22 = sand.u32 (!%p2933_p0), 1, %s2287_s18  }
 0x129   : > { %450 = sbr.rel (%p2933_p0) target bundleno = 2907 (0xb5b), region = 64  ;;  %s1542_s1 = sshll.u32 (!%p2933_p0), %s2723_s22, 3 }
 0x12a   : > { %s453_s15 = scalar_lea.sflag (!%p2933_p0), [#allocation3], %s2723_s22  ;;  %s456_s14 = scalar_lea.vmem (!%p2933_p0), [#allocation2], %s1542_s1 }
 0x130   : > { %2254 = dma.done.wait (%p2666_p6), %s453_s15, 128  }
 0x131   : > { %2256 = vsyncadd (%p2666_p6), %s453_s15, 4294967168  ;;  %p2934_p4 = scmp.eq.s32.totalorder %s2408_s23, 0 }
 0x133   : > { %2258 = dma.done.wait (%p2934_p4), [#allocation6], 512   ;;  %p2935_p10 = pmov %p2934_p4 }
 0x134   : > { %p2936_p11 = pmov %p2934_p4 }
 0x135   : > { %2260 = vsyncadd (%p2935_p10), [#allocation6], 4294966784 }
 0x136   : > { %2262 = dma.done.wait (%p2936_p11), [#allocation9], 272   ;;  %p2937_p8 = pmov %p2934_p4 }
 0x137   : > { %p2938_p5 = pmov %p2934_p4 }
 0x138   : > { %2264 = vsyncadd (%p2937_p8), [#allocation9], 4294967024 }
 0x139   : > { %2266 = dma.done.wait (%p2938_p5), [#allocation12], 528   ;;  %p2939_p7 = pmov %p2934_p4 }
 0x13a   : > { %p2940_p6 = pmov %p2934_p4 }
 0x13b   : > { %2268 = vsyncadd (%p2939_p7), [#allocation12], 4294966768 }
 0x13c   : > { %2270 = dma.done.wait (%p2940_p6), [#allocation15], 32   ;;  %p2941_p9 = pmov %p2934_p4 }
 0x13d   : > { %p2942_p12 = pmov %p2934_p4 }
 0x13e   : > { %2272 = vsyncadd (%p2941_p9), [#allocation15], 4294967264 }
 0x13f   : > { %2274 = dma.done.wait (%p2942_p12), [#allocation18], 32   ;;  %p2943_p13 = pmov %p2934_p4 }
 0x140   : > { %v2310_v0 = vmov 0.0   ;;  %vm2311_vm0 = vmmov 0   ;;  %v1865_v1 = vld [vmem:[#allocation5] sm:$0xff]   ;;  %v1866_v2 = vld [vmem:[#allocation5 + $0x8] sm:$0xff]   ;;  %v2759_v3 = vld [vmem:[%s456_s14] sm:$0xff]  ;;  %vm554_vm1 = vcmask 261120  }
 0x141   : > { %2276 = vsyncadd (%p2943_p13), [#allocation18], 4294967264  ;;  %1616 = vmatprep.subr.bf16.mxu0 %v2310_v0  ;;  %1620 = vmatprep.mubr.msk.bf16.mxu0 %vm2311_vm0, %v2310_v0  ;;  %v537_v4 = vpack.c.bf16 %v2759_v3, %v2759_v3  ;;  %s2312_s12 = smov 120   ;;  %s2313_s24 = smov 96   ;;  %vm602_vm2 = vcmask 64512   ;;  %vm666_vm3 = vcmask 1043456  }
 0x142   : > { %1624 = vmatprep.subr.bf16.mxu1 %v2310_v0  ;;  %1626 = vmatprep.mubr.msk.bf16.mxu1 %vm2311_vm0, %v2310_v0  ;;  %s2314_s16 = smov 80   ;;  %s2315_s0 = smov 88   ;;  %vm1053_vm4 = vcmask 130048   ;;  %vm1055_vm5 = vcmask 195584   ;;  %vm1264_vm8 = vcmask 523264  }
 0x143   : > { %1617 = vmatpush3.bf16.msra.mxu0 %v1865_v1  ;;  %s2316_s21 = smov 72   ;;  %s2317_s11 = smov 112  }
 0x144   : > { %1618 = vmatprep.subr.bf16.mxu0 %v2310_v0  ;;  %s2318_s28 = smov 104   ;;  %s2319_s26 = smov 56  }
 0x145   : > { %s2320_s2 = smov 64   ;;  %s2321_s15 = smov 40  }
 0x146   : > { %s2322_s14 = smov 48   ;;  %p2945_p3 = scmp.ne.s32.totalorder %s2928_s13, 0 }
 0x147   : > { %1619 = vmatpush3.bf16.msra.mxu0 %v1866_v2 }
 0x148   : > { %1630 = vmatprep.subr.bf16.mxu0 %v2310_v0 }
 0x14a   : > { %1621 = vmatmul.mubr.msk.bf16.vlgmr.msra.gmra.mrb[0].mxu0 %vm554_vm1, %v537_v4 }
 0x14b   : > { %1632 = vmatprep.mubr.msk.bf16.mxu0 %vm2311_vm0, %v2310_v0 }
 0x21d   : > { %v592_v5 = vpop.f32.mrb[0].mxu0 }
 0x21e   : > { %v2768_v6 = vpack.c.bf16 %v592_v5, %v592_v5  ;;  %v1622_v7 = vpop.f32.mrb[1].mxu0 }
 0x21f   : > { %v595_v8 = vpop.f32.mrb[2].mxu0 }
 0x220   : > { %710 = vrot.lane.b32.xlu1 %v2768_v6, %s2312_s12  ;;  %600 = vrot.lane.b32.xlu0 %v2768_v6, %s2313_s24  ;;  %v1623_v9 = vpop.f32.mrb[3].mxu0  ;;  %s2323_s12 = smov 8   ;;  %s2324_s24 = smov 16  }
 0x224   : > { %822 = vrot.lane.b32.xlu1 %v2768_v6, %s2314_s16  ;;  %712 = vrot.lane.b32.xlu0 %v2768_v6, %s2315_s0  ;;  %s2325_s16 = smov 24   ;;  %s1583_s0 = sshll.u32 %s2408_s23, 7 }
 0x225   : > { %s2326_s23 = smov [#allocation20]  }
 0x228   : > { %932 = vrot.lane.b32.xlu1 %v2768_v6, %s2316_s21  ;;  %820 = vrot.lane.b32.xlu0 %v2768_v6, %s2317_s11  ;;  %s534_s21 = scalar_lea.vmem [#allocation20], %s1542_s1  ;;  %s2213_s1 = sshll.u32 %s2326_s23, 4  ;;  %s2214_s1 = int_to_ptr.vmem [resolvable:$false] %s2213_s1 }
 0x229   : > { %s1361_s11 = sshll.u32 %s534_s21, 4  ;;  %s2854_s11 = int_to_ptr.vmem [resolvable:$true] %s1361_s11 }
 0x22a   : > { %p2216_p4 = scmp.lt.s32.totalorder %s2854_s11, %s2214_s1 }
 0x22c   : > { %930 = vrot.lane.b32.xlu0 %v2768_v6, %s2318_s28 }
 0x292   : > { %v601_v10 = vpop.permute.xlu0 %600  ;;  %v711_v13 = vpop.permute.xlu1 %710 }
 0x293   : > { %v607_v11 = vsel %vm602_vm2, %v601_v10, 0 }
 0x294   : > { %1625 = vmatpush3.bf16.xpose.msra.mxu1 %v607_v11 }
 0x295   : > { %1636 = vmatprep.subr.bf16.mxu1 %v2310_v0 }
 0x296   : > { %v713_v12 = vpop.permute.xlu0 %712  ;;  %v823_v15 = vpop.permute.xlu1 %822 }
 0x297   : > { %v718_v14 = vsel %vm602_vm2, %v713_v12, 0  ;;  %v828_v16 = vsel %vm602_vm2, %v823_v15, 0 }
 0x29a   : > { %v933_v17 = vpop.permute.xlu1 %932  ;;  %v821_v18 = vpop.permute.xlu0 %820 }
 0x29b   : > { %1627 = vmatmul.mubr.msk.bf16.vlgmr.msra.gmra.mrb[0].mxu1 %vm602_vm2, %v2768_v6  ;;  %v938_v19 = vsel %vm602_vm2, %v933_v17, 0 }
 0x29c   : > { %1637 = vmatpush3.bf16.xpose.msra.mxu1 %v718_v14  ;;  %1638 = vmatprep.mubr.msk.bf16.mxu1 %vm2311_vm0, %v2310_v0 }
 0x29d   : > { %1648 = vmatprep.subr.bf16.mxu1 %v2310_v0 }
 0x29e   : > { %v931_v20 = vpop.permute.xlu0 %930 }
 0x2a3   : > { %1639 = vmatmul.mubr.msk.bf16.vlgmr.msra.gmra.mrb[4].mxu1 %vm602_vm2, %v711_v13 }
 0x2a4   : > { %1649 = vmatpush3.bf16.xpose.msra.mxu1 %v828_v16  ;;  %1650 = vmatprep.mubr.msk.bf16.mxu1 %vm2311_vm0, %v2310_v0 }
 0x2a5   : > { %1660 = vmatprep.subr.bf16.mxu1 %v2310_v0 }
 0x2ab   : > { %1651 = vmatmul.mubr.msk.bf16.vlgmr.msra.gmra.mrb[8].mxu1 %vm602_vm2, %v821_v18 }
 0x2ac   : > { %1661 = vmatpush3.bf16.xpose.msra.mxu1 %v938_v19  ;;  %1662 = vmatprep.mubr.msk.bf16.mxu1 %vm2311_vm0, %v2310_v0 }
 0x2ad   : > { %1672 = vmatprep.subr.bf16.mxu1 %v2310_v0 }
 0x2b3   : > { %1663 = vmatmul.mubr.msk.bf16.vlgmr.msra.gmra.mrb[12].mxu1 %vm602_vm2, %v931_v20 }
 0x2b4   : > { %1676 = vmatprep.mubr.msk.bf16.mxu1 %vm2311_vm0, %v2310_v0 }
 0x36e   : > { %v643_v21 = vpop.f32.mrb[0].mxu1 }
 0x36f   : > { %v1628_v22 = vpop.f32.mrb[1].mxu1  ;;  %v649_v23 = vsel %vm602_vm2, %v643_v21, -inf }
 0x370   : > { %650 = vmax.xlane.f32.xlu1 %v649_v23  ;;  %v646_v24 = vpop.f32.mrb[2].mxu1 }
 0x371   : > { %v1629_v25 = vpop.f32.mrb[3].mxu1 }
 0x376   : > { %v754_v26 = vpop.f32.mrb[4].mxu1 }
 0x377   : > { %v1640_v27 = vpop.f32.mrb[5].mxu1  ;;  %v760_v28 = vsel %vm602_vm2, %v754_v26, -inf }
 0x378   : > { %761 = vmax.xlane.f32.xlu0 %v760_v28  ;;  %v757_v29 = vpop.f32.mrb[6].mxu1 }
 0x379   : > { %v1641_v30 = vpop.f32.mrb[7].mxu1 }
 0x37e   : > { %v864_v31 = vpop.f32.mrb[8].mxu1 }
 0x37f   : > { %v1652_v32 = vpop.f32.mrb[9].mxu1  ;;  %v870_v33 = vsel %vm602_vm2, %v864_v31, -inf }
 0x380   : > { %871 = vmax.xlane.f32.xlu0 %v870_v33  ;;  %v867_v34 = vpop.f32.mrb[10].mxu1  ;;  %v1868_v32 = vld [vmem:[#allocation7 + $0x8] sm:$0xff]  }
 0x381   : > { %v1653_v35 = vpop.f32.mrb[11].mxu1 }
 0x386   : > { %v974_v36 = vpop.f32.mrb[12].mxu1 }
 0x387   : > { %v1664_v37 = vpop.f32.mrb[13].mxu1  ;;  %v980_v38 = vsel %vm602_vm2, %v974_v36, -inf }
 0x388   : > { %981 = vmax.xlane.f32.xlu1 %v980_v38  ;;  %v977_v39 = vpop.f32.mrb[14].mxu1 }
 0x389   : > { %v1665_v40 = vpop.f32.mrb[15].mxu1 }
 0x3fd   : > { %v651_v41 = vpop.xlane.xlu1 %650 }
 0x3fe   : > { %v652_v42 = vsub.f32 %v643_v21, %v651_v41 }
 0x400   : > { %v653_v43 = vmul.f32 1.442695, %v652_v42 }
 0x402   : > { %1875 = vpow2.f32 %v653_v43 }
 0x405   : > { %v762_v44 = vpop.xlane.xlu0 %761 }
 0x406   : > { %v763_v45 = vsub.f32 %v754_v26, %v762_v44 }
 0x408   : > { %v764_v46 = vmul.f32 1.442695, %v763_v45 }
 0x40a   : > { %1877 = vpow2.f32 %v764_v46 }
 0x40c   : > { %v1876_v47 = vpop.eup %1875 }
 0x40d   : > { %v872_v48 = vpop.xlane.xlu0 %871  ;;  %v655_v49 = vsel %vm602_vm2, %v1876_v47, 0.0 }
 0x40e   : > { %v873_v50 = vsub.f32 %v864_v31, %v872_v48  ;;  %656 = vadd.xlane.f32.xlu0 %v655_v49  ;;  %v1867_v31 = vld [vmem:[#allocation7] sm:$0xff]  }
 0x40f   : > { %1673 = vmatpush3.bf16.msra.mxu1 %v1867_v31 }
 0x410   : > { %v874_v51 = vmul.f32 1.442695, %v873_v50  ;;  %1674 = vmatprep.subr.bf16.mxu1 %v2310_v0 }
 0x412   : > { %1879 = vpow2.f32 %v874_v51 }
 0x413   : > { %1675 = vmatpush3.bf16.msra.mxu1 %v1868_v32 }
 0x414   : > { %v1878_v52 = vpop.eup %1877  ;;  %1688 = vmatprep.subr.bf16.mxu1 %v2310_v0 }
 0x415   : > { %v766_v53 = vsel %vm602_vm2, %v1878_v52, 0.0  ;;  %v982_v56 = vpop.xlane.xlu1 %981 }
 0x416   : > { %767 = vadd.xlane.f32.xlu1 %v766_v53  ;;  %v983_v57 = vsub.f32 %v974_v36, %v982_v56 }
 0x418   : > { %v984_v58 = vmul.f32 1.442695, %v983_v57 }
 0x41a   : > { %1881 = vpow2.f32 %v984_v58 }
 0x41c   : > { %v1880_v54 = vpop.eup %1879 }
 0x41d   : > { %v876_v55 = vsel %vm602_vm2, %v1880_v54, 0.0 }
 0x41e   : > { %877 = vadd.xlane.f32.xlu0 %v876_v55 }
 0x424   : > { %v1882_v59 = vpop.eup %1881 }
 0x425   : > { %v986_v60 = vsel %vm602_vm2, %v1882_v59, 0.0 }
 0x427   : > { %772 = vrot.lane.b32.xlu1 %v2768_v6, %s2319_s26 }
 0x434   : > { %661 = vrot.lane.b32.xlu0 %v2768_v6, %s2320_s2  ;;  %s2944_s2 = sld [smem:[#allocation32_spill]] }
 0x438   : > { %992 = vrot.lane.b32.xlu0 %v2768_v6, %s2321_s15 }
 0x43a   : > { %s2852_s15 = scalar_lea.hbm %s2944_s2, %s1583_s0 }
 0x44b   : > { %987 = vadd.xlane.f32.xlu1 %v986_v60  ;;  %v1870_v60 = vld [vmem:[#allocation8 + $0x8] sm:$0xff]  }
 0x45c   : > { %882 = vrot.lane.b32.xlu1 %v2768_v6, %s2322_s14  ;;  %s1348_s14 = scalar_lea.sflag [#allocation4], %s2723_s22 }
 0x49b   : > { %v657_v61 = vpop.xlane.xlu0 %656 }
 0x49c   : > { %1883 = vrcp.f32 %v657_v61  ;;  %v1872_v61 = vld [vmem:[#allocation11 + $0x8] sm:$0xff]  }
 0x4a3   : > { %v768_v62 = vpop.xlane.xlu1 %767 }
 0x4a4   : > { %1885 = vrcp.f32 %v768_v62 }
 0x4a6   : > { %v1884_v63 = vpop.eup %1883 }
 0x4a7   : > { %v659_v2 = vmul.f32 %v1884_v63, %v1876_v47  ;;  %v773_v7 = vpop.permute.xlu1 %772 }
 0x4a8   : > { %v778_v10 = vsel %vm666_vm3, %v773_v7, 0 }
 0x4a9   : > { %v660_v8 = vpack.c.bf16 %v659_v2, %v659_v2 }
 0x4ab   : > { %v878_v1 = vpop.xlane.xlu0 %877 }
 0x4ac   : > { %1887 = vrcp.f32 %v878_v1 }
 0x4ae   : > { %v1886_v9 = vpop.eup %1885 }
 0x4af   : > { %v662_v4 = vpop.permute.xlu0 %661  ;;  %v770_v6 = vmul.f32 %v1886_v9, %v1878_v52 }
 0x4b0   : > { %v668_v5 = vsel %vm666_vm3, %v662_v4, 0 }
 0x4b1   : > { %1631 = vmatpush3.bf16.msra.mxu0 %v668_v5  ;;  %v771_v11 = vpack.c.bf16 %v770_v6, %v770_v6 }
 0x4b2   : > { %1642 = vmatprep.subr.bf16.mxu0 %v2310_v0 }
 0x4b3   : > { %v993_v17 = vpop.permute.xlu0 %992 }
 0x4b4   : > { %1633 = vmatmul.mubr.msk.bf16.vlgmr.msra.gmra.mrb[4].mxu0 %vm602_vm2, %v660_v8  ;;  %v998_v19 = vsel %vm666_vm3, %v993_v17, 0  ;;  %v1570_v17 = vld [vmem:[#allocation10] ss:$0 sm:$0xff] }
 0x4b5   : > { %1643 = vmatpush3.bf16.msra.mxu0 %v778_v10  ;;  %1644 = vmatprep.mubr.msk.bf16.mxu0 %vm2311_vm0, %v2310_v0  ;;  %v1568_v10 = vld [vmem:[#allocation14] ss:$0 sm:$0xff] }
 0x4b6   : > { %1654 = vmatprep.subr.bf16.mxu0 %v2310_v0  ;;  %v1888_v12 = vpop.eup %1887 }
 0x4b7   : > { %v880_v14 = vmul.f32 %v1888_v12, %v1880_v54 }
 0x4b9   : > { %v881_v18 = vpack.c.bf16 %v880_v14, %v880_v14 }
 0x4bc   : > { %1645 = vmatmul.mubr.msk.bf16.vlgmr.msra.gmra.mrb[8].mxu0 %vm602_vm2, %v771_v11  ;;  %v1569_v11 = vld [vmem:[#allocation16] ss:$0 sm:$0xff] }
 0x4bd   : > { %1656 = vmatprep.mubr.msk.bf16.mxu0 %vm2311_vm0, %v2310_v0 }
 0x4d8   : > { %v988_v13 = vpop.xlane.xlu1 %987 }
 0x4d9   : > { %1889 = vrcp.f32 %v988_v13 }
 0x4dc   : > { %v883_v15 = vpop.permute.xlu1 %882 }
 0x4dd   : > { %v888_v16 = vsel %vm666_vm3, %v883_v15, 0  ;;  %v1873_v15 = vld [vmem:[#allocation11 + $0x10] sm:$0xff]  }
 0x4de   : > { %1655 = vmatpush3.bf16.msra.mxu0 %v888_v16  ;;  %v1874_v16 = vld [vmem:[#allocation11 + $0x18] sm:$0xff]  }
 0x4df   : > { %1666 = vmatprep.subr.bf16.mxu0 %v2310_v0 }
 0x4e1   : > { %1657 = vmatmul.mubr.msk.bf16.vlgmr.msra.gmra.mrb[12].mxu0 %vm602_vm2, %v881_v18 }
 0x4e2   : > { %1667 = vmatpush3.bf16.msra.mxu0 %v998_v19  ;;  %1668 = vmatprep.mubr.msk.bf16.mxu0 %vm2311_vm0, %v2310_v0 }
 0x4e3   : > { %v1890_v20 = vpop.eup %1889  ;;  %1680 = vmatprep.subr.bf16.mxu0 %v2310_v0 }
 0x4e4   : > { %v990_v21 = vmul.f32 %v1890_v20, %v1882_v59  ;;  %v1869_v59 = vld [vmem:[#allocation8] sm:$0xff]  }
 0x4e6   : > { %v991_v22 = vpack.c.bf16 %v990_v21, %v990_v21 }
 0x4e9   : > { %1669 = vmatmul.mubr.msk.bf16.vlgmr.msra.gmra.mrb[16].mxu0 %vm602_vm2, %v991_v22 }
 0x4ea   : > { %1684 = vmatprep.mubr.msk.bf16.mxu0 %vm2311_vm0, %v2310_v0  ;;  %1681 = vmatpush3.bf16.msra.mxu0 %v1869_v59 }
 0x4eb   : > { %1682 = vmatprep.subr.bf16.mxu0 %v2310_v0 }
 0x4ee   : > { %1683 = vmatpush3.bf16.msra.mxu0 %v1870_v60 }
 0x587   : > { %v704_v23 = vpop.f32.mrb[4].mxu0 }
 0x588   : > { %v1634_v24 = vpop.f32.mrb[5].mxu0 }
 0x589   : > { %v707_v25 = vpop.f32.mrb[6].mxu0 }
 0x58a   : > { %v1635_v26 = vpop.f32.mrb[7].mxu0  ;;  %v1574_v25 = vld [vmem:[#allocation13] ss:$0 sm:$0xff] }
 0x58f   : > { %v814_v27 = vpop.f32.mrb[8].mxu0 }
 0x590   : > { %1041 = vrot.lane.b32.xlu1 %v814_v27, %s2323_s12  ;;  %v1646_v28 = vpop.f32.mrb[9].mxu0  ;;  %s2209_s12 = scalar_lea.vmem %s2854_s11, 128 }
 0x591   : > { %v817_v29 = vpop.f32.mrb[10].mxu0  ;;  %p2210_p1 = scmp.ne.s32.totalorder %s2854_s11, %s2209_s12 }
 0x592   : > { %v1647_v30 = vpop.f32.mrb[11].mxu0 }
 0x593   : > { %p2211_p2 = pnand %p2210_p1, %p2945_p3 }
 0x595   : > { %p2212_p0 = pneg %p2211_p2 }
 0x5b4   : > { %v924_v33 = vpop.f32.mrb[12].mxu0 }
 0x5b5   : > { %1045 = vrot.lane.b32.xlu0 %v924_v33, %s2324_s24  ;;  %v1658_v34 = vpop.f32.mrb[13].mxu0  ;;  %s2215_s24 = scalar_lea.vmem %s2214_s1, 256 }
 0x5b6   : > { %v927_v35 = vpop.f32.mrb[14].mxu0  ;;  %p2217_p10 = scmp.lt.s32.totalorder %s2215_s24, %s2209_s12 }
 0x5b7   : > { %v1659_v36 = vpop.f32.mrb[15].mxu0 }
 0x5b8   : > { %p2218_p11 = por %p2217_p10, %p2216_p4 }
 0x5ba   : > { %p2219_p8 = pnand %p2218_p11, %p2212_p0 }
 0x5bc   : > { %v1034_v37 = vpop.f32.mrb[16].mxu0 }
 0x5bd   : > { %1049 = vrot.lane.b32.xlu1 %v1034_v37, %s2325_s16  ;;  %v1670_v38 = vpop.f32.mrb[17].mxu0 }
 0x5be   : > { %v1037_v39 = vpop.f32.mrb[18].mxu0 }
 0x5bf   : > { %v1671_v40 = vpop.f32.mrb[19].mxu0 }
 0x602   : > { %v1042_v41 = vpop.permute.xlu1 %1041 }
 0x603   : > { %v1052_v43 = vsel %vm602_vm2, %v704_v23, %v1042_v41 }
 0x627   : > { %v1046_v42 = vpop.permute.xlu0 %1045 }
 0x628   : > { %v1054_v44 = vsel %vm1053_vm4, %v1052_v43, %v1046_v42 }
 0x62f   : > { %v1050_v45 = vpop.permute.xlu1 %1049 }
 0x630   : > { %v1056_v46 = vsel %vm1055_vm5, %v1054_v44, %v1050_v45 }
 0x631   : > { %v1057_v47 = vpack.c.bf16 %v1056_v46, %v1056_v46  ;;  %v1580_v46 = vld [vmem:[#allocation17] ss:$0 sm:$0xff] }
 0x633   : > { %1677 = vmatmul.mubr.msk.bf16.vlgmr.msra.gmra.mrb[16].mxu1 %vm554_vm1, %v1057_v47 }
 0x634   : > { %1696 = vmatprep.mubr.msk.bf16.mxu1 %vm2311_vm0, %v2310_v0 }
 0x706   : > { %v1111_v48 = vpop.f32.mrb[16].mxu1 }
 0x707   : > { %v1117_v49 = vadd.f32 %v1111_v48, %v2759_v3  ;;  %v1678_v50 = vpop.f32.mrb[17].mxu1  ;;  %v1871_v3 = vld [vmem:[#allocation11] sm:$0xff]   ;;  %v1581_v48 = vld [vmem:[#allocation19] ss:$0 sm:$0xff] }
 0x708   : > { %v1114_v51 = vpop.f32.mrb[18].mxu1  ;;  %1689 = vmatpush3.bf16.msra.mxu1 %v1871_v3 }
 0x709   : > { %v1679_v52 = vpop.f32.mrb[19].mxu1  ;;  %v1120_v53 = vsel %vm554_vm1, %v1117_v49, 0.0  ;;  %1690 = vmatprep.subr.bf16.mxu1 %v2310_v0 }
 0x70a   : > { %1121 = vadd.xlane.f32.xlu0 %v1120_v53 }
 0x70c   : > { %1691 = vmatpush3.bf16.msra.mxu1 %v1872_v61 }
 0x70d   : > { %1692 = vmatprep.subr.bf16.mxu1 %v2310_v0 }
 0x710   : > { %1693 = vmatpush3.bf16.msra.mxu1 %v1873_v15 }
 0x711   : > { %1694 = vmatprep.subr.bf16.mxu1 %v2310_v0 }
 0x714   : > { %1695 = vmatpush3.bf16.msra.mxu1 %v1874_v16 }
 0x797   : > { %v1122_v54 = vpop.xlane.xlu0 %1121 }
 0x798   : > { %v1124_v55 = vmul.f32 0.03125, %v1122_v54 }
 0x79a   : > { %v1125_v56 = vsub.f32 %v1117_v49, %v1124_v55 }
 0x79c   : > { %v1126_v57 = vmul.f32 %v1125_v56, %v1125_v56 }
 0x79e   : > { %v1127_v58 = vsel %vm554_vm1, %v1126_v57, 0.0 }
 0x79f   : > { %1128 = vadd.xlane.f32.xlu1 %v1127_v58 }
 0x82c   : > { %v1129_v62 = vpop.xlane.xlu1 %1128 }
 0x82d   : > { %v1130_v63 = vmul.f32 0.032258064, %v1129_v62 }
 0x82f   : > { %1891 = vrsqrt.f32 %v1130_v63  ;;  %vm1133_vm6 = vcmp.eq.f32.partialorder %v1130_v63, inf  ;;  %v1136_v4 = vand.u32 2147483648, %v1130_v63  ;;  %vm1135_vm7 = vcmp.eq.f32.partialorder %v1130_v63, 0.0 }
 0x839   : > { %v1892_v1 = vpop.eup %1891 }
 0x83a   : > { %v1132_v2 = vmul.f32 %v1892_v1, %v1130_v63 }
 0x83c   : > { %v1134_v5 = vsel %vm1133_vm6, %v1130_v63, %v1132_v2 }
 0x83d   : > { %v1137_v7 = vsel %vm1135_vm7, %v1136_v4, %v1134_v5 }
 0x83e   : > { %v1138_v8 = vadd.f32 1e-06, %v1137_v7 }
 0x840   : > { %1893 = vrcp.f32 %v1138_v8 }
 0x84a   : > { %v1894_v9 = vpop.eup %1893 }
 0x84b   : > { %v1141_v6 = vmul.f32 %v1894_v9, %v1125_v56 }
 0x84d   : > { %v1148_v12 = vmul.f32 %v1568_v10, %v1141_v6 }
 0x84f   : > { %v1155_v13 = vadd.f32 %v1569_v11, %v1148_v12 }
 0x851   : > { %v1156_v14 = vpack.c.bf16 %v1155_v13, %v1155_v13 }
 0x853   : > { %1685 = vmatmul.mubr.msk.bf16.vlgmr.msra.gmra.mrb[20].mxu0 %vm554_vm1, %v1156_v14 }
 0x926   : > { %v1217_v18 = vpop.f32.mrb[20].mxu0 }
 0x927   : > { %v1218_v19 = vadd.f32 %v1570_v17, %v1217_v18  ;;  %v1686_v20 = vpop.f32.mrb[21].mxu0 }
 0x928   : > { %v1220_v21 = vpop.f32.mrb[22].mxu0 }
 0x929   : > { %v1223_v22 = vmax.f32 %v1218_v19, 0.0  ;;  %v1687_v23 = vpop.f32.mrb[23].mxu0 }
 0x92b   : > { %v1224_v24 = vpack.c.bf16 %v1223_v22, %v1223_v22 }
 0x92d   : > { %1697 = vmatmul.mubr.msk.bf16.vlgmr.msra.gmra.mrb[20].mxu1 %vm1264_vm8, %v1224_v24 }
 0xa00   : > { %v1302_v26 = vpop.f32.mrb[20].mxu1 }
 0xa01   : > { %v1303_v27 = vadd.f32 %v1574_v25, %v1302_v26  ;;  %v1698_v28 = vpop.f32.mrb[21].mxu1 }
 0xa02   : > { %v1305_v29 = vpop.f32.mrb[22].mxu1 }
 0xa03   : > { %v1699_v30 = vpop.f32.mrb[23].mxu1  ;;  %v1308_v31 = vadd.f32 %v1303_v27, %v1155_v13 }
 0xa05   : > { %v1311_v0 = vsel %vm554_vm1, %v1308_v31, 0.0 }
 0xa06   : > { %1312 = vadd.xlane.f32.xlu0 %v1311_v0 }
 0xa93   : > { %v1313_v32 = vpop.xlane.xlu0 %1312 }
 0xa94   : > { %v1314_v33 = vmul.f32 0.03125, %v1313_v32 }
 0xa96   : > { %v1315_v34 = vsub.f32 %v1308_v31, %v1314_v33 }
 0xa98   : > { %v1316_v35 = vmul.f32 %v1315_v34, %v1315_v34 }
 0xa9a   : > { %v1317_v36 = vsel %vm554_vm1, %v1316_v35, 0.0 }
 0xa9b   : > { %1318 = vadd.xlane.f32.xlu0 %v1317_v36 }
 0xb28   : > { %v1319_v37 = vpop.xlane.xlu0 %1318 }
 0xb29   : > { %v1320_v38 = vmul.f32 0.032258064, %v1319_v37 }
 0xb2b   : > { %1895 = vrsqrt.f32 %v1320_v38  ;;  %vm1323_vm9 = vcmp.eq.f32.partialorder %v1320_v38, inf  ;;  %v1326_v41 = vand.u32 2147483648, %v1320_v38  ;;  %vm1325_vm10 = vcmp.eq.f32.partialorder %v1320_v38, 0.0 }
 0xb35   : > { %v1896_v39 = vpop.eup %1895 }
 0xb36   : > { %v1322_v40 = vmul.f32 %v1896_v39, %v1320_v38 }
 0xb38   : > { %v1324_v42 = vsel %vm1323_vm9, %v1320_v38, %v1322_v40 }
 0xb39   : > { %v1327_v43 = vsel %vm1325_vm10, %v1326_v41, %v1324_v42 }
 0xb3a   : > { %v1328_v44 = vadd.f32 1e-06, %v1327_v43 }
 0xb3c   : > { %1897 = vrcp.f32 %v1328_v44 }
 0xb46   : > { %v1898_v45 = vpop.eup %1897 }
 0xb47   : > { %v1331_v47 = vmul.f32 %v1898_v45, %v1315_v34 }
 0xb49   : > { %v1338_v49 = vmul.f32 %v1580_v46, %v1331_v47 }
 0xb4b   : > { %v1345_v50 = vadd.f32 %v1581_v48, %v1338_v49 }
 0xb4d   : > { %1346 = vst.msk [vmem:[%s534_s21] sm:$0xff] %vm554_vm1, %v1345_v50 }
 0xb4e   : > { %2222 = shalt.err (!%p2219_p8)
}
 0xb4f   : > { %s2223_s22 = scalar_lea.hbm %s2852_s15, 128  ;;  %s2227_s21 = scalar_lea.hbm %s2944_s2, 256 }
 0xb50   : > { %p2224_p5 = scmp.ne.s32.totalorder %s2852_s15, %s2223_s22  ;;  %p2228_p9 = scmp.lt.u32.totalorder %s2852_s15, %s2944_s2 }
 0xb51   : > { %p2229_p12 = scmp.lt.u32.totalorder %s2227_s21, %s2223_s22  ;;  %p2231_p1 = scmp.lt.u32.totalorder %s2223_s22, %s2852_s15 }
 0xb52   : > { %p2225_p7 = pnand %p2224_p5, %p2945_p3 }
 0xb53   : > { %p2230_p13 = por %p2229_p12, %p2228_p9 }
 0xb54   : > { %p2226_p6 = pneg %p2225_p7 }
 0xb55   : > { %p2232_p2 = por %p2231_p1, %p2230_p13 }
 0xb57   : > { %p2233_p0 = pnand %p2232_p2, %p2226_p6 }
 0xb59   : > { %2236 = shalt.err (!%p2233_p0)
}
 0xb5a   : > { %1742 = dma.vmem_to_hbm [thread:$0]  (%p2945_p3), %s2854_s11, 128, %s2852_s15, %s1348_s14  }
 0xb5b PF: > { %s1373_s12 = sand.u32 1, %s2283_s17   ;;  %p2946_p4 = scmp.ne.s32.totalorder %s2929_s25, 0 }
 0xb5c   : > { %p2947_p10 = scmp.ge.s32.totalorder %s2295_s20, 2  ;;  %s1374_s23 = scalar_lea.sflag [#allocation4], %s1373_s12 }
 0xb5e   : > { %p1780_p11 = pnand %p2947_p10, %p2946_p4 }
 0xb60   : > { %2278 = dma.done.wait (!%p1780_p11), %s1374_s23, 128  }
 0xb61   : > { %2280 = vsyncadd (!%p1780_p11), %s1374_s23, 4294967168  ;;  %p29_p8 = scmp.ge.s32.totalorder %s2647_s27, 4   ;;  %s2948_s17 = smov %s2287_s18 }
 0xb62   : > { %s2949_s18 = smov %s2291_s19  ;;  %s2950_s19 = smov %s2658_s30 }
 0xb63   : > { %s2951_s20 = smov %s2647_s27  ;;  %31 = sbr.rel (!%p29_p8) target bundleno = 15 (0xf), region = 149 }
 0xb6a   :  { %1379 = vsyncpa [#allocation3], 1 }
 0xb6b   :  { %1381 = vsyncpa [#allocation3 + $0x1], 1 }
 0xb6c   :  { %1382 = vsyncpa [#allocation6], 1 }
 0xb6d   :  { %1383 = vsyncpa [#allocation9], 1 }
 0xb6e   :  { %1384 = vsyncpa [#allocation12], 1 }
 0xb6f   :  { %1385 = vsyncpa [#allocation15], 1 }
 0xb70   :  { %1386 = vsyncpa [#allocation18], 1 }
 0xb71   :  { %1387 = vsyncpa [#allocation4], 1 }
 0xb72   :  { %1389 = vsyncpa [#allocation4 + $0x1], 1 }

</bundles_post_ra>
